<compile_context>
chip_gen: v6e
topology: v6e:2x2x1
jax: 0.10.0
libtpu: 0.0.40
codegen_flags: <defaults>
</compile_context>

<pallas_src>
import functools
from collections import namedtuple

import jax
import jax.numpy as jnp
from jax.experimental import pallas as pl
from jax.experimental.pallas import tpu as pltpu

LossTuple = namedtuple(
    "LossTuple",
    ["rpn_loc_loss", "rpn_cls_loss", "roi_loc_loss", "roi_cls_loss", "total_loss"],
)

_VMEM = pltpu.MemorySpace.VMEM
LANE = 128  # lane-dense output width


# ----------------------------------------------------------------------------- #
# Pallas kernels
# ----------------------------------------------------------------------------- #

def _backbone_rpn_kernel(x_ref, wext_ref, bext_ref, wrpn_ref, brpn_ref,
                         whead_ref, bhead_ref, feat_ref, out_ref):
    """Fused extractor conv + RPN mid conv + (loc || score) heads.

    x:      [tm, c_in]   f32
    wext:   [c_in, 128]  f32   (cols >= c_feat are zero)
    wrpn:   [128, c_feat] bf16 (rows >= c_feat are zero)
    whead:  [c_feat, 128] bf16 (cols >= 6*A are zero)
    feat_ref / out_ref: [tm, 128] f32 (lane-dense, unmasked stores)
    """
    x = x_ref[...]                                   # [tm, c_in] f32
    w = wext_ref[...]                                # [c_in, 128] f32
    # Extractor: K=c_in (3) is far below the MXU tile -> do it as VPU FMAs.
    acc = jnp.broadcast_to(bext_ref[...], (x.shape[0], w.shape[1]))
    for k in range(x.shape[1]):                      # static, tiny
        acc = acc + x[:, k:k + 1] * w[k:k + 1, :]
    feat = jnp.maximum(acc, 0.0)                     # [tm, 128] f32
    feat_ref[...] = feat

    # RPN mid conv + fused loc/score heads on the MXU, bf16 in / f32 acc.
    mid = jnp.dot(feat.astype(jnp.bfloat16), wrpn_ref[...],
                  preferred_element_type=jnp.float32)
    mid = jnp.maximum(mid + brpn_ref[...], 0.0)      # [tm, c_feat] f32
    out = jnp.dot(mid.astype(jnp.bfloat16), whead_ref[...],
                  preferred_element_type=jnp.float32)
    out_ref[...] = out + bhead_ref[...]              # [tm, 128] f32


def backbone_rpn(x, w_ext, b_ext, w_rpn, b_rpn, w_head, b_head, tile_m=256):
    """x: [M, c_in] f32. Returns (feat [M,128] f32, rpn_out [M,128] f32)."""
    M, c_in = x.shape
    c_feat = w_rpn.shape[0]
    n_head = w_head.shape[1]

    # Pad weights/biases to lane-dense 128-wide output slabs (zeros elsewhere).
    w_ext_p = jnp.zeros((c_in, LANE), jnp.float32).at[:, :c_feat].set(w_ext)
    b_ext_p = jnp.zeros((1, LANE), jnp.float32).at[:, :c_feat].set(b_ext)
    w_rpn_p = jnp.zeros((LANE, c_feat), jnp.bfloat16).at[:c_feat, :].set(
        w_rpn.astype(jnp.bfloat16))
    b_rpn_p = b_rpn.reshape(1, c_feat).astype(jnp.float32)
    w_head_p = jnp.zeros((c_feat, LANE), jnp.bfloat16).at[:, :n_head].set(
        w_head.astype(jnp.bfloat16))
    b_head_p = jnp.zeros((1, LANE), jnp.float32).at[:, :n_head].set(b_head)

    if M % tile_m != 0:
        tile_m = M  # fall back to a single full-array block
    grid = (M // tile_m,)

    feat, out = pl.pallas_call(
        _backbone_rpn_kernel,
        out_shape=(jax.ShapeDtypeStruct((M, LANE), jnp.float32),
                   jax.ShapeDtypeStruct((M, LANE), jnp.float32)),
        grid=grid,
        in_specs=[
            pl.BlockSpec((tile_m, c_in), lambda i: (i, 0)),
            pl.BlockSpec((c_in, LANE), lambda i: (0, 0)),
            pl.BlockSpec((1, LANE), lambda i: (0, 0)),
            pl.BlockSpec((LANE, c_feat), lambda i: (0, 0)),
            pl.BlockSpec((1, c_feat), lambda i: (0, 0)),
            pl.BlockSpec((c_feat, LANE), lambda i: (0, 0)),
            pl.BlockSpec((1, LANE), lambda i: (0, 0)),
        ],
        out_specs=(pl.BlockSpec((tile_m, LANE), lambda i: (i, 0)),
                   pl.BlockSpec((tile_m, LANE), lambda i: (i, 0))),
        compiler_params=pltpu.CompilerParams(dimension_semantics=("parallel",)),
    )(x, w_ext_p, b_ext_p, w_rpn_p, b_rpn_p, w_head_p, b_head_p)
    return feat, out


def _head_kernel(x_ref, w1_ref, b1_ref, w2_ref, b2_ref, o_ref):
    """Fused ROI head: fc1 + relu + (cls_loc || score) heads. Output [S,128] f32."""
    h = jnp.dot(x_ref[...], w1_ref[...], preferred_element_type=jnp.float32)
    h = jnp.maximum(h + b1_ref[...], 0.0)
    out = jnp.dot(h.astype(jnp.bfloat16), w2_ref[...],
                  preferred_element_type=jnp.float32)
    o_ref[...] = out + b2_ref[...]


def roi_head(pooled, w_fc1, b_fc1, w_out, b_out):
    """pooled: [S, 4*c_feat] f32 -> [S, 128] f32 (cols: n_class*4 loc || n_class score)."""
    S, _ = pooled.shape
    hdim = w_fc1.shape[1]
    n_out = w_out.shape[1]
    w_out_p = jnp.zeros((hdim, LANE), jnp.bfloat16).at[:, :n_out].set(
        w_out.astype(jnp.bfloat16))
    b_out_p = jnp.zeros((1, LANE), jnp.float32).at[:, :n_out].set(b_out)
    return pl.pallas_call(
        _head_kernel,
        out_shape=jax.ShapeDtypeStruct((S, LANE), jnp.float32),
        in_specs=[pl.BlockSpec(memory_space=_VMEM)] * 5,
        out_specs=pl.BlockSpec(memory_space=_VMEM),
    )(pooled.astype(jnp.bfloat16), w_fc1.astype(jnp.bfloat16),
      b_fc1.reshape(1, hdim).astype(jnp.float32), w_out_p, b_out_p)


def _losses_kernel(rpn_loc_p_ref, rpn_loc_g_ref, rpn_lab_ref, rpn_sco_ref,
                   roi_loc_p_ref, roi_loc_g_ref, roi_lab_ref, roi_sco_ref,
                   o_ref, *, n, rpn_sigma, roi_sigma):
    """All four losses for the whole batch. Inputs are lane-dense:
       loc/gt_loc: [n, 4, R], labels: [n, 1, R] i32, scores: [n, C, R].
       Output: one (1, 128) row; lanes 0..3 = losses, lane 4 = total."""

    def smooth_l1_masked(pred, gt, label, sigma):
        # Matches _fast_rcnn_loc_loss: sum over (label > 0) rows / max(num_pos, 1).
        sigma2 = float(sigma) ** 2
        diff = jnp.abs(pred - gt)                                    # [4, R]
        l = jnp.where(diff < (1.0 / sigma2),
                      0.5 * sigma2 * diff * diff, diff - 0.5 / sigma2)
        pos = (label > 0).astype(jnp.float32)                        # [1, R]
        s = jnp.sum(l * pos, axis=1, keepdims=True)                  # [4, 1]
        s = jnp.sum(s, axis=0, keepdims=True)                        # [1, 1]
        npos = jnp.sum(pos, axis=1, keepdims=True)                   # [1, 1]
        return s / jnp.maximum(npos, 1.0)

    def ce_ignore(score, label):
        # Mean cross entropy over rows with label != -1.
        m = jnp.max(score, axis=0, keepdims=True)                    # [1, R]
        lse = m + jnp.log(jnp.sum(jnp.exp(score - m), axis=0, keepdims=True))
        cls_ids = jax.lax.broadcasted_iota(jnp.int32, score.shape, 0)
        picked = jnp.sum(jnp.where(cls_ids == label, score, 0.0),
                         axis=0, keepdims=True)                      # [1, R]
        per = lse - picked
        valid = (label != -1).astype(jnp.float32)
        tot = jnp.sum(per * valid, axis=1, keepdims=True)
        cnt = jnp.sum(valid, axis=1, keepdims=True)
        return tot / jnp.maximum(cnt, 1.0)

    zero = jnp.zeros((1, 1), jnp.float32)
    rpn_loc_l, rpn_cls_l, roi_loc_l, roi_cls_l = zero, zero, zero, zero
    for i in range(n):   # statically unrolled over the (small) batch
        rpn_loc_l = rpn_loc_l + smooth_l1_masked(
            rpn_loc_p_ref[i], rpn_loc_g_ref[i], rpn_lab_ref[i], rpn_sigma)
        rpn_cls_l = rpn_cls_l + ce_ignore(rpn_sco_ref[i], rpn_lab_ref[i])
        roi_loc_l = roi_loc_l + smooth_l1_masked(
            roi_loc_p_ref[i], roi_loc_g_ref[i], roi_lab_ref[i], roi_sigma)
        roi_cls_l = roi_cls_l + ce_ignore(roi_sco_ref[i], roi_lab_ref[i])

    inv_n = 1.0 / float(n)
    l0 = rpn_loc_l * inv_n
    l1 = rpn_cls_l * inv_n
    l2 = roi_loc_l * inv_n
    l3 = roi_cls_l * inv_n
    total = l0 + l1 + l2 + l3

    lane = jax.lax.broadcasted_iota(jnp.int32, (1, LANE), 1)
    row = (jnp.where(lane == 0, l0, 0.0) + jnp.where(lane == 1, l1, 0.0)
           + jnp.where(lane == 2, l2, 0.0) + jnp.where(lane == 3, l3, 0.0)
           + jnp.where(lane == 4, total, 0.0))
    o_ref[...] = row


def fast_rcnn_losses(rpn_loc_p, rpn_loc_g, rpn_lab, rpn_sco,
                     roi_loc_p, roi_loc_g, roi_lab, roi_sco,
                     *, rpn_sigma, roi_sigma):
    n = rpn_loc_p.shape[0]
    out = pl.pallas_call(
        functools.partial(_losses_kernel, n=n,
                          rpn_sigma=float(rpn_sigma), roi_sigma=float(roi_sigma)),
        out_shape=jax.ShapeDtypeStruct((1, LANE), jnp.float32),
        in_specs=[pl.BlockSpec(memory_space=_VMEM)] * 8,
        out_specs=pl.BlockSpec(memory_space=_VMEM),
    )(rpn_loc_p.astype(jnp.float32), rpn_loc_g.astype(jnp.float32),
      rpn_lab.astype(jnp.int32), rpn_sco.astype(jnp.float32),
      roi_loc_p.astype(jnp.float32), roi_loc_g.astype(jnp.float32),
      roi_lab.astype(jnp.int32), roi_sco.astype(jnp.float32))
    return out[0, 0], out[0, 1], out[0, 2], out[0, 3], out[0, 4]


# ----------------------------------------------------------------------------- #
# Plain-JAX glue: box utilities, anchor/proposal targets, ROI gather
# ----------------------------------------------------------------------------- #

def bbox_iou(a, b, eps=1e-6):
    tl = jnp.maximum(a[:, None, :2], b[None, :, :2])
    br = jnp.minimum(a[:, None, 2:], b[None, :, 2:])
    wh = jnp.clip(br - tl, 0.0)
    inter = wh[..., 0] * wh[..., 1]
    area_a = jnp.clip(a[:, 2] - a[:, 0], 0.0) * jnp.clip(a[:, 3] - a[:, 1], 0.0)
    area_b = jnp.clip(b[:, 2] - b[:, 0], 0.0) * jnp.clip(b[:, 3] - b[:, 1], 0.0)
    return inter / (area_a[:, None] + area_b[None, :] - inter + eps)


def bbox2loc(src, dst, eps=1e-3):
    h = jnp.maximum(src[:, 2] - src[:, 0], eps)
    w = jnp.maximum(src[:, 3] - src[:, 1], eps)
    cy = src[:, 0] + 0.5 * h
    cx = src[:, 1] + 0.5 * w
    gh = jnp.maximum(dst[:, 2] - dst[:, 0], eps)
    gw = jnp.maximum(dst[:, 3] - dst[:, 1], eps)
    gcy = dst[:, 0] + 0.5 * gh
    gcx = dst[:, 1] + 0.5 * gw
    dy = (gcy - cy) / h
    dx = (gcx - cx) / w
    dh = jnp.log(gh / h)
    dw = jnp.log(gw / w)
    return jnp.stack([dy, dx, dh, dw], axis=1)


def loc2bbox(anchor, loc):
    h = anchor[:, 2] - anchor[:, 0]
    w = anchor[:, 3] - anchor[:, 1]
    cy = anchor[:, 0] + 0.5 * h
    cx = anchor[:, 1] + 0.5 * w
    ncy = loc[:, 0] * h + cy
    ncx = loc[:, 1] * w + cx
    nh = h * jnp.exp(loc[:, 2])
    nw = w * jnp.exp(loc[:, 3])
    return jnp.stack(
        [ncy - 0.5 * nh, ncx - 0.5 * nw, ncy + 0.5 * nh, ncx + 0.5 * nw], axis=1
    )


def generate_anchors(H, W, sizes):
    ys, xs = jnp.meshgrid(
        jnp.arange(H, dtype=jnp.float32) + 0.5,
        jnp.arange(W, dtype=jnp.float32) + 0.5,
        indexing="ij",
    )
    cy = ys.reshape(-1)[:, None]
    cx = xs.reshape(-1)[:, None]
    half = (sizes / 2.0)[None, :]
    anchors = jnp.stack([cy - half, cx - half, cy + half, cx + half], axis=-1)
    return anchors.reshape(-1, 4)                 # [H*W*A, 4], order (pos, anchor)


def anchor_target(bbox, anchor, img_size):
    """Deterministic AnchorTargetCreator (no random subsampling)."""
    H, W = img_size
    inside = (
        (anchor[:, 0] >= 0.0)
        & (anchor[:, 1] >= 0.0)
        & (anchor[:, 2] <= float(H))
        & (anchor[:, 3] <= float(W))
    )
    iou = bbox_iou(anchor, bbox)                 # [K, R]
    max_iou = jnp.max(iou, axis=1)
    argmax = jnp.argmax(iou, axis=1)
    label = jnp.where(max_iou >= 0.5, 1, jnp.where(max_iou < 0.3, 0, -1))
    label = jnp.where(inside, label, -1).astype(jnp.int32)
    gt_loc = bbox2loc(anchor, bbox[argmax])
    return gt_loc, label


def proposal_target(roi, bbox, label, loc_mean, loc_std, n_sample=32):
    """Deterministic ProposalTargetCreator (top-K by IoU, no pos/neg sampling)."""
    roi_all = jnp.concatenate([roi, bbox], axis=0)
    iou = bbox_iou(roi_all, bbox)
    max_iou = jnp.max(iou, axis=1)
    assign = jnp.argmax(iou, axis=1)
    top_iou, order = jax.lax.top_k(max_iou, n_sample)
    sample_roi = roi_all[order]
    keep_assign = assign[order]
    gt_roi_label = jnp.where(top_iou >= 0.5, label[keep_assign] + 1, 0).astype(jnp.int32)
    gt_roi_loc = (bbox2loc(sample_roi, bbox[keep_assign]) - loc_mean) / loc_std
    return sample_roi, gt_roi_loc, gt_roi_label


def roi_pool_2x2(feature_chw, rois):
    """Nearest-neighbor 2x2 ROI pooling (feature stride 1). feature_chw: [C,H,W]."""
    C, H, W = feature_chw.shape
    fr = jnp.array([0.25, 0.75], dtype=jnp.float32)
    ys = rois[:, 0:1] + (rois[:, 2:3] - rois[:, 0:1]) * fr[None, :]   # [S, 2]
    xs = rois[:, 1:2] + (rois[:, 3:4] - rois[:, 1:2]) * fr[None, :]   # [S, 2]
    yi = jnp.clip(ys.astype(jnp.int32), 0, H - 1)
    xi = jnp.clip(xs.astype(jnp.int32), 0, W - 1)
    pooled = feature_chw[:, yi[:, :, None], xi[:, None, :]]           # [C, S, 2, 2]
    pooled = jnp.transpose(pooled, (1, 0, 2, 3))                      # [S, C, 2, 2]
    S = pooled.shape[0]
    return pooled.reshape(S, C * 4)


# ----------------------------------------------------------------------------- #
# Synthetic Faster R-CNN + trainer (forward pass only)
# ----------------------------------------------------------------------------- #

class FasterRCNNTrainer:
    def __init__(self, key, c_in=3, c_feat=16, n_anchor=3, n_fg_class=4,
                 fc_hidden=32, n_sample=32, n_proposal=64):
        self.rpn_sigma = 1
        self.roi_sigma = 1
        self.loc_normalize_mean = jnp.array([0.0, 0.0, 0.0, 0.0], jnp.float32)
        self.loc_normalize_std = jnp.array([0.1, 0.1, 0.2, 0.2], jnp.float32)
        self.c_feat = c_feat
        self.n_anchor = n_anchor
        self.n_class = n_fg_class + 1
        self.fc_hidden = fc_hidden
        self.n_sample = n_sample
        self.n_proposal = n_proposal
        self.anchor_sizes = jnp.array([2.0, 4.0, 8.0], jnp.float32)

        ks = jax.random.split(key, 12)
        s = 0.1
        self.params = {
            "w_ext": s * jax.random.normal(ks[0], (c_in, c_feat), jnp.float32),
            "b_ext": jnp.zeros((c_feat,), jnp.float32),
            "w_rpn": s * jax.random.normal(ks[1], (c_feat, c_feat), jnp.float32),
            "b_rpn": jnp.zeros((c_feat,), jnp.float32),
            "w_loc": s * jax.random.normal(ks[2], (c_feat, 4 * n_anchor), jnp.float32),
            "b_loc": jnp.zeros((4 * n_anchor,), jnp.float32),
            "w_sco": s * jax.random.normal(ks[3], (c_feat, 2 * n_anchor), jnp.float32),
            "b_sco": jnp.zeros((2 * n_anchor,), jnp.float32),
            "w_fc1": s * jax.random.normal(ks[4], (c_feat * 4, fc_hidden), jnp.float32),
            "b_fc1": jnp.zeros((fc_hidden,), jnp.float32),
            "w_cls_loc": s * jax.random.normal(ks[5], (fc_hidden, self.n_class * 4), jnp.float32),
            "b_cls_loc": jnp.zeros((self.n_class * 4,), jnp.float32),
            "w_score": s * jax.random.normal(ks[6], (fc_hidden, self.n_class), jnp.float32),
            "b_score": jnp.zeros((self.n_class,), jnp.float32),
        }
        # Fused head weights (loc || score concatenated along the output axis).
        self._w_rpn_head = jnp.concatenate(
            [self.params["w_loc"], self.params["w_sco"]], axis=1)       # [c_feat, 6A]
        self._b_rpn_head = jnp.concatenate(
            [self.params["b_loc"], self.params["b_sco"]], axis=0)       # [6A]
        self._w_head_out = jnp.concatenate(
            [self.params["w_cls_loc"], self.params["w_score"]], axis=1)  # [fc, nc*4+nc]
        self._b_head_out = jnp.concatenate(
            [self.params["b_cls_loc"], self.params["b_score"]], axis=0)

        self._forward_jit = jax.jit(self._forward_impl)

    # --------------------------------- forward --------------------------------- #

    def forward(self, imgs, bboxes, labels, scale):
        # TODO(synk): `scale` only affects NMS min-size filtering in the original
        # RPN proposal layer; proposal filtering is replaced by deterministic top-K.
        del scale
        return self._forward_jit(imgs, bboxes, labels)

    def _forward_impl(self, imgs, bboxes, labels):
        N, c_in, H, W = imgs.shape
        img_size = (H, W)
        A = self.n_anchor
        K = H * W * A
        C_feat = self.c_feat
        n_class = self.n_class
        S = self.n_sample
        P = self.n_proposal

        # ---- fused extractor + RPN (one M-tiled pallas_call) -------------------
        x = jnp.transpose(imgs, (0, 2, 3, 1)).reshape(N * H * W, c_in)
        feat_pad, rpn_out = backbone_rpn(
            x, self.params["w_ext"], self.params["b_ext"],
            self.params["w_rpn"], self.params["b_rpn"],
            self._w_rpn_head, self._b_rpn_head)
        # rpn_out cols: [0, 4A) = loc (anchor-major, coord-minor), [4A, 6A) = score.
        rpn_locs = rpn_out[:, :4 * A].reshape(N, K, 4)
        rpn_scores = rpn_out[:, 4 * A:6 * A].reshape(N, K, 2)

        anchor = generate_anchors(H, W, self.anchor_sizes)

        # ---- proposals: decode + clip + top-K by fg score (replaces NMS) -------
        props = jax.vmap(loc2bbox, in_axes=(None, 0))(anchor, rpn_locs)    # [N,K,4]
        props = jnp.stack([
            jnp.clip(props[..., 0], 0.0, float(H)),
            jnp.clip(props[..., 1], 0.0, float(W)),
            jnp.clip(props[..., 2], 0.0, float(H)),
            jnp.clip(props[..., 3], 0.0, float(W)),
        ], axis=-1)
        fg = rpn_scores[..., 1] - rpn_scores[..., 0]      # same ranking as softmax fg prob
        _, prop_idx = jax.lax.top_k(fg, P)                                  # [N,P]
        rois = jnp.take_along_axis(
            props, jnp.broadcast_to(prop_idx[..., None], (N, P, 4)), axis=1)  # [N,P,4]

        # ---- targets (batched plain-JAX glue) -----------------------------------
        gt_rpn_loc, gt_rpn_label = jax.vmap(
            lambda bb: anchor_target(bb, anchor, img_size))(bboxes)         # [N,K,4],[N,K]

        sample_roi, gt_roi_loc, gt_roi_label = jax.vmap(
            lambda r, bb, lb: proposal_target(
                r, bb, lb, self.loc_normalize_mean, self.loc_normalize_std,
                self.n_sample))(rois, bboxes, labels)                        # [N,S,*]

        # ---- ROI pooling + fused head (one pallas_call over all N*S rois) ------
        feat_nhwc = feat_pad[:, :C_feat].reshape(N, H, W, C_feat)
        feat_chw = jnp.transpose(feat_nhwc, (0, 3, 1, 2))                    # [N,C,H,W]
        pooled = jax.vmap(roi_pool_2x2)(feat_chw, sample_roi)                # [N,S,4C]
        pooled = pooled.reshape(N * S, 4 * C_feat)

        head_out = roi_head(pooled, self.params["w_fc1"], self.params["b_fc1"],
                            self._w_head_out, self._b_head_out)              # [N*S,128]
        roi_cls_loc = head_out[:, :n_class * 4].reshape(N, S, n_class, 4)
        roi_score = head_out[:, n_class * 4:n_class * 4 + n_class].reshape(N, S, n_class)

        # predicted loc of the gt class for each sampled ROI
        idx = jnp.broadcast_to(gt_roi_label[:, :, None, None].astype(jnp.int32),
                               (N, S, 1, 4))
        roi_loc = jnp.take_along_axis(roi_cls_loc, idx, axis=2)[:, :, 0, :]  # [N,S,4]

        # ---- all four losses in one lane-dense Pallas kernel --------------------
        rpn_loc_l, rpn_cls_l, roi_loc_l, roi_cls_l, total = fast_rcnn_losses(
            jnp.swapaxes(rpn_locs, 1, 2),             # [N,4,K]
            jnp.swapaxes(gt_rpn_loc, 1, 2),           # [N,4,K]
            gt_rpn_label.reshape(N, 1, K),            # [N,1,K]
            jnp.swapaxes(rpn_scores, 1, 2),           # [N,2,K]
            jnp.swapaxes(roi_loc, 1, 2),              # [N,4,S]
            jnp.swapaxes(gt_roi_loc, 1, 2),           # [N,4,S]
            gt_roi_label.reshape(N, 1, S),            # [N,1,S]
            jnp.swapaxes(roi_score, 1, 2),            # [N,C,S]
            rpn_sigma=self.rpn_sigma, roi_sigma=self.roi_sigma)

        return LossTuple(rpn_loc_l, rpn_cls_l, roi_loc_l, roi_cls_l, total)


# ----------------------------------------------------------------------------- #
# Main
# ----------------------------------------------------------------------------- #

if __name__ == "__main__":
    key = jax.random.PRNGKey(0)
    k_img, k_box, k_sz, k_lab, k_param = jax.random.split(key, 5)

    N, C, H, W = 2, 3, 16, 16
    R_GT = 4
    N_FG_CLASS = 4

    imgs = jax.random.uniform(k_img, (N, C, H, W), jnp.float32)
    y1x1 = jax.random.uniform(k_box, (N, R_GT, 2), jnp.float32, 0.0, 8.0)
    hw = jax.random.uniform(k_sz, (N, R_GT, 2), jnp.float32, 2.0, 8.0)
    y2x2 = jnp.clip(y1x1 + hw, 0.0, 16.0)
    bboxes = jnp.concatenate([y1x1, y2x2], axis=-1)            # [N, R_GT, 4] (y1,x1,y2,x2)
    labels = jax.random.randint(k_lab, (N, R_GT), 0, N_FG_CLASS, jnp.int32)
    scale = 1.0

    trainer = FasterRCNNTrainer(k_param, c_in=C, n_fg_class=N_FG_CLASS)
    losses = trainer.forward(imgs, bboxes, labels, scale)
    jax.block_until_ready(losses.total_loss)

    assert bool(jnp.isfinite(losses.total_loss)), "non-finite loss"
    print("KERNEL_OK")
</pallas_src>

<mosaic_0001>
module attributes {stable_mosaic.version = 11 : i64} {
  func.func @_backbone_rpn_kernel(%arg0: i32, %arg1: memref<256x3xf32, #tpu.memory_space<vmem>>, %arg2: memref<3x128xf32, #tpu.memory_space<vmem>>, %arg3: memref<1x128xf32, #tpu.memory_space<vmem>>, %arg4: memref<128x16xbf16, #tpu.memory_space<vmem>>, %arg5: memref<1x16xf32, #tpu.memory_space<vmem>>, %arg6: memref<16x128xbf16, #tpu.memory_space<vmem>>, %arg7: memref<1x128xf32, #tpu.memory_space<vmem>>, %arg8: memref<256x128xf32, #tpu.memory_space<vmem>>, %arg9: memref<256x128xf32, #tpu.memory_space<vmem>>) attributes {dimension_semantics = [#tpu.dimension_semantics<parallel>], iteration_bounds = array<i64: 2>, scalar_prefetch = 0 : i64, scratch_operands = 0 : i64, tpu.core_type = #tpu.core_type<tc>, window_params = [{transform_indices = @transform_0, window_bounds = array<i64: 256, 3>}, {pipeline_mode = #tpu.pipeline_mode<synchronous>, transform_indices = @transform_1, window_bounds = array<i64: 3, 128>}, {pipeline_mode = #tpu.pipeline_mode<synchronous>, transform_indices = @transform_2, window_bounds = array<i64: 1, 128>}, {pipeline_mode = #tpu.pipeline_mode<synchronous>, transform_indices = @transform_3, window_bounds = array<i64: 128, 16>}, {pipeline_mode = #tpu.pipeline_mode<synchronous>, transform_indices = @transform_4, window_bounds = array<i64: 1, 16>}, {pipeline_mode = #tpu.pipeline_mode<synchronous>, transform_indices = @transform_5, window_bounds = array<i64: 16, 128>}, {pipeline_mode = #tpu.pipeline_mode<synchronous>, transform_indices = @transform_6, window_bounds = array<i64: 1, 128>}, {transform_indices = @transform_7, window_bounds = array<i64: 256, 128>}, {transform_indices = @transform_8, window_bounds = array<i64: 256, 128>}]} {
    %c0 = arith.constant 0 : index
    %c0_0 = arith.constant 0 : index
    %0 = vector.load %arg1[%c0, %c0_0] : memref<256x3xf32, #tpu.memory_space<vmem>>, vector<256x3xf32>
    %c0_1 = arith.constant 0 : index
    %c0_2 = arith.constant 0 : index
    %1 = vector.load %arg2[%c0_1, %c0_2] : memref<3x128xf32, #tpu.memory_space<vmem>>, vector<3x128xf32>
    %c0_3 = arith.constant 0 : index
    %c0_4 = arith.constant 0 : index
    %2 = vector.load %arg3[%c0_3, %c0_4] : memref<1x128xf32, #tpu.memory_space<vmem>>, vector<1x128xf32>
    %3 = vector.shape_cast %2 : vector<1x128xf32> to vector<1x128xf32>
    %4 = vector.broadcast %3 : vector<1x128xf32> to vector<256x128xf32>
    %5 = vector.extract_strided_slice %0 {offsets = [0, 0], sizes = [256, 1], strides = [1, 1]} : vector<256x3xf32> to vector<256x1xf32>
    %6 = vector.extract_strided_slice %1 {offsets = [0, 0], sizes = [1, 128], strides = [1, 1]} : vector<3x128xf32> to vector<1x128xf32>
    %7 = vector.broadcast %5 : vector<256x1xf32> to vector<256x128xf32>
    %8 = vector.broadcast %6 : vector<1x128xf32> to vector<256x128xf32>
    %9 = arith.mulf %7, %8 : vector<256x128xf32>
    %10 = arith.addf %4, %9 : vector<256x128xf32>
    %11 = vector.extract_strided_slice %0 {offsets = [0, 1], sizes = [256, 1], strides = [1, 1]} : vector<256x3xf32> to vector<256x1xf32>
    %12 = vector.extract_strided_slice %1 {offsets = [1, 0], sizes = [1, 128], strides = [1, 1]} : vector<3x128xf32> to vector<1x128xf32>
    %13 = vector.broadcast %11 : vector<256x1xf32> to vector<256x128xf32>
    %14 = vector.broadcast %12 : vector<1x128xf32> to vector<256x128xf32>
    %15 = arith.mulf %13, %14 : vector<256x128xf32>
    %16 = arith.addf %10, %15 : vector<256x128xf32>
    %17 = vector.extract_strided_slice %0 {offsets = [0, 2], sizes = [256, 1], strides = [1, 1]} : vector<256x3xf32> to vector<256x1xf32>
    %18 = vector.extract_strided_slice %1 {offsets = [2, 0], sizes = [1, 128], strides = [1, 1]} : vector<3x128xf32> to vector<1x128xf32>
    %19 = vector.broadcast %17 : vector<256x1xf32> to vector<256x128xf32>
    %20 = vector.broadcast %18 : vector<1x128xf32> to vector<256x128xf32>
    %21 = arith.mulf %19, %20 : vector<256x128xf32>
    %22 = arith.addf %16, %21 : vector<256x128xf32>
    %cst = arith.constant 0.000000e+00 : f32
    %23 = vector.broadcast %cst : f32 to vector<256x128xf32>
    %24 = arith.maximumf %22, %23 : vector<256x128xf32>
    %c0_5 = arith.constant 0 : index
    %c0_6 = arith.constant 0 : index
    %25 = vector.load %arg8[%c0_5, %c0_6] : memref<256x128xf32, #tpu.memory_space<vmem>>, vector<256x128xf32>
    tpu.vector_store %arg8[%c0_5, %c0_6], %24 {strides = array<i32>} : memref<256x128xf32, #tpu.memory_space<vmem>>, vector<256x128xf32>,
    %26 = arith.truncf %24 : vector<256x128xf32> to vector<256x128xbf16>
    %c0_7 = arith.constant 0 : index
    %c0_8 = arith.constant 0 : index
    %27 = vector.load %arg4[%c0_7, %c0_8] : memref<128x16xbf16, #tpu.memory_space<vmem>>, vector<128x16xbf16>
    %cst_9 = arith.constant dense<0.000000e+00> : vector<256x16xf32>
    %28 = tpu.matmul %26, %27, %cst_9 {dimension_numbers = #tpu.dot_dimension_numbers<[1], [0], [0], [1], [0, 0, 1, 1], [], []>} : vector<256x128xbf16>, vector<128x16xbf16>, vector<256x16xf32> -> vector<256x16xf32>
    %c0_10 = arith.constant 0 : index
    %c0_11 = arith.constant 0 : index
    %29 = vector.load %arg5[%c0_10, %c0_11] : memref<1x16xf32, #tpu.memory_space<vmem>>, vector<1x16xf32>
    %30 = vector.broadcast %29 : vector<1x16xf32> to vector<256x16xf32>
    %31 = arith.addf %28, %30 : vector<256x16xf32>
    %cst_12 = arith.constant 0.000000e+00 : f32
    %32 = vector.broadcast %cst_12 : f32 to vector<256x16xf32>
    %33 = arith.maximumf %31, %32 : vector<256x16xf32>
    %34 = arith.truncf %33 : vector<256x16xf32> to vector<256x16xbf16>
    %c0_13 = arith.constant 0 : index
    %c0_14 = arith.constant 0 : index
    %35 = vector.load %arg6[%c0_13, %c0_14] : memref<16x128xbf16, #tpu.memory_space<vmem>>, vector<16x128xbf16>
    %cst_15 = arith.constant dense<0.000000e+00> : vector<256x128xf32>
    %36 = tpu.matmul %34, %35, %cst_15 {dimension_numbers = #tpu.dot_dimension_numbers<[1], [0], [0], [1], [0, 0, 1, 1], [], []>} : vector<256x16xbf16>, vector<16x128xbf16>, vector<256x128xf32> -> vector<256x128xf32>
    %c0_16 = arith.constant 0 : index
    %c0_17 = arith.constant 0 : index
    %37 = vector.load %arg7[%c0_16, %c0_17] : memref<1x128xf32, #tpu.memory_space<vmem>>, vector<1x128xf32>
    %38 = vector.broadcast %37 : vector<1x128xf32> to vector<256x128xf32>
    %39 = arith.addf %36, %38 : vector<256x128xf32>
    %c0_18 = arith.constant 0 : index
    %c0_19 = arith.constant 0 : index
    %40 = vector.load %arg9[%c0_18, %c0_19] : memref<256x128xf32, #tpu.memory_space<vmem>>, vector<256x128xf32>
    tpu.vector_store %arg9[%c0_18, %c0_19], %39 {strides = array<i32>} : memref<256x128xf32, #tpu.memory_space<vmem>>, vector<256x128xf32>,
    return
  }
  func.func @transform_0(%arg0: i32) -> (i32, i32) {
    %c0_i32 = arith.constant 0 : i32
    %c0_i32_0 = arith.constant 0 : i32
    return %arg0, %c0_i32 : i32, i32
  }
  func.func @transform_1(%arg0: i32) -> (i32, i32) {
    %c0_i32 = arith.constant 0 : i32
    %c0_i32_0 = arith.constant 0 : i32
    %c0_i32_1 = arith.constant 0 : i32
    return %c0_i32, %c0_i32_0 : i32, i32
  }
  func.func @transform_2(%arg0: i32) -> (i32, i32) {
    %c0_i32 = arith.constant 0 : i32
    %c0_i32_0 = arith.constant 0 : i32
    %c0_i32_1 = arith.constant 0 : i32
    return %c0_i32, %c0_i32_0 : i32, i32
  }
  func.func @transform_3(%arg0: i32) -> (i32, i32) {
    %c0_i32 = arith.constant 0 : i32
    %c0_i32_0 = arith.constant 0 : i32
    %c0_i32_1 = arith.constant 0 : i32
    return %c0_i32, %c0_i32_0 : i32, i32
  }
  func.func @transform_4(%arg0: i32) -> (i32, i32) {
    %c0_i32 = arith.constant 0 : i32
    %c0_i32_0 = arith.constant 0 : i32
    %c0_i32_1 = arith.constant 0 : i32
    return %c0_i32, %c0_i32_0 : i32, i32
  }
  func.func @transform_5(%arg0: i32) -> (i32, i32) {
    %c0_i32 = arith.constant 0 : i32
    %c0_i32_0 = arith.constant 0 : i32
    %c0_i32_1 = arith.constant 0 : i32
    return %c0_i32, %c0_i32_0 : i32, i32
  }
  func.func @transform_6(%arg0: i32) -> (i32, i32) {
    %c0_i32 = arith.constant 0 : i32
    %c0_i32_0 = arith.constant 0 : i32
    %c0_i32_1 = arith.constant 0 : i32
    return %c0_i32, %c0_i32_0 : i32, i32
  }
  func.func @transform_7(%arg0: i32) -> (i32, i32) {
    %c0_i32 = arith.constant 0 : i32
    %c0_i32_0 = arith.constant 0 : i32
    return %arg0, %c0_i32 : i32, i32
  }
  func.func @transform_8(%arg0: i32) -> (i32, i32) {
    %c0_i32 = arith.constant 0 : i32
    %c0_i32_0 = arith.constant 0 : i32
    return %arg0, %c0_i32 : i32, i32
  }
}

module attributes {stable_mosaic.version = 11 : i64} {
  func.func @_head_kernel(%arg0: memref<64x64xbf16, #tpu.memory_space<vmem>>, %arg1: memref<64x32xbf16, #tpu.memory_space<vmem>>, %arg2: memref<1x32xf32, #tpu.memory_space<vmem>>, %arg3: memref<32x128xbf16, #tpu.memory_space<vmem>>, %arg4: memref<1x128xf32, #tpu.memory_space<vmem>>, %arg5: memref<64x128xf32, #tpu.memory_space<vmem>>) attributes {dimension_semantics = [], scalar_prefetch = 0 : i64, scratch_operands = 0 : i64, tpu.core_type = #tpu.core_type<tc>} {
    %c0 = arith.constant 0 : index
    %c0_0 = arith.constant 0 : index
    %0 = vector.load %arg0[%c0, %c0_0] : memref<64x64xbf16, #tpu.memory_space<vmem>>, vector<64x64xbf16>
    %c0_1 = arith.constant 0 : index
    %c0_2 = arith.constant 0 : index
    %1 = vector.load %arg1[%c0_1, %c0_2] : memref<64x32xbf16, #tpu.memory_space<vmem>>, vector<64x32xbf16>
    %cst = arith.constant dense<0.000000e+00> : vector<64x32xf32>
    %2 = tpu.matmul %0, %1, %cst {dimension_numbers = #tpu.dot_dimension_numbers<[1], [0], [0], [1], [0, 0, 1, 1], [], []>} : vector<64x64xbf16>, vector<64x32xbf16>, vector<64x32xf32> -> vector<64x32xf32>
    %c0_3 = arith.constant 0 : index
    %c0_4 = arith.constant 0 : index
    %3 = vector.load %arg2[%c0_3, %c0_4] : memref<1x32xf32, #tpu.memory_space<vmem>>, vector<1x32xf32>
    %4 = vector.broadcast %3 : vector<1x32xf32> to vector<64x32xf32>
    %5 = arith.addf %2, %4 : vector<64x32xf32>
    %cst_5 = arith.constant 0.000000e+00 : f32
    %6 = vector.broadcast %cst_5 : f32 to vector<64x32xf32>
    %7 = arith.maximumf %5, %6 : vector<64x32xf32>
    %8 = arith.truncf %7 : vector<64x32xf32> to vector<64x32xbf16>
    %c0_6 = arith.constant 0 : index
    %c0_7 = arith.constant 0 : index
    %9 = vector.load %arg3[%c0_6, %c0_7] : memref<32x128xbf16, #tpu.memory_space<vmem>>, vector<32x128xbf16>
    %cst_8 = arith.constant dense<0.000000e+00> : vector<64x128xf32>
    %10 = tpu.matmul %8, %9, %cst_8 {dimension_numbers = #tpu.dot_dimension_numbers<[1], [0], [0], [1], [0, 0, 1, 1], [], []>} : vector<64x32xbf16>, vector<32x128xbf16>, vector<64x128xf32> -> vector<64x128xf32>
    %c0_9 = arith.constant 0 : index
    %c0_10 = arith.constant 0 : index
    %11 = vector.load %arg4[%c0_9, %c0_10] : memref<1x128xf32, #tpu.memory_space<vmem>>, vector<1x128xf32>
    %12 = vector.broadcast %11 : vector<1x128xf32> to vector<64x128xf32>
    %13 = arith.addf %10, %12 : vector<64x128xf32>
    %c0_11 = arith.constant 0 : index
    %c0_12 = arith.constant 0 : index
    %14 = vector.load %arg5[%c0_11, %c0_12] : memref<64x128xf32, #tpu.memory_space<vmem>>, vector<64x128xf32>
    tpu.vector_store %arg5[%c0_11, %c0_12], %13 {strides = array<i32>} : memref<64x128xf32, #tpu.memory_space<vmem>>, vector<64x128xf32>,
    return
  }
}

module attributes {stable_mosaic.version = 11 : i64} {
  func.func @_losses_kernel(%arg0: memref<2x4x768xf32, #tpu.memory_space<vmem>>, %arg1: memref<2x4x768xf32, #tpu.memory_space<vmem>>, %arg2: memref<2x1x768xi32, #tpu.memory_space<vmem>>, %arg3: memref<2x2x768xf32, #tpu.memory_space<vmem>>, %arg4: memref<2x4x32xf32, #tpu.memory_space<vmem>>, %arg5: memref<2x4x32xf32, #tpu.memory_space<vmem>>, %arg6: memref<2x1x32xi32, #tpu.memory_space<vmem>>, %arg7: memref<2x5x32xf32, #tpu.memory_space<vmem>>, %arg8: memref<1x128xf32, #tpu.memory_space<vmem>>) attributes {dimension_semantics = [], scalar_prefetch = 0 : i64, scratch_operands = 0 : i64, tpu.core_type = #tpu.core_type<tc>} {
    %cst = arith.constant 0.000000e+00 : f32
    %0 = vector.broadcast %cst : f32 to vector<1x1xf32>
    %c0 = arith.constant 0 : index
    %c0_0 = arith.constant 0 : index
    %c0_1 = arith.constant 0 : index
    %1 = vector.load %arg0[%c0, %c0_0, %c0_1] : memref<2x4x768xf32, #tpu.memory_space<vmem>>, vector<1x4x768xf32>
    %2 = vector.shape_cast %1 : vector<1x4x768xf32> to vector<4x768xf32>
    %c0_2 = arith.constant 0 : index
    %c0_3 = arith.constant 0 : index
    %c0_4 = arith.constant 0 : index
    %3 = vector.load %arg1[%c0_2, %c0_3, %c0_4] : memref<2x4x768xf32, #tpu.memory_space<vmem>>, vector<1x4x768xf32>
    %4 = vector.shape_cast %3 : vector<1x4x768xf32> to vector<4x768xf32>
    %c0_5 = arith.constant 0 : index
    %c0_6 = arith.constant 0 : index
    %c0_7 = arith.constant 0 : index
    %5 = vector.load %arg2[%c0_5, %c0_6, %c0_7] : memref<2x1x768xi32, #tpu.memory_space<vmem>>, vector<1x1x768xi32>
    %6 = vector.shape_cast %5 : vector<1x1x768xi32> to vector<1x768xi32>
    %7 = arith.subf %2, %4 : vector<4x768xf32>
    %8 = math.absf %7 : vector<4x768xf32>
    %cst_8 = arith.constant 1.000000e+00 : f32
    %9 = vector.broadcast %cst_8 : f32 to vector<4x768xf32>
    %10 = arith.cmpf olt, %8, %9 : vector<4x768xf32>
    %cst_9 = arith.constant 5.000000e-01 : f32
    %11 = vector.broadcast %cst_9 : f32 to vector<4x768xf32>
    %12 = arith.mulf %11, %8 : vector<4x768xf32>
    %13 = arith.mulf %12, %8 : vector<4x768xf32>
    %cst_10 = arith.constant 5.000000e-01 : f32
    %14 = vector.broadcast %cst_10 : f32 to vector<4x768xf32>
    %15 = arith.subf %8, %14 : vector<4x768xf32>
    %16 = arith.select %10, %13, %15 : vector<4x768xi1>, vector<4x768xf32>
    %c0_i32 = arith.constant 0 : i32
    %17 = vector.broadcast %c0_i32 : i32 to vector<1x768xi32>
    %18 = arith.cmpi sgt, %6, %17 : vector<1x768xi32>
    %19 = arith.extui %18 : vector<1x768xi1> to vector<1x768xi32>
    %20 = arith.sitofp %19 : vector<1x768xi32> to vector<1x768xf32>
    %21 = vector.broadcast %20 : vector<1x768xf32> to vector<4x768xf32>
    %22 = arith.mulf %16, %21 : vector<4x768xf32>
    %cst_11 = arith.constant dense<0.000000e+00> : vector<4xf32>
    %23 = vector.multi_reduction <add>, %22, %cst_11 [1] : vector<4x768xf32> to vector<4xf32>
    %24 = vector.shape_cast %23 : vector<4xf32> to vector<4x1xf32>
    %cst_12 = arith.constant dense<0.000000e+00> : vector<1xf32>
    %25 = vector.multi_reduction <add>, %24, %cst_12 [0] : vector<4x1xf32> to vector<1xf32>
    %26 = vector.shape_cast %25 : vector<1xf32> to vector<1x1xf32>
    %cst_13 = arith.constant dense<0.000000e+00> : vector<1xf32>
    %27 = vector.multi_reduction <add>, %20, %cst_13 [1] : vector<1x768xf32> to vector<1xf32>
    %28 = vector.shape_cast %27 : vector<1xf32> to vector<1x1xf32>
    %cst_14 = arith.constant 1.000000e+00 : f32
    %29 = vector.broadcast %cst_14 : f32 to vector<1x1xf32>
    %30 = arith.maximumf %28, %29 : vector<1x1xf32>
    %31 = arith.divf %26, %30 : vector<1x1xf32>
    %32 = arith.addf %0, %31 : vector<1x1xf32>
    %c0_15 = arith.constant 0 : index
    %c0_16 = arith.constant 0 : index
    %c0_17 = arith.constant 0 : index
    %33 = vector.load %arg3[%c0_15, %c0_16, %c0_17] : memref<2x2x768xf32, #tpu.memory_space<vmem>>, vector<1x2x768xf32>
    %34 = vector.shape_cast %33 : vector<1x2x768xf32> to vector<2x768xf32>
    %c0_18 = arith.constant 0 : index
    %c0_19 = arith.constant 0 : index
    %c0_20 = arith.constant 0 : index
    %35 = vector.load %arg2[%c0_18, %c0_19, %c0_20] : memref<2x1x768xi32, #tpu.memory_space<vmem>>, vector<1x1x768xi32>
    %36 = vector.shape_cast %35 : vector<1x1x768xi32> to vector<1x768xi32>
    %cst_21 = arith.constant dense<0xFF800000> : vector<768xf32>
    %37 = vector.multi_reduction <maximumf>, %34, %cst_21 [0] : vector<2x768xf32> to vector<768xf32>
    %38 = vector.shape_cast %37 : vector<768xf32> to vector<1x768xf32>
    %39 = vector.broadcast %38 : vector<1x768xf32> to vector<2x768xf32>
    %40 = arith.subf %34, %39 : vector<2x768xf32>
    %41 = math.exp %40 : vector<2x768xf32>
    %cst_22 = arith.constant dense<0.000000e+00> : vector<768xf32>
    %42 = vector.multi_reduction <add>, %41, %cst_22 [0] : vector<2x768xf32> to vector<768xf32>
    %43 = vector.shape_cast %42 : vector<768xf32> to vector<1x768xf32>
    %44 = math.log %43 : vector<1x768xf32>
    %45 = arith.addf %38, %44 : vector<1x768xf32>
    %46 = tpu.iota {dimensions = array<i32: 0>} : vector<2x768xi32>
    %47 = vector.broadcast %36 : vector<1x768xi32> to vector<2x768xi32>
    %48 = arith.cmpi eq, %46, %47 : vector<2x768xi32>
    %cst_23 = arith.constant 0.000000e+00 : f32
    %49 = vector.broadcast %cst_23 : f32 to vector<2x768xf32>
    %50 = arith.select %48, %34, %49 : vector<2x768xi1>, vector<2x768xf32>
    %cst_24 = arith.constant dense<0.000000e+00> : vector<768xf32>
    %51 = vector.multi_reduction <add>, %50, %cst_24 [0] : vector<2x768xf32> to vector<768xf32>
    %52 = vector.shape_cast %51 : vector<768xf32> to vector<1x768xf32>
    %53 = arith.subf %45, %52 : vector<1x768xf32>
    %c-1_i32 = arith.constant -1 : i32
    %54 = vector.broadcast %c-1_i32 : i32 to vector<1x768xi32>
    %55 = arith.cmpi ne, %36, %54 : vector<1x768xi32>
    %56 = arith.extui %55 : vector<1x768xi1> to vector<1x768xi32>
    %57 = arith.sitofp %56 : vector<1x768xi32> to vector<1x768xf32>
    %58 = arith.mulf %53, %57 : vector<1x768xf32>
    %cst_25 = arith.constant dense<0.000000e+00> : vector<1xf32>
    %59 = vector.multi_reduction <add>, %58, %cst_25 [1] : vector<1x768xf32> to vector<1xf32>
    %60 = vector.shape_cast %59 : vector<1xf32> to vector<1x1xf32>
    %cst_26 = arith.constant dense<0.000000e+00> : vector<1xf32>
    %61 = vector.multi_reduction <add>, %57, %cst_26 [1] : vector<1x768xf32> to vector<1xf32>
    %62 = vector.shape_cast %61 : vector<1xf32> to vector<1x1xf32>
    %cst_27 = arith.constant 1.000000e+00 : f32
    %63 = vector.broadcast %cst_27 : f32 to vector<1x1xf32>
    %64 = arith.maximumf %62, %63 : vector<1x1xf32>
    %65 = arith.divf %60, %64 : vector<1x1xf32>
    %66 = arith.addf %0, %65 : vector<1x1xf32>
    %c0_28 = arith.constant 0 : index
    %c0_29 = arith.constant 0 : index
    %c0_30 = arith.constant 0 : index
    %67 = vector.load %arg4[%c0_28, %c0_29, %c0_30] : memref<2x4x32xf32, #tpu.memory_space<vmem>>, vector<1x4x32xf32>
    %68 = vector.shape_cast %67 : vector<1x4x32xf32> to vector<4x32xf32>
    %c0_31 = arith.constant 0 : index
    %c0_32 = arith.constant 0 : index
    %c0_33 = arith.constant 0 : index
    %69 = vector.load %arg5[%c0_31, %c0_32, %c0_33] : memref<2x4x32xf32, #tpu.memory_space<vmem>>, vector<1x4x32xf32>
    %70 = vector.shape_cast %69 : vector<1x4x32xf32> to vector<4x32xf32>
    %c0_34 = arith.constant 0 : index
    %c0_35 = arith.constant 0 : index
    %c0_36 = arith.constant 0 : index
    %71 = vector.load %arg6[%c0_34, %c0_35, %c0_36] : memref<2x1x32xi32, #tpu.memory_space<vmem>>, vector<1x1x32xi32>
    %72 = vector.shape_cast %71 : vector<1x1x32xi32> to vector<1x32xi32>
    %73 = arith.subf %68, %70 : vector<4x32xf32>
    %74 = math.absf %73 : vector<4x32xf32>
    %cst_37 = arith.constant 1.000000e+00 : f32
    %75 = vector.broadcast %cst_37 : f32 to vector<4x32xf32>
    %76 = arith.cmpf olt, %74, %75 : vector<4x32xf32>
    %cst_38 = arith.constant 5.000000e-01 : f32
    %77 = vector.broadcast %cst_38 : f32 to vector<4x32xf32>
    %78 = arith.mulf %77, %74 : vector<4x32xf32>
    %79 = arith.mulf %78, %74 : vector<4x32xf32>
    %cst_39 = arith.constant 5.000000e-01 : f32
    %80 = vector.broadcast %cst_39 : f32 to vector<4x32xf32>
    %81 = arith.subf %74, %80 : vector<4x32xf32>
    %82 = arith.select %76, %79, %81 : vector<4x32xi1>, vector<4x32xf32>
    %c0_i32_40 = arith.constant 0 : i32
    %83 = vector.broadcast %c0_i32_40 : i32 to vector<1x32xi32>
    %84 = arith.cmpi sgt, %72, %83 : vector<1x32xi32>
    %85 = arith.extui %84 : vector<1x32xi1> to vector<1x32xi32>
    %86 = arith.sitofp %85 : vector<1x32xi32> to vector<1x32xf32>
    %87 = vector.broadcast %86 : vector<1x32xf32> to vector<4x32xf32>
    %88 = arith.mulf %82, %87 : vector<4x32xf32>
    %cst_41 = arith.constant dense<0.000000e+00> : vector<4xf32>
    %89 = vector.multi_reduction <add>, %88, %cst_41 [1] : vector<4x32xf32> to vector<4xf32>
    %90 = vector.shape_cast %89 : vector<4xf32> to vector<4x1xf32>
    %cst_42 = arith.constant dense<0.000000e+00> : vector<1xf32>
    %91 = vector.multi_reduction <add>, %90, %cst_42 [0] : vector<4x1xf32> to vector<1xf32>
    %92 = vector.shape_cast %91 : vector<1xf32> to vector<1x1xf32>
    %cst_43 = arith.constant dense<0.000000e+00> : vector<1xf32>
    %93 = vector.multi_reduction <add>, %86, %cst_43 [1] : vector<1x32xf32> to vector<1xf32>
    %94 = vector.shape_cast %93 : vector<1xf32> to vector<1x1xf32>
    %cst_44 = arith.constant 1.000000e+00 : f32
    %95 = vector.broadcast %cst_44 : f32 to vector<1x1xf32>
    %96 = arith.maximumf %94, %95 : vector<1x1xf32>
    %97 = arith.divf %92, %96 : vector<1x1xf32>
    %98 = arith.addf %0, %97 : vector<1x1xf32>
    %c0_45 = arith.constant 0 : index
    %c0_46 = arith.constant 0 : index
    %c0_47 = arith.constant 0 : index
    %99 = vector.load %arg7[%c0_45, %c0_46, %c0_47] : memref<2x5x32xf32, #tpu.memory_space<vmem>>, vector<1x5x32xf32>
    %100 = vector.shape_cast %99 : vector<1x5x32xf32> to vector<5x32xf32>
    %c0_48 = arith.constant 0 : index
    %c0_49 = arith.constant 0 : index
    %c0_50 = arith.constant 0 : index
    %101 = vector.load %arg6[%c0_48, %c0_49, %c0_50] : memref<2x1x32xi32, #tpu.memory_space<vmem>>, vector<1x1x32xi32>
    %102 = vector.shape_cast %101 : vector<1x1x32xi32> to vector<1x32xi32>
    %cst_51 = arith.constant dense<0xFF800000> : vector<32xf32>
    %103 = vector.multi_reduction <maximumf>, %100, %cst_51 [0] : vector<5x32xf32> to vector<32xf32>
    %104 = vector.shape_cast %103 : vector<32xf32> to vector<1x32xf32>
    %105 = vector.broadcast %104 : vector<1x32xf32> to vector<5x32xf32>
    %106 = arith.subf %100, %105 : vector<5x32xf32>
    %107 = math.exp %106 : vector<5x32xf32>
    %cst_52 = arith.constant dense<0.000000e+00> : vector<32xf32>
    %108 = vector.multi_reduction <add>, %107, %cst_52 [0] : vector<5x32xf32> to vector<32xf32>
    %109 = vector.shape_cast %108 : vector<32xf32> to vector<1x32xf32>
    %110 = math.log %109 : vector<1x32xf32>
    %111 = arith.addf %104, %110 : vector<1x32xf32>
    %112 = tpu.iota {dimensions = array<i32: 0>} : vector<5x32xi32>
    %113 = vector.broadcast %102 : vector<1x32xi32> to vector<5x32xi32>
    %114 = arith.cmpi eq, %112, %113 : vector<5x32xi32>
    %cst_53 = arith.constant 0.000000e+00 : f32
    %115 = vector.broadcast %cst_53 : f32 to vector<5x32xf32>
    %116 = arith.select %114, %100, %115 : vector<5x32xi1>, vector<5x32xf32>
    %cst_54 = arith.constant dense<0.000000e+00> : vector<32xf32>
    %117 = vector.multi_reduction <add>, %116, %cst_54 [0] : vector<5x32xf32> to vector<32xf32>
    %118 = vector.shape_cast %117 : vector<32xf32> to vector<1x32xf32>
    %119 = arith.subf %111, %118 : vector<1x32xf32>
    %c-1_i32_55 = arith.constant -1 : i32
    %120 = vector.broadcast %c-1_i32_55 : i32 to vector<1x32xi32>
    %121 = arith.cmpi ne, %102, %120 : vector<1x32xi32>
    %122 = arith.extui %121 : vector<1x32xi1> to vector<1x32xi32>
    %123 = arith.sitofp %122 : vector<1x32xi32> to vector<1x32xf32>
    %124 = arith.mulf %119, %123 : vector<1x32xf32>
    %cst_56 = arith.constant dense<0.000000e+00> : vector<1xf32>
    %125 = vector.multi_reduction <add>, %124, %cst_56 [1] : vector<1x32xf32> to vector<1xf32>
    %126 = vector.shape_cast %125 : vector<1xf32> to vector<1x1xf32>
    %cst_57 = arith.constant dense<0.000000e+00> : vector<1xf32>
    %127 = vector.multi_reduction <add>, %123, %cst_57 [1] : vector<1x32xf32> to vector<1xf32>
    %128 = vector.shape_cast %127 : vector<1xf32> to vector<1x1xf32>
    %cst_58 = arith.constant 1.000000e+00 : f32
    %129 = vector.broadcast %cst_58 : f32 to vector<1x1xf32>
    %130 = arith.maximumf %128, %129 : vector<1x1xf32>
    %131 = arith.divf %126, %130 : vector<1x1xf32>
    %132 = arith.addf %0, %131 : vector<1x1xf32>
    %c1 = arith.constant 1 : index
    %c0_59 = arith.constant 0 : index
    %c0_60 = arith.constant 0 : index
    %133 = vector.load %arg0[%c1, %c0_59, %c0_60] : memref<2x4x768xf32, #tpu.memory_space<vmem>>, vector<1x4x768xf32>
    %134 = vector.shape_cast %133 : vector<1x4x768xf32> to vector<4x768xf32>
    %c1_61 = arith.constant 1 : index
    %c0_62 = arith.constant 0 : index
    %c0_63 = arith.constant 0 : index
    %135 = vector.load %arg1[%c1_61, %c0_62, %c0_63] : memref<2x4x768xf32, #tpu.memory_space<vmem>>, vector<1x4x768xf32>
    %136 = vector.shape_cast %135 : vector<1x4x768xf32> to vector<4x768xf32>
    %c1_64 = arith.constant 1 : index
    %c0_65 = arith.constant 0 : index
    %c0_66 = arith.constant 0 : index
    %137 = vector.load %arg2[%c1_64, %c0_65, %c0_66] : memref<2x1x768xi32, #tpu.memory_space<vmem>>, vector<1x1x768xi32>
    %138 = vector.shape_cast %137 : vector<1x1x768xi32> to vector<1x768xi32>
    %139 = arith.subf %134, %136 : vector<4x768xf32>
    %140 = math.absf %139 : vector<4x768xf32>
    %cst_67 = arith.constant 1.000000e+00 : f32
    %141 = vector.broadcast %cst_67 : f32 to vector<4x768xf32>
    %142 = arith.cmpf olt, %140, %141 : vector<4x768xf32>
    %cst_68 = arith.constant 5.000000e-01 : f32
    %143 = vector.broadcast %cst_68 : f32 to vector<4x768xf32>
    %144 = arith.mulf %143, %140 : vector<4x768xf32>
    %145 = arith.mulf %144, %140 : vector<4x768xf32>
    %cst_69 = arith.constant 5.000000e-01 : f32
    %146 = vector.broadcast %cst_69 : f32 to vector<4x768xf32>
    %147 = arith.subf %140, %146 : vector<4x768xf32>
    %148 = arith.select %142, %145, %147 : vector<4x768xi1>, vector<4x768xf32>
    %c0_i32_70 = arith.constant 0 : i32
    %149 = vector.broadcast %c0_i32_70 : i32 to vector<1x768xi32>
    %150 = arith.cmpi sgt, %138, %149 : vector<1x768xi32>
    %151 = arith.extui %150 : vector<1x768xi1> to vector<1x768xi32>
    %152 = arith.sitofp %151 : vector<1x768xi32> to vector<1x768xf32>
    %153 = vector.broadcast %152 : vector<1x768xf32> to vector<4x768xf32>
    %154 = arith.mulf %148, %153 : vector<4x768xf32>
    %cst_71 = arith.constant dense<0.000000e+00> : vector<4xf32>
    %155 = vector.multi_reduction <add>, %154, %cst_71 [1] : vector<4x768xf32> to vector<4xf32>
    %156 = vector.shape_cast %155 : vector<4xf32> to vector<4x1xf32>
    %cst_72 = arith.constant dense<0.000000e+00> : vector<1xf32>
    %157 = vector.multi_reduction <add>, %156, %cst_72 [0] : vector<4x1xf32> to vector<1xf32>
    %158 = vector.shape_cast %157 : vector<1xf32> to vector<1x1xf32>
    %cst_73 = arith.constant dense<0.000000e+00> : vector<1xf32>
    %159 = vector.multi_reduction <add>, %152, %cst_73 [1] : vector<1x768xf32> to vector<1xf32>
    %160 = vector.shape_cast %159 : vector<1xf32> to vector<1x1xf32>
    %cst_74 = arith.constant 1.000000e+00 : f32
    %161 = vector.broadcast %cst_74 : f32 to vector<1x1xf32>
    %162 = arith.maximumf %160, %161 : vector<1x1xf32>
    %163 = arith.divf %158, %162 : vector<1x1xf32>
    %164 = arith.addf %32, %163 : vector<1x1xf32>
    %c1_75 = arith.constant 1 : index
    %c0_76 = arith.constant 0 : index
    %c0_77 = arith.constant 0 : index
    %165 = vector.load %arg3[%c1_75, %c0_76, %c0_77] : memref<2x2x768xf32, #tpu.memory_space<vmem>>, vector<1x2x768xf32>
    %166 = vector.shape_cast %165 : vector<1x2x768xf32> to vector<2x768xf32>
    %c1_78 = arith.constant 1 : index
    %c0_79 = arith.constant 0 : index
    %c0_80 = arith.constant 0 : index
    %167 = vector.load %arg2[%c1_78, %c0_79, %c0_80] : memref<2x1x768xi32, #tpu.memory_space<vmem>>, vector<1x1x768xi32>
    %168 = vector.shape_cast %167 : vector<1x1x768xi32> to vector<1x768xi32>
    %cst_81 = arith.constant dense<0xFF800000> : vector<768xf32>
    %169 = vector.multi_reduction <maximumf>, %166, %cst_81 [0] : vector<2x768xf32> to vector<768xf32>
    %170 = vector.shape_cast %169 : vector<768xf32> to vector<1x768xf32>
    %171 = vector.broadcast %170 : vector<1x768xf32> to vector<2x768xf32>
    %172 = arith.subf %166, %171 : vector<2x768xf32>
    %173 = math.exp %172 : vector<2x768xf32>
    %cst_82 = arith.constant dense<0.000000e+00> : vector<768xf32>
    %174 = vector.multi_reduction <add>, %173, %cst_82 [0] : vector<2x768xf32> to vector<768xf32>
    %175 = vector.shape_cast %174 : vector<768xf32> to vector<1x768xf32>
    %176 = math.log %175 : vector<1x768xf32>
    %177 = arith.addf %170, %176 : vector<1x768xf32>
    %178 = tpu.iota {dimensions = array<i32: 0>} : vector<2x768xi32>
    %179 = vector.broadcast %168 : vector<1x768xi32> to vector<2x768xi32>
    %180 = arith.cmpi eq, %178, %179 : vector<2x768xi32>
    %cst_83 = arith.constant 0.000000e+00 : f32
    %181 = vector.broadcast %cst_83 : f32 to vector<2x768xf32>
    %182 = arith.select %180, %166, %181 : vector<2x768xi1>, vector<2x768xf32>
    %cst_84 = arith.constant dense<0.000000e+00> : vector<768xf32>
    %183 = vector.multi_reduction <add>, %182, %cst_84 [0] : vector<2x768xf32> to vector<768xf32>
    %184 = vector.shape_cast %183 : vector<768xf32> to vector<1x768xf32>
    %185 = arith.subf %177, %184 : vector<1x768xf32>
    %c-1_i32_85 = arith.constant -1 : i32
    %186 = vector.broadcast %c-1_i32_85 : i32 to vector<1x768xi32>
    %187 = arith.cmpi ne, %168, %186 : vector<1x768xi32>
    %188 = arith.extui %187 : vector<1x768xi1> to vector<1x768xi32>
    %189 = arith.sitofp %188 : vector<1x768xi32> to vector<1x768xf32>
    %190 = arith.mulf %185, %189 : vector<1x768xf32>
    %cst_86 = arith.constant dense<0.000000e+00> : vector<1xf32>
    %191 = vector.multi_reduction <add>, %190, %cst_86 [1] : vector<1x768xf32> to vector<1xf32>
    %192 = vector.shape_cast %191 : vector<1xf32> to vector<1x1xf32>
    %cst_87 = arith.constant dense<0.000000e+00> : vector<1xf32>
    %193 = vector.multi_reduction <add>, %189, %cst_87 [1] : vector<1x768xf32> to vector<1xf32>
    %194 = vector.shape_cast %193 : vector<1xf32> to vector<1x1xf32>
    %cst_88 = arith.constant 1.000000e+00 : f32
    %195 = vector.broadcast %cst_88 : f32 to vector<1x1xf32>
    %196 = arith.maximumf %194, %195 : vector<1x1xf32>
    %197 = arith.divf %192, %196 : vector<1x1xf32>
    %198 = arith.addf %66, %197 : vector<1x1xf32>
    %c1_89 = arith.constant 1 : index
    %c0_90 = arith.constant 0 : index
    %c0_91 = arith.constant 0 : index
    %199 = vector.load %arg4[%c1_89, %c0_90, %c0_91] : memref<2x4x32xf32, #tpu.memory_space<vmem>>, vector<1x4x32xf32>
    %200 = vector.shape_cast %199 : vector<1x4x32xf32> to vector<4x32xf32>
    %c1_92 = arith.constant 1 : index
    %c0_93 = arith.constant 0 : index
    %c0_94 = arith.constant 0 : index
    %201 = vector.load %arg5[%c1_92, %c0_93, %c0_94] : memref<2x4x32xf32, #tpu.memory_space<vmem>>, vector<1x4x32xf32>
    %202 = vector.shape_cast %201 : vector<1x4x32xf32> to vector<4x32xf32>
    %c1_95 = arith.constant 1 : index
    %c0_96 = arith.constant 0 : index
    %c0_97 = arith.constant 0 : index
    %203 = vector.load %arg6[%c1_95, %c0_96, %c0_97] : memref<2x1x32xi32, #tpu.memory_space<vmem>>, vector<1x1x32xi32>
    %204 = vector.shape_cast %203 : vector<1x1x32xi32> to vector<1x32xi32>
    %205 = arith.subf %200, %202 : vector<4x32xf32>
    %206 = math.absf %205 : vector<4x32xf32>
    %cst_98 = arith.constant 1.000000e+00 : f32
    %207 = vector.broadcast %cst_98 : f32 to vector<4x32xf32>
    %208 = arith.cmpf olt, %206, %207 : vector<4x32xf32>
    %cst_99 = arith.constant 5.000000e-01 : f32
    %209 = vector.broadcast %cst_99 : f32 to vector<4x32xf32>
    %210 = arith.mulf %209, %206 : vector<4x32xf32>
    %211 = arith.mulf %210, %206 : vector<4x32xf32>
    %cst_100 = arith.constant 5.000000e-01 : f32
    %212 = vector.broadcast %cst_100 : f32 to vector<4x32xf32>
    %213 = arith.subf %206, %212 : vector<4x32xf32>
    %214 = arith.select %208, %211, %213 : vector<4x32xi1>, vector<4x32xf32>
    %c0_i32_101 = arith.constant 0 : i32
    %215 = vector.broadcast %c0_i32_101 : i32 to vector<1x32xi32>
    %216 = arith.cmpi sgt, %204, %215 : vector<1x32xi32>
    %217 = arith.extui %216 : vector<1x32xi1> to vector<1x32xi32>
    %218 = arith.sitofp %217 : vector<1x32xi32> to vector<1x32xf32>
    %219 = vector.broadcast %218 : vector<1x32xf32> to vector<4x32xf32>
    %220 = arith.mulf %214, %219 : vector<4x32xf32>
    %cst_102 = arith.constant dense<0.000000e+00> : vector<4xf32>
    %221 = vector.multi_reduction <add>, %220, %cst_102 [1] : vector<4x32xf32> to vector<4xf32>
    %222 = vector.shape_cast %221 : vector<4xf32> to vector<4x1xf32>
    %cst_103 = arith.constant dense<0.000000e+00> : vector<1xf32>
    %223 = vector.multi_reduction <add>, %222, %cst_103 [0] : vector<4x1xf32> to vector<1xf32>
    %224 = vector.shape_cast %223 : vector<1xf32> to vector<1x1xf32>
    %cst_104 = arith.constant dense<0.000000e+00> : vector<1xf32>
    %225 = vector.multi_reduction <add>, %218, %cst_104 [1] : vector<1x32xf32> to vector<1xf32>
    %226 = vector.shape_cast %225 : vector<1xf32> to vector<1x1xf32>
    %cst_105 = arith.constant 1.000000e+00 : f32
    %227 = vector.broadcast %cst_105 : f32 to vector<1x1xf32>
    %228 = arith.maximumf %226, %227 : vector<1x1xf32>
    %229 = arith.divf %224, %228 : vector<1x1xf32>
    %230 = arith.addf %98, %229 : vector<1x1xf32>
    %c1_106 = arith.constant 1 : index
    %c0_107 = arith.constant 0 : index
    %c0_108 = arith.constant 0 : index
    %231 = vector.load %arg7[%c1_106, %c0_107, %c0_108] : memref<2x5x32xf32, #tpu.memory_space<vmem>>, vector<1x5x32xf32>
    %232 = vector.shape_cast %231 : vector<1x5x32xf32> to vector<5x32xf32>
    %c1_109 = arith.constant 1 : index
    %c0_110 = arith.constant 0 : index
    %c0_111 = arith.constant 0 : index
    %233 = vector.load %arg6[%c1_109, %c0_110, %c0_111] : memref<2x1x32xi32, #tpu.memory_space<vmem>>, vector<1x1x32xi32>
    %234 = vector.shape_cast %233 : vector<1x1x32xi32> to vector<1x32xi32>
    %cst_112 = arith.constant dense<0xFF800000> : vector<32xf32>
    %235 = vector.multi_reduction <maximumf>, %232, %cst_112 [0] : vector<5x32xf32> to vector<32xf32>
    %236 = vector.shape_cast %235 : vector<32xf32> to vector<1x32xf32>
    %237 = vector.broadcast %236 : vector<1x32xf32> to vector<5x32xf32>
    %238 = arith.subf %232, %237 : vector<5x32xf32>
    %239 = math.exp %238 : vector<5x32xf32>
    %cst_113 = arith.constant dense<0.000000e+00> : vector<32xf32>
    %240 = vector.multi_reduction <add>, %239, %cst_113 [0] : vector<5x32xf32> to vector<32xf32>
    %241 = vector.shape_cast %240 : vector<32xf32> to vector<1x32xf32>
    %242 = math.log %241 : vector<1x32xf32>
    %243 = arith.addf %236, %242 : vector<1x32xf32>
    %244 = tpu.iota {dimensions = array<i32: 0>} : vector<5x32xi32>
    %245 = vector.broadcast %234 : vector<1x32xi32> to vector<5x32xi32>
    %246 = arith.cmpi eq, %244, %245 : vector<5x32xi32>
    %cst_114 = arith.constant 0.000000e+00 : f32
    %247 = vector.broadcast %cst_114 : f32 to vector<5x32xf32>
    %248 = arith.select %246, %232, %247 : vector<5x32xi1>, vector<5x32xf32>
    %cst_115 = arith.constant dense<0.000000e+00> : vector<32xf32>
    %249 = vector.multi_reduction <add>, %248, %cst_115 [0] : vector<5x32xf32> to vector<32xf32>
    %250 = vector.shape_cast %249 : vector<32xf32> to vector<1x32xf32>
    %251 = arith.subf %243, %250 : vector<1x32xf32>
    %c-1_i32_116 = arith.constant -1 : i32
    %252 = vector.broadcast %c-1_i32_116 : i32 to vector<1x32xi32>
    %253 = arith.cmpi ne, %234, %252 : vector<1x32xi32>
    %254 = arith.extui %253 : vector<1x32xi1> to vector<1x32xi32>
    %255 = arith.sitofp %254 : vector<1x32xi32> to vector<1x32xf32>
    %256 = arith.mulf %251, %255 : vector<1x32xf32>
    %cst_117 = arith.constant dense<0.000000e+00> : vector<1xf32>
    %257 = vector.multi_reduction <add>, %256, %cst_117 [1] : vector<1x32xf32> to vector<1xf32>
    %258 = vector.shape_cast %257 : vector<1xf32> to vector<1x1xf32>
    %cst_118 = arith.constant dense<0.000000e+00> : vector<1xf32>
    %259 = vector.multi_reduction <add>, %255, %cst_118 [1] : vector<1x32xf32> to vector<1xf32>
    %260 = vector.shape_cast %259 : vector<1xf32> to vector<1x1xf32>
    %cst_119 = arith.constant 1.000000e+00 : f32
    %261 = vector.broadcast %cst_119 : f32 to vector<1x1xf32>
    %262 = arith.maximumf %260, %261 : vector<1x1xf32>
    %263 = arith.divf %258, %262 : vector<1x1xf32>
    %264 = arith.addf %132, %263 : vector<1x1xf32>
    %cst_120 = arith.constant 5.000000e-01 : f32
    %265 = vector.broadcast %cst_120 : f32 to vector<1x1xf32>
    %266 = arith.mulf %164, %265 : vector<1x1xf32>
    %cst_121 = arith.constant 5.000000e-01 : f32
    %267 = vector.broadcast %cst_121 : f32 to vector<1x1xf32>
    %268 = arith.mulf %198, %267 : vector<1x1xf32>
    %cst_122 = arith.constant 5.000000e-01 : f32
    %269 = vector.broadcast %cst_122 : f32 to vector<1x1xf32>
    %270 = arith.mulf %230, %269 : vector<1x1xf32>
    %cst_123 = arith.constant 5.000000e-01 : f32
    %271 = vector.broadcast %cst_123 : f32 to vector<1x1xf32>
    %272 = arith.mulf %264, %271 : vector<1x1xf32>
    %273 = arith.addf %266, %268 : vector<1x1xf32>
    %274 = arith.addf %273, %270 : vector<1x1xf32>
    %275 = arith.addf %274, %272 : vector<1x1xf32>
    %276 = tpu.iota {dimensions = array<i32: 1>} : vector<1x128xi32>
    %c0_i32_124 = arith.constant 0 : i32
    %277 = vector.broadcast %c0_i32_124 : i32 to vector<1x128xi32>
    %278 = arith.cmpi eq, %276, %277 : vector<1x128xi32>
    %cst_125 = arith.constant 0.000000e+00 : f32
    %279 = vector.shape_cast %266 : vector<1x1xf32> to vector<1x1xf32>
    %280 = vector.broadcast %279 : vector<1x1xf32> to vector<1x128xf32>
    %281 = vector.broadcast %cst_125 : f32 to vector<1x128xf32>
    %282 = arith.select %278, %280, %281 : vector<1x128xi1>, vector<1x128xf32>
    %c1_i32 = arith.constant 1 : i32
    %283 = vector.broadcast %c1_i32 : i32 to vector<1x128xi32>
    %284 = arith.cmpi eq, %276, %283 : vector<1x128xi32>
    %cst_126 = arith.constant 0.000000e+00 : f32
    %285 = vector.shape_cast %268 : vector<1x1xf32> to vector<1x1xf32>
    %286 = vector.broadcast %285 : vector<1x1xf32> to vector<1x128xf32>
    %287 = vector.broadcast %cst_126 : f32 to vector<1x128xf32>
    %288 = arith.select %284, %286, %287 : vector<1x128xi1>, vector<1x128xf32>
    %289 = arith.addf %282, %288 : vector<1x128xf32>
    %c2_i32 = arith.constant 2 : i32
    %290 = vector.broadcast %c2_i32 : i32 to vector<1x128xi32>
    %291 = arith.cmpi eq, %276, %290 : vector<1x128xi32>
    %cst_127 = arith.constant 0.000000e+00 : f32
    %292 = vector.shape_cast %270 : vector<1x1xf32> to vector<1x1xf32>
    %293 = vector.broadcast %292 : vector<1x1xf32> to vector<1x128xf32>
    %294 = vector.broadcast %cst_127 : f32 to vector<1x128xf32>
    %295 = arith.select %291, %293, %294 : vector<1x128xi1>, vector<1x128xf32>
    %296 = arith.addf %289, %295 : vector<1x128xf32>
    %c3_i32 = arith.constant 3 : i32
    %297 = vector.broadcast %c3_i32 : i32 to vector<1x128xi32>
    %298 = arith.cmpi eq, %276, %297 : vector<1x128xi32>
    %cst_128 = arith.constant 0.000000e+00 : f32
    %299 = vector.shape_cast %272 : vector<1x1xf32> to vector<1x1xf32>
    %300 = vector.broadcast %299 : vector<1x1xf32> to vector<1x128xf32>
    %301 = vector.broadcast %cst_128 : f32 to vector<1x128xf32>
    %302 = arith.select %298, %300, %301 : vector<1x128xi1>, vector<1x128xf32>
    %303 = arith.addf %296, %302 : vector<1x128xf32>
    %c4_i32 = arith.constant 4 : i32
    %304 = vector.broadcast %c4_i32 : i32 to vector<1x128xi32>
    %305 = arith.cmpi eq, %276, %304 : vector<1x128xi32>
    %cst_129 = arith.constant 0.000000e+00 : f32
    %306 = vector.shape_cast %275 : vector<1x1xf32> to vector<1x1xf32>
    %307 = vector.broadcast %306 : vector<1x1xf32> to vector<1x128xf32>
    %308 = vector.broadcast %cst_129 : f32 to vector<1x128xf32>
    %309 = arith.select %305, %307, %308 : vector<1x128xi1>, vector<1x128xf32>
    %310 = arith.addf %303, %309 : vector<1x128xf32>
    %c0_130 = arith.constant 0 : index
    %c0_131 = arith.constant 0 : index
    %311 = vector.load %arg8[%c0_130, %c0_131] : memref<1x128xf32, #tpu.memory_space<vmem>>, vector<1x128xf32>
    tpu.vector_store %arg8[%c0_130, %c0_131], %310 {strides = array<i32>} : memref<1x128xf32, #tpu.memory_space<vmem>>, vector<1x128xf32>,
    return
  }
}

</mosaic_0001>

<bundles_post_ra>
// kernel: _forward_impl.3
= control target key start
LH: loop header
LB: loop body
LE: loop exit
PB: predicated region body
PF: predicated region fallthrough
CT: control target
= control target key end

     0   :  { %s1960_s27 = smov 0   ;;  %s2564_s0 = inlined_call_operand.vmem [shape: f32[512,3], index: 0, kind: input, shape index: {}]   ;;  %s2565_s1 = inlined_call_operand.vmem [shape: f32[3,128], index: 1, kind: input, shape index: {}]   ;;  %s2566_s2 = inlined_call_operand.vmem [shape: f32[1,128], index: 2, kind: input, shape index: {}, may-alias: {2,6}]   ;;  %s2567_s3 = inlined_call_operand.vmem [shape: bf16[128,16], index: 3, kind: input, shape index: {}]   ;;  %s2568_s4 = inlined_call_operand.vmem [shape: f32[1,16], index: 4, kind: input, shape index: {}]   ;;  %s2569_s5 = inlined_call_operand.vmem [shape: bf16[16,128], index: 5, kind: input, shape index: {}]   ;;  %s2570_s6 = inlined_call_operand.vmem [shape: f32[1,128], index: 6, kind: input, shape index: {}, may-alias: {2,6}]   ;;  %s2571_s7 = inlined_call_operand.vmem [shape: f32[512,128], index: 7, kind: output, shape index: {0}]   ;;  %s2572_s8 = inlined_call_operand.vmem [shape: f32[512,128], index: 8, kind: output, shape index: {1}]  }
   0x1 LB: > { %s1691_s28 = sadd.s32 4294967295, %s1910_s27   ;;  %p1695_p0 = scmp.ge.s32.totalorder %s1910_s27, 1  ;;  %s1910_s27 = sphi %s1960_s27, %s19_s27  }
   0x2   : > { %p266_p1 = scmp.lt.s32.totalorder %s1910_s27, 3 }
   0x4   : > { %p267_p2 = pnand %p1695_p0, %p266_p1 }
   0x5   : > { %s1696_s29 = sshll.u32 (!%p267_p2), %s1691_s28, 5 }
   0x6   : > { %270 = sbr.rel (%p267_p2) target bundleno = 810 (0x32a), region = 48  ;;  %p306_p3 = scmp.lt.s32.totalorder (!%p267_p2), %s1696_s29, 63 }
   0xb   : > { %v1912_v0 = vmov 1   ;;  %v1913_v1 = vmov 0   ;;  %s2574_s29 = smov (!%p306_p3, %s1696_s29), 63  ;;  %v1914_v9 = vmov 2   ;;  %v1895_v16 = vld [vmem:[%s2567_s3 + $0x38] sm:$0xff]   ;;  %v1896_v18 = vld [vmem:[%s2567_s3 + $0x30] sm:$0xff]   ;;  %v524_v37 = vlaneseq }
   0xc   : > { %1867 = vset.pattern.permute.xlu0 %v1912_v0  ;;  %1866 = vset.pattern.permute.xlu1 %v1913_v1  ;;  %s1970_s30 = sshll.u32 %s2574_s29, 3  ;;  %v1897_v20 = vld [vmem:[%s2567_s3 + $0x28] sm:$0xff]   ;;  %v1898_v22 = vld [vmem:[%s2567_s3 + $0x20] sm:$0xff]   ;;  %v1899_v24 = vld [vmem:[%s2567_s3 + $0x18] sm:$0xff]   ;;  %vm1359_vm0 = vcmask 130048  }
   0xd   : > { %s1976_s11 = scalar_lea.vmem %s2564_s0, %s1970_s30  ;;  %1773 = vmatprep.subr.bf16.mxu0 %v1895_v16  ;;  %v1900_v25 = vld [vmem:[%s2567_s3 + $0x10] sm:$0xff]   ;;  %v1901_v27 = vld [vmem:[%s2567_s3 + $0x8] sm:$0xff]   ;;  %v1902_v28 = vld [vmem:[%s2567_s3] sm:$0xff]   ;;  %v525_v41 = vshrl.u32 %v524_v37, 7  ;;  %s2166_s15 = scalar_lea.vmem %s2571_s7, %s1970_s30 }
   0xe   : > { %v326_v2 = vld [vmem:[%s1976_s11 + $0x10] sm:$0xff]  ;;  %v1980_v3 = vld [vmem:[%s1976_s11] sm:$0xff]  ;;  %v327_v4 = vld [vmem:[%s1976_s11 + $0x18] sm:$0xff]  ;;  %1774 = vmatpush3.bf16.msra.mxu0 %v1895_v16  ;;  %s2495_s23 = scalar_lea.vmem %s2572_s8, %s1970_s30 }
   0xf   : > { %376 = vperm.xlu1 %1866, %v326_v2   ;;  %593 = vperm.xlu0 %1867, %v1980_v3   ;;  %v329_v5 = vld [vmem:[%s1976_s11 + $0x28] sm:$0xff]  ;;  %v1991_v7 = vld [vmem:[%s1976_s11 + $0x40] sm:$0xff]  ;;  %v1995_v8 = vld [vmem:[%s1976_s11 + $0x58] sm:$0xff]  ;;  %v526_v45 = vsub.s32 0, %v525_v41  ;;  %v722_v51 = vsub.s32 1, %v525_v41  ;;  %v918_v57 = vsub.s32 2, %v525_v41 }
  0x10   : > { %v1986_v6 = vld [vmem:[%s1976_s11 + $0x8] sm:$0xff]  ;;  %v328_v10 = vld [vmem:[%s1976_s11 + $0x20] sm:$0xff]  ;;  %v331_v11 = vld [vmem:[%s1976_s11 + $0x38] sm:$0xff]  ;;  %1775 = vmatprep.subr.bf16.mxu0 %v1896_v18 }
  0x11   : > { %v333_v12 = vld [vmem:[%s1976_s11 + $0x48] sm:$0xff]  ;;  %v330_v13 = vld [vmem:[%s1976_s11 + $0x30] sm:$0xff]  ;;  %v2008_v14 = vld [vmem:[%s1976_s11 + $0x60] sm:$0xff] }
  0x12   : > { %v2012_v15 = vld [vmem:[%s1976_s11 + $0x78] sm:$0xff]  ;;  %v2020_v17 = vld [vmem:[%s1976_s11 + $0x88] sm:$0xff]  ;;  %v2027_v19 = vld [vmem:[%s1976_s11 + $0xa0] sm:$0xff]  ;;  %1776 = vmatpush3.bf16.msra.mxu0 %v1896_v18 }
  0x13   : > { %381 = vperm.xlu1 %1866, %v327_v4   ;;  %605 = vperm.xlu0 %1867, %v327_v4   ;;  %v2034_v21 = vld [vmem:[%s1976_s11 + $0xb8] sm:$0xff]  ;;  %v2042_v23 = vld [vmem:[%s1976_s11 + $0xc8] sm:$0xff]  ;;  %v334_v26 = vld [vmem:[%s1976_s11 + $0x50] sm:$0xff] }
  0x14   : > { %1777 = vmatprep.subr.bf16.mxu0 %v1897_v20  ;;  %v337_v29 = vld [vmem:[%s1976_s11 + $0x68] sm:$0xff]  ;;  %v338_v30 = vld [vmem:[%s1976_s11 + $0x70] sm:$0xff]  ;;  %v2078_v31 = vld [vmem:[%s1976_s11 + $0xe0] sm:$0xff] }
  0x15   : > { %v2084_v32 = vld [vmem:[%s1976_s11 + $0xf8] sm:$0xff]  ;;  %v2091_v33 = vld [vmem:[%s1976_s11 + $0x80] sm:$0xff]  ;;  %v2101_v38 = vld [vmem:[%s1976_s11 + $0xa8] sm:$0xff] }
  0x16   : > { %1778 = vmatpush3.bf16.msra.mxu0 %v1897_v20  ;;  %v2095_v34 = vld [vmem:[%s1976_s11 + $0x98] sm:$0xff]  ;;  %v342_v42 = vld [vmem:[%s1976_s11 + $0x90] sm:$0xff]  ;;  %v2108_v43 = vld [vmem:[%s1976_s11 + $0xc0] sm:$0xff] }
  0x17   : > { %1868 = vset.pattern.permute.xlu1 %v1912_v0  ;;  %613 = vperm.xlu0 %1867, %v329_v5   ;;  %v356_v47 = vld [vmem:[%s2565_s1] sm:$0x7]  ;;  %v2119_v48 = vld [vmem:[%s1976_s11 + $0xd8] sm:$0xff]  ;;  %v2128_v53 = vld [vmem:[%s1976_s11 + $0xe8] sm:$0xff] }
  0x18   : > { %597 = vperm.xlu1 %1868, %v1986_v6   ;;  %1779 = vmatprep.subr.bf16.mxu0 %v1898_v22  ;;  %v2124_v50 = vrot.slane %v356_v47, %v526_v45  ;;  %v2134_v56 = vrot.slane %v356_v47, %v722_v51  ;;  %v2140_v58 = vld [vmem:[%s2566_s2] ss:$0 sm:$0xff]  ;;  %v2149_v63 = vrot.slane %v356_v47, %v918_v57 }
  0x1a   : > { %1780 = vmatpush3.bf16.msra.mxu0 %v1898_v22 }
  0x1b   : > { %625 = vperm.xlu0 %1867, %v1991_v7   ;;  %1781 = vmatprep.subr.bf16.mxu0 %v1899_v24 }
  0x1c   : > { %601 = vperm.xlu1 %1868, %v326_v2  }
  0x1e   : > { %1782 = vmatpush3.bf16.msra.mxu0 %v1899_v24 }
  0x1f   : > { %637 = vperm.xlu0 %1867, %v1995_v8   ;;  %1783 = vmatprep.subr.bf16.mxu0 %v1900_v25 }
  0x20   : > { %1869 = vset.pattern.permute.xlu1 %v1914_v9 }
  0x21   : > { %789 = vperm.xlu1 %1869, %v1980_v3  }
  0x22   : > { %1784 = vmatpush3.bf16.msra.mxu0 %v1900_v25 }
  0x23   : > { %1875 = vset.pattern.permute.xlu0 %v1914_v9  ;;  %1785 = vmatprep.subr.bf16.mxu0 %v1901_v27 }
  0x24   : > { %793 = vperm.xlu0 %1875, %v1986_v6  }
  0x25   : > { %797 = vperm.xlu1 %1869, %v326_v2  }
  0x26   : > { %1786 = vmatpush3.bf16.msra.mxu0 %v1901_v27  ;;  %v346_v27 = vld [vmem:[%s1976_s11 + $0xb0] sm:$0xff] }
  0x27   : > { %1787 = vmatprep.subr.bf16.mxu0 %v1902_v28 }
  0x28   : > { %805 = vperm.xlu0 %1875, %v328_v10  }
  0x29   : > { %801 = vperm.xlu1 %1869, %v327_v4  }
  0x2a   : > { %1788 = vmatpush3.bf16.msra.mxu0 %v1902_v28 }
  0x2c   : > { %817 = vperm.xlu0 %1875, %v331_v11  }
  0x2d   : > { %1870 = vset.pattern.permute.xlu1 %v1913_v1 }
  0x2e   : > { %391 = vperm.xlu1 %1870, %v329_v5  }
  0x30   : > { %825 = vperm.xlu0 %1875, %v333_v12  }
  0x32   : > { %396 = vperm.xlu1 %1870, %v330_v13  }
  0x34   : > { %837 = vperm.xlu0 %1875, %v2008_v14  }
  0x36   : > { %1871 = vset.pattern.permute.xlu1 %v1912_v0 }
  0x37   : > { %609 = vperm.xlu1 %1871, %v328_v10  }
  0x38   : > { %849 = vperm.xlu0 %1875, %v2012_v15  }
  0x3b   : > { %617 = vperm.xlu1 %1871, %v330_v13  }
  0x3c   : > { %857 = vperm.xlu0 %1875, %v2020_v17  }
  0x3f   : > { %621 = vperm.xlu1 %1871, %v331_v11  }
  0x40   : > { %869 = vperm.xlu0 %1875, %v2027_v19  }
  0x43   : > { %1872 = vset.pattern.permute.xlu1 %v1914_v9 }
  0x44   : > { %809 = vperm.xlu1 %1872, %v329_v5   ;;  %881 = vperm.xlu0 %1875, %v2034_v21  }
  0x48   : > { %813 = vperm.xlu1 %1872, %v330_v13   ;;  %889 = vperm.xlu0 %1875, %v2042_v23  }
  0x4c   : > { %1873 = vset.pattern.permute.xlu1 %v1913_v1  ;;  %1889 = vset.pattern.permute.xlu0 %v1913_v1 }
  0x4d   : > { %406 = vperm.xlu1 %1873, %v1991_v7   ;;  %366 = vperm.xlu0 %1889, %v1980_v3  }
  0x51   : > { %416 = vperm.xlu1 %1873, %v334_v26   ;;  %371 = vperm.xlu0 %1889, %v1986_v6  }
  0x55   : > { %421 = vperm.xlu1 %1873, %v1995_v8   ;;  %386 = vperm.xlu0 %1889, %v328_v10  }
  0x59   : > { %1874 = vset.pattern.permute.xlu1 %v1912_v0  ;;  %401 = vperm.xlu0 %1889, %v331_v11  }
  0x5a   : > { %629 = vperm.xlu1 %1874, %v333_v12  }
  0x5d   : > { %411 = vperm.xlu0 %1889, %v333_v12  }
  0x5e   : > { %633 = vperm.xlu1 %1874, %v334_v26  }
  0x61   : > { %426 = vperm.xlu0 %1889, %v2008_v14  }
  0x62   : > { %1876 = vset.pattern.permute.xlu1 %v1914_v9 }
  0x63   : > { %821 = vperm.xlu1 %1876, %v1991_v7  }
  0x65   : > { %441 = vperm.xlu0 %1889, %v2012_v15  }
  0x67   : > { %829 = vperm.xlu1 %1876, %v334_v26  }
  0x69   : > { %451 = vperm.xlu0 %1889, %v2020_v17  }
  0x6b   : > { %833 = vperm.xlu1 %1876, %v1995_v8  }
  0x6d   : > { %466 = vperm.xlu0 %1889, %v2027_v19  }
  0x6f   : > { %1877 = vset.pattern.permute.xlu1 %v1913_v1 }
  0x70   : > { %431 = vperm.xlu1 %1877, %v337_v29  }
  0x71   : > { %481 = vperm.xlu0 %1889, %v2034_v21  }
  0x74   : > { %436 = vperm.xlu1 %1877, %v338_v30  }
  0x75   : > { %491 = vperm.xlu0 %1889, %v2042_v23  }
  0x78   : > { %1878 = vset.pattern.permute.xlu1 %v1912_v0 }
  0x79   : > { %641 = vperm.xlu1 %1878, %v2008_v14   ;;  %506 = vperm.xlu0 %1889, %v2078_v31  }
  0x7d   : > { %649 = vperm.xlu1 %1878, %v338_v30   ;;  %521 = vperm.xlu0 %1889, %v2084_v32  }
  0x81   : > { %653 = vperm.xlu1 %1878, %v2012_v15   ;;  %1891 = vset.pattern.permute.xlu0 %v1912_v0 }
  0x82   : > { %645 = vperm.xlu0 %1891, %v337_v29  }
  0x85   : > { %1879 = vset.pattern.permute.xlu1 %v1914_v9 }
  0x86   : > { %841 = vperm.xlu1 %1879, %v337_v29   ;;  %657 = vperm.xlu0 %1891, %v2091_v33  }
  0x8a   : > { %v377_v35 = vpop.permute.xlu1 %376  ;;  %845 = vperm.xlu1 %1879, %v338_v30   ;;  %v2097_v36 = vpop.permute.xlu0 %593  ;;  %669 = vperm.xlu0 %1891, %v2095_v34  }
  0x8b   : > { %v530_v55 = vmul.f32 %v2124_v50, %v377_v35 }
  0x8d   : > { %v562_v62 = vadd.f32 %v2140_v58, %v530_v55 }
  0x8e   : > { %v382_v39 = vpop.permute.xlu1 %381  ;;  %1880 = vset.pattern.permute.xlu1 %v1913_v1  ;;  %v606_v40 = vpop.permute.xlu0 %605  ;;  %677 = vperm.xlu0 %1891, %v2101_v38  }
  0x8f   : > { %446 = vperm.xlu1 %1880, %v2091_v33   ;;  %v531_v60 = vmul.f32 %v2124_v50, %v382_v39  ;;  %v727_v5 = vmul.f32 %v2134_v56, %v606_v40 }
  0x91   : > { %v563_v4 = vadd.f32 %v2140_v58, %v531_v60 }
  0x92   : > { %v2110_v44 = vpop.permute.xlu0 %613  ;;  %689 = vperm.xlu0 %1891, %v2108_v43  }
  0x93   : > { %v2113_v46 = vpop.permute.xlu1 %597  ;;  %456 = vperm.xlu1 %1880, %v342_v42   ;;  %v759_v12 = vadd.f32 %v727_v5, %v563_v4  ;;  %v729_v35 = vmul.f32 %v2134_v56, %v2110_v44  ;;  %v724_v4 = vmul.f32 %v2134_v56, %v2097_v36 }
  0x94   : > { %v725_v36 = vmul.f32 %v2134_v56, %v2113_v46 }
  0x96   : > { %v2121_v49 = vpop.permute.xlu0 %625  ;;  %701 = vperm.xlu0 %1891, %v2119_v48  }
  0x97   : > { %v602_v52 = vpop.permute.xlu1 %601  ;;  %461 = vperm.xlu1 %1880, %v2095_v34  }
  0x98   : > { %v726_v61 = vmul.f32 %v2134_v56, %v602_v52 }
  0x9a   : > { %v2130_v54 = vpop.permute.xlu0 %637  ;;  %709 = vperm.xlu0 %1891, %v2128_v53   ;;  %v758_v6 = vadd.f32 %v726_v61, %v562_v62 }
  0x9b   : > { %1881 = vset.pattern.permute.xlu1 %v1912_v0 }
  0x9c   : > { %661 = vperm.xlu1 %1881, %v2020_v17   ;;  %v2143_v59 = vpop.permute.xlu1 %789 }
  0x9e   : > { %1893 = vset.pattern.permute.xlu0 %v1914_v9 }
  0x9f   : > { %v2151_v2 = vpop.permute.xlu0 %793  ;;  %901 = vperm.xlu0 %1893, %v2078_v31  }
  0xa0   : > { %665 = vperm.xlu1 %1881, %v342_v42   ;;  %v798_v3 = vpop.permute.xlu1 %797 }
  0xa1   : > { %v922_v7 = vmul.f32 %v2149_v63, %v798_v3 }
  0xa3   : > { %v2157_v8 = vadd.f32 %v922_v7, %v758_v6  ;;  %v2159_v10 = vpop.permute.xlu0 %805  ;;  %913 = vperm.xlu0 %1893, %v2084_v32  }
  0xa4   : > { %1882 = vset.pattern.permute.xlu1 %v1914_v9  ;;  %v802_v11 = vpop.permute.xlu1 %801  ;;  %v924_v46 = vmul.f32 %v2149_v63, %v2159_v10 }
  0xa5   : > { %v986_v13 = vmax.f32 %v2157_v8, 0.0  ;;  %v923_v14 = vmul.f32 %v2149_v63, %v802_v11  ;;  %853 = vperm.xlu1 %1882, %v2091_v33  }
  0xa7   : > { %1018 = vst [vmem:[%s2166_s15 + $0x10] sm:$0xff] %v986_v13  ;;  %v2175_v15 = vadd.f32 %v923_v14, %v759_v12  ;;  %v2177_v16 = vpop.permute.xlu0 %817  ;;  %v920_v12 = vmul.f32 %v2149_v63, %v2143_v59 }
  0xa9   : > { %v987_v17 = vmax.f32 %v2175_v15, 0.0  ;;  %861 = vperm.xlu1 %1882, %v342_v42   ;;  %v392_v18 = vpop.permute.xlu1 %391 }
  0xaa   : > { %v533_v30 = vmul.f32 %v2124_v50, %v392_v18  ;;  %v921_v18 = vmul.f32 %v2149_v63, %v2151_v2 }
  0xab   : > { %1019 = vst [vmem:[%s2166_s15 + $0x18] sm:$0xff] %v987_v17  ;;  %v2183_v20 = vpop.permute.xlu0 %825 }
  0xac   : > { %v565_v37 = vadd.f32 %v2140_v58, %v533_v30 }
  0xad   : > { %865 = vperm.xlu1 %1882, %v2095_v34   ;;  %v397_v22 = vpop.permute.xlu1 %396 }
  0xae   : > { %v534_v39 = vmul.f32 %v2124_v50, %v397_v22  ;;  %v761_v45 = vadd.f32 %v729_v35, %v565_v37 }
  0xaf   : > { %v2186_v24 = vpop.permute.xlu0 %837 }
  0xb1   : > { %1883 = vset.pattern.permute.xlu1 %v1913_v1 }
  0xb2   : > { %471 = vperm.xlu1 %1883, %v2101_v38   ;;  %v610_v25 = vpop.permute.xlu1 %609 }
  0xb3   : > { %v2190_v26 = vpop.permute.xlu0 %849  ;;  %v728_v2 = vmul.f32 %v2134_v56, %v610_v25 }
  0xb6   : > { %476 = vperm.xlu1 %1883, %v346_v27   ;;  %v618_v28 = vpop.permute.xlu1 %617 }
  0xb7   : > { %v2193_v29 = vpop.permute.xlu0 %857  ;;  %v730_v42 = vmul.f32 %v2134_v56, %v618_v28 }
  0xba   : > { %1884 = vset.pattern.permute.xlu1 %v1912_v0  ;;  %v622_v33 = vpop.permute.xlu1 %621 }
  0xbb   : > { %673 = vperm.xlu1 %1884, %v2027_v19   ;;  %v2198_v34 = vpop.permute.xlu0 %869  ;;  %v566_v19 = vadd.f32 %v2140_v58, %v534_v39  ;;  %v2243_v39 = vld [vmem:[%s1976_s11 + $0xd0] sm:$0xff]  ;;  %v731_v10 = vmul.f32 %v2134_v56, %v622_v33 }
  0xbd   : > { %v762_v55 = vadd.f32 %v730_v42, %v566_v19 }
  0xbf   : > { %681 = vperm.xlu1 %1884, %v346_v27   ;;  %v810_v40 = vpop.permute.xlu1 %809  ;;  %v2204_v41 = vpop.permute.xlu0 %881 }
  0xc0   : > { %v925_v47 = vmul.f32 %v2149_v63, %v810_v40 }
  0xc2   : > { %v2209_v51 = vadd.f32 %v925_v47, %v761_v45 }
  0xc3   : > { %685 = vperm.xlu1 %1884, %v2034_v21   ;;  %v814_v44 = vpop.permute.xlu1 %813  ;;  %v2212_v52 = vpop.permute.xlu0 %889 }
  0xc4   : > { %v989_v57 = vmax.f32 %v2209_v51, 0.0  ;;  %v926_v60 = vmul.f32 %v2149_v63, %v814_v44 }
  0xc6   : > { %1021 = vst [vmem:[%s2166_s15 + $0x28] sm:$0xff] %v989_v57  ;;  %v2219_v61 = vadd.f32 %v926_v60, %v762_v55  ;;  %v927_v60 = vmul.f32 %v2149_v63, %v2177_v16 }
  0xc7   : > { %1885 = vset.pattern.permute.xlu1 %v1914_v9 }
  0xc8   : > { %v990_v62 = vmax.f32 %v2219_v61, 0.0  ;;  %873 = vperm.xlu1 %1885, %v2101_v38   ;;  %v407_v21 = vpop.permute.xlu1 %406  ;;  %v367_v3 = vpop.permute.xlu0 %366 }
  0xc9   : > { %v528_v5 = vmul.f32 %v2124_v50, %v367_v3  ;;  %v536_v3 = vmul.f32 %v2124_v50, %v407_v21  ;;  %v732_v21 = vmul.f32 %v2134_v56, %v2121_v49 }
  0xca   : > { %1022 = vst [vmem:[%s2166_s15 + $0x30] sm:$0xff] %v990_v62 }
  0xcb   : > { %v560_v6 = vadd.f32 %v2140_v58, %v528_v5 }
  0xcc   : > { %877 = vperm.xlu1 %1885, %v346_v27   ;;  %v417_v7 = vpop.permute.xlu1 %416  ;;  %v372_v11 = vpop.permute.xlu0 %371 }
  0xcd   : > { %v529_v38 = vmul.f32 %v2124_v50, %v372_v11  ;;  %v756_v14 = vadd.f32 %v724_v4, %v560_v6  ;;  %v1049_v11 = vpack.c.bf16 %v987_v17, %v986_v13 }
  0xcf   : > { %v561_v22 = vadd.f32 %v2140_v58, %v529_v38  ;;  %v952_v28 = vadd.f32 %v920_v12, %v756_v14  ;;  %v929_v14 = vmul.f32 %v2149_v63, %v2183_v20 }
  0xd0   : > { %1886 = vset.pattern.permute.xlu1 %v1913_v1  ;;  %v422_v27 = vpop.permute.xlu1 %421  ;;  %v387_v30 = vpop.permute.xlu0 %386 }
  0xd1   : > { %v532_v35 = vmul.f32 %v2124_v50, %v387_v30  ;;  %486 = vperm.xlu1 %1886, %v2108_v43   ;;  %v757_v59 = vadd.f32 %v725_v36, %v561_v22  ;;  %v984_v37 = vmax.f32 %v952_v28, 0.0  ;;  %v568_v36 = vadd.f32 %v2140_v58, %v536_v3 }
  0xd2   : > { %v538_v22 = vmul.f32 %v2124_v50, %v417_v7  ;;  %v539_v28 = vmul.f32 %v2124_v50, %v422_v27 }
  0xd3   : > { %v564_v40 = vadd.f32 %v2140_v58, %v532_v35  ;;  %v953_v42 = vadd.f32 %v921_v18, %v757_v59  ;;  %1016 = vst [vmem:[%s2166_s15] sm:$0xff] %v984_v37  ;;  %v764_v35 = vadd.f32 %v732_v21, %v568_v36  ;;  %v932_v21 = vmul.f32 %v2149_v63, %v2186_v24 }
  0xd4   : > { %v402_v45 = vpop.permute.xlu0 %401  ;;  %v935_v24 = vmul.f32 %v2149_v63, %v2190_v26 }
  0xd5   : > { %v760_v47 = vadd.f32 %v728_v2, %v564_v40  ;;  %v535_v19 = vmul.f32 %v2124_v50, %v402_v45  ;;  %496 = vperm.xlu1 %1886, %v2243_v39   ;;  %v630_v44 = vpop.permute.xlu1 %629  ;;  %v985_v55 = vmax.f32 %v953_v42, 0.0  ;;  %v571_v42 = vadd.f32 %v2140_v58, %v539_v28 }
  0xd6   : > { %v733_v8 = vmul.f32 %v2134_v56, %v630_v44 }
  0xd7   : > { %v567_v25 = vadd.f32 %v2140_v58, %v535_v19  ;;  %1017 = vst [vmem:[%s2166_s15 + $0x8] sm:$0xff] %v985_v55  ;;  %v1048_v4 = vpack.c.bf16 %v985_v55, %v984_v37  ;;  %v956_v5 = vadd.f32 %v924_v46, %v760_v47  ;;  %v570_v46 = vadd.f32 %v2140_v58, %v538_v22 }
  0xd8   : > { %v412_v6 = vpop.permute.xlu0 %411 }
  0xd9   : > { %v763_v12 = vadd.f32 %v731_v10, %v567_v25  ;;  %v537_v38 = vmul.f32 %v2124_v50, %v412_v6  ;;  %501 = vperm.xlu1 %1886, %v2119_v48   ;;  %v634_v16 = vpop.permute.xlu1 %633  ;;  %1789 = vmatprep.mubr.bf16.mxu0 %v1048_v4  ;;  %v988_v33 = vmax.f32 %v956_v5, 0.0 }
  0xda   : > { %1790 = vmatmul.mubr.bf16.vlgmr.msra.gmra.mxu0 %v1049_v11  ;;  %v734_v59 = vmul.f32 %v2134_v56, %v634_v16 }
  0xdb   : > { %v569_v13 = vadd.f32 %v2140_v58, %v537_v38  ;;  %1020 = vst [vmem:[%s2166_s15 + $0x20] sm:$0xff] %v988_v33  ;;  %v1050_v15 = vpack.c.bf16 %v989_v57, %v988_v33  ;;  %v959_v17 = vadd.f32 %v927_v60, %v763_v12 }
  0xdc   : > { %v427_v18 = vpop.permute.xlu0 %426  ;;  %v766_v45 = vadd.f32 %v734_v59, %v570_v46 }
  0xdd   : > { %v765_v49 = vadd.f32 %v733_v8, %v569_v13  ;;  %1887 = vset.pattern.permute.xlu1 %v1912_v0  ;;  %1793 = vmatprep.mubr.bf16.mxu0 %v1050_v15  ;;  %v991_v20 = vmax.f32 %v959_v17, 0.0  ;;  %v540_v12 = vmul.f32 %v2124_v50, %v427_v18 }
  0xde   : > { %693 = vperm.xlu1 %1887, %v2042_v23   ;;  %v822_v30 = vpop.permute.xlu1 %821  ;;  %v735_v23 = vmul.f32 %v2134_v56, %v2130_v54 }
  0xdf   : > { %v928_v51 = vmul.f32 %v2149_v63, %v822_v30  ;;  %1023 = vst [vmem:[%s2166_s15 + $0x38] sm:$0xff] %v991_v20  ;;  %v1051_v57 = vpack.c.bf16 %v991_v20, %v990_v62  ;;  %v961_v7 = vadd.f32 %v929_v14, %v765_v49  ;;  %v572_v16 = vadd.f32 %v2140_v58, %v540_v12 }
  0xe0   : > { %v442_v37 = vpop.permute.xlu0 %441  ;;  %v767_v60 = vadd.f32 %v735_v23, %v571_v42 }
  0xe1   : > { %v960_v2 = vadd.f32 %v928_v51, %v764_v35  ;;  %v993_v27 = vmax.f32 %v961_v7, 0.0  ;;  %v543_v36 = vmul.f32 %v2124_v50, %v442_v37 }
  0xe2   : > { %697 = vperm.xlu1 %1887, %v2243_v39   ;;  %v830_v40 = vpop.permute.xlu1 %829  ;;  %1794 = vmatmul.mubr.bf16.gmra.mxu0 %v1051_v57 }
  0xe3   : > { %v992_v61 = vmax.f32 %v960_v2, 0.0  ;;  %v930_v62 = vmul.f32 %v2149_v63, %v830_v40  ;;  %1025 = vst [vmem:[%s2166_s15 + $0x48] sm:$0xff] %v993_v27  ;;  %v575_v17 = vadd.f32 %v2140_v58, %v543_v36 }
  0xe4   : > { %v2290_v47 = vpop.permute.xlu0 %451 }
  0xe5   : > { %1024 = vst [vmem:[%s2166_s15 + $0x40] sm:$0xff] %v992_v61  ;;  %v962_v19 = vadd.f32 %v930_v62, %v766_v45  ;;  %v1052_v44 = vpack.c.bf16 %v993_v27, %v992_v61 }
  0xe6   : > { %1888 = vset.pattern.permute.xlu1 %v1914_v9  ;;  %v834_v54 = vpop.permute.xlu1 %833 }
  0xe7   : > { %v994_v55 = vmax.f32 %v962_v19, 0.0  ;;  %v931_v3 = vmul.f32 %v2149_v63, %v834_v54  ;;  %885 = vperm.xlu1 %1888, %v2108_v43   ;;  %1797 = vmatprep.mubr.bf16.mxu0 %v1052_v44 }
  0xe8   : > { %v2296_v10 = vpop.permute.xlu0 %466 }
  0xe9   : > { %1026 = vst [vmem:[%s2166_s15 + $0x50] sm:$0xff] %v994_v55  ;;  %v963_v25 = vadd.f32 %v931_v3, %v767_v60 }
  0xeb   : > { %v995_v4 = vmax.f32 %v963_v25, 0.0  ;;  %893 = vperm.xlu1 %1888, %v2243_v39   ;;  %v432_v5 = vpop.permute.xlu1 %431 }
  0xec   : > { %v2300_v6 = vpop.permute.xlu0 %481  ;;  %v541_v22 = vmul.f32 %v2124_v50, %v432_v5 }
  0xed   : > { %1027 = vst [vmem:[%s2166_s15 + $0x58] sm:$0xff] %v995_v4  ;;  %v1053_v11 = vpack.c.bf16 %v995_v4, %v994_v55 }
  0xee   : > { %v573_v59 = vadd.f32 %v2140_v58, %v541_v22 }
  0xef   : > { %897 = vperm.xlu1 %1888, %v2119_v48   ;;  %v437_v38 = vpop.permute.xlu1 %436  ;;  %1798 = vmatmul.mubr.bf16.gmra.mxu0 %v1053_v11  ;;  %v354_v48 = vld [vmem:[%s1976_s11 + $0xf0] sm:$0xff] }
  0xf0   : > { %v2305_v43 = vpop.permute.xlu0 %491  ;;  %v542_v51 = vmul.f32 %v2124_v50, %v437_v38 }
  0xf3   : > { %1890 = vset.pattern.permute.xlu1 %v1913_v1 }
  0xf4   : > { %511 = vperm.xlu1 %1890, %v2128_v53   ;;  %v642_v39 = vpop.permute.xlu1 %641  ;;  %v2310_v33 = vpop.permute.xlu0 %506 }
  0xf5   : > { %v736_v14 = vmul.f32 %v2134_v56, %v642_v39 }
  0xf7   : > { %v768_v8 = vadd.f32 %v736_v14, %v572_v16 }
  0xf8   : > { %516 = vperm.xlu1 %1890, %v354_v48   ;;  %v650_v13 = vpop.permute.xlu1 %649  ;;  %v2317_v15 = vpop.permute.xlu0 %521 }
  0xf9   : > { %v964_v1 = vadd.f32 %v932_v21, %v768_v8  ;;  %v738_v26 = vmul.f32 %v2134_v56, %v650_v13  ;;  %v1903_v13 = vld [vmem:[%s2569_s5] sm:$0xff]  }
  0xfa   : > { %1821 = vmatprep.subr.bf16.mxu1 %v1903_v13 }
  0xfb   : > { %v996_v18 = vmax.f32 %v964_v1, 0.0  ;;  %1822 = vmatpush3.bf16.msra.mxu1 %v1903_v13 }
  0xfc   : > { %1892 = vset.pattern.permute.xlu1 %v1912_v0  ;;  %v654_v49 = vpop.permute.xlu1 %653 }
  0xfd   : > { %1028 = vst [vmem:[%s2166_s15 + $0x60] sm:$0xff] %v996_v18  ;;  %v739_v20 = vmul.f32 %v2134_v56, %v654_v49  ;;  %705 = vperm.xlu1 %1892, %v2078_v31   ;;  %v646_v28 = vpop.permute.xlu0 %645  ;;  %v574_v31 = vadd.f32 %v2140_v58, %v542_v51 }
  0xfe   : > { %v737_v30 = vmul.f32 %v2134_v56, %v646_v28 }
  0xff   : > { %v771_v35 = vadd.f32 %v739_v20, %v575_v17  ;;  %v770_v23 = vadd.f32 %v738_v26, %v574_v31 }
 0x100   : > { %v769_v7 = vadd.f32 %v737_v30, %v573_v59 }
 0x101   : > { %v967_v0 = vadd.f32 %v935_v24, %v771_v35  ;;  %713 = vperm.xlu1 %1892, %v354_v48   ;;  %v842_v57 = vpop.permute.xlu1 %841  ;;  %v658_v4 = vpop.permute.xlu0 %657 }
 0x102   : > { %v933_v37 = vmul.f32 %v2149_v63, %v842_v57  ;;  %v740_v16 = vmul.f32 %v2134_v56, %v658_v4 }
 0x103   : > { %v999_v46 = vmax.f32 %v967_v0, 0.0 }
 0x104   : > { %v965_v2 = vadd.f32 %v933_v37, %v769_v7 }
 0x105   : > { %1031 = vst [vmem:[%s2166_s15 + $0x78] sm:$0xff] %v999_v46  ;;  %717 = vperm.xlu1 %1892, %v2084_v32   ;;  %v846_v27 = vpop.permute.xlu1 %845  ;;  %v545_v32 = vmul.f32 %v2124_v50, %v2290_v47  ;;  %v670_v36 = vpop.permute.xlu0 %669 }
 0x106   : > { %v997_v40 = vmax.f32 %v965_v2, 0.0  ;;  %v934_v42 = vmul.f32 %v2149_v63, %v846_v27  ;;  %v548_v2 = vmul.f32 %v2124_v50, %v2296_v10 }
 0x107   : > { %v577_v60 = vadd.f32 %v2140_v58, %v545_v32 }
 0x108   : > { %1029 = vst [vmem:[%s2166_s15 + $0x68] sm:$0xff] %v997_v40  ;;  %v966_v45 = vadd.f32 %v934_v42, %v770_v23  ;;  %v1054_v61 = vpack.c.bf16 %v997_v40, %v996_v18  ;;  %v743_v18 = vmul.f32 %v2134_v56, %v670_v36  ;;  %v580_v23 = vadd.f32 %v2140_v58, %v548_v2 }
 0x109   : > { %1894 = vset.pattern.permute.xlu1 %v1914_v9  ;;  %v940_v42 = vmul.f32 %v2149_v63, %v2198_v34 }
 0x10a   : > { %v998_v62 = vmax.f32 %v966_v45, 0.0  ;;  %905 = vperm.xlu1 %1894, %v2128_v53   ;;  %v447_v19 = vpop.permute.xlu1 %446  ;;  %1801 = vmatprep.mubr.bf16.mxu0 %v1054_v61  ;;  %v937_v53 = vmul.f32 %v2149_v63, %v2193_v29 }
 0x10b   : > { %v544_v25 = vmul.f32 %v2124_v50, %v447_v19 }
 0x10c   : > { %1030 = vst [vmem:[%s2166_s15 + $0x70] sm:$0xff] %v998_v62  ;;  %v1055_v44 = vpack.c.bf16 %v999_v46, %v998_v62  ;;  %v551_v62 = vmul.f32 %v2124_v50, %v2300_v6 }
 0x10d   : > { %v576_v38 = vadd.f32 %v2140_v58, %v544_v25 }
 0x10e   : > { %909 = vperm.xlu1 %1894, %v354_v48   ;;  %v457_v54 = vpop.permute.xlu1 %456  ;;  %1802 = vmatmul.mubr.bf16.gmra.mxu0 %v1055_v44  ;;  %v583_v10 = vadd.f32 %v2140_v58, %v551_v62 }
 0x10f   : > { %v546_v39 = vmul.f32 %v2124_v50, %v457_v54  ;;  %v772_v14 = vadd.f32 %v740_v16, %v576_v38  ;;  %v678_v54 = vpop.permute.xlu0 %677 }
 0x110   : > { %v745_v34 = vmul.f32 %v2134_v56, %v678_v54 }
 0x111   : > { %v578_v1 = vadd.f32 %v2140_v58, %v546_v39 }
 0x112   : > { %v462_v55 = vpop.permute.xlu1 %461 }
 0x113   : > { %v547_v48 = vmul.f32 %v2124_v50, %v462_v55 }
 0x115   : > { %v579_v49 = vadd.f32 %v2140_v58, %v547_v48 }
 0x117   : > { %v662_v3 = vpop.permute.xlu1 %661  ;;  %v775_v51 = vadd.f32 %v743_v18, %v579_v49  ;;  %v553_v18 = vmul.f32 %v2124_v50, %v2305_v43 }
 0x118   : > { %v741_v9 = vmul.f32 %v2134_v56, %v662_v3 }
 0x119   : > { %v585_v49 = vadd.f32 %v2140_v58, %v553_v18 }
 0x11a   : > { %v773_v5 = vadd.f32 %v741_v9, %v577_v60  ;;  %v943_v9 = vmul.f32 %v2149_v63, %v2204_v41 }
 0x11b   : > { %v666_v11 = vpop.permute.xlu1 %665 }
 0x11c   : > { %v969_v12 = vadd.f32 %v937_v53, %v773_v5  ;;  %v742_v29 = vmul.f32 %v2134_v56, %v666_v11 }
 0x11e   : > { %v1001_v47 = vmax.f32 %v969_v12, 0.0  ;;  %v774_v24 = vadd.f32 %v742_v29, %v578_v1 }
 0x120   : > { %1033 = vst [vmem:[%s2166_s15 + $0x88] sm:$0xff] %v1001_v47  ;;  %v854_v21 = vpop.permute.xlu1 %853 }
 0x121   : > { %v936_v8 = vmul.f32 %v2149_v63, %v854_v21 }
 0x123   : > { %v968_v17 = vadd.f32 %v936_v8, %v772_v14 }
 0x124   : > { %v862_v22 = vpop.permute.xlu1 %861 }
 0x125   : > { %v1000_v20 = vmax.f32 %v968_v17, 0.0  ;;  %v938_v28 = vmul.f32 %v2149_v63, %v862_v22 }
 0x127   : > { %1032 = vst [vmem:[%s2166_s15 + $0x80] sm:$0xff] %v1000_v20  ;;  %v970_v30 = vadd.f32 %v938_v28, %v774_v24  ;;  %v1056_v35 = vpack.c.bf16 %v1001_v47, %v1000_v20  ;;  %v945_v28 = vmul.f32 %v2149_v63, %v2212_v52 }
 0x128   : > { %v866_v59 = vpop.permute.xlu1 %865 }
 0x129   : > { %v1002_v0 = vmax.f32 %v970_v30, 0.0  ;;  %v939_v57 = vmul.f32 %v2149_v63, %v866_v59  ;;  %1805 = vmatprep.mubr.bf16.mxu0 %v1056_v35  ;;  %v690_v30 = vpop.permute.xlu0 %689 }
 0x12b   : > { %1034 = vst [vmem:[%s2166_s15 + $0x90] sm:$0xff] %v1002_v0  ;;  %v971_v26 = vadd.f32 %v939_v57, %v775_v51  ;;  %v748_v57 = vmul.f32 %v2134_v56, %v690_v30 }
 0x12d   : > { %v1003_v7 = vmax.f32 %v971_v26, 0.0  ;;  %v472_v37 = vpop.permute.xlu1 %471 }
 0x12e   : > { %v549_v44 = vmul.f32 %v2124_v50, %v472_v37 }
 0x12f   : > { %1035 = vst [vmem:[%s2166_s15 + $0x98] sm:$0xff] %v1003_v7  ;;  %v1057_v46 = vpack.c.bf16 %v1003_v7, %v1002_v0 }
 0x130   : > { %v581_v3 = vadd.f32 %v2140_v58, %v549_v44 }
 0x131   : > { %v477_v31 = vpop.permute.xlu1 %476  ;;  %1806 = vmatmul.mubr.bf16.gmra.mxu0 %v1057_v46 }
 0x132   : > { %v550_v25 = vmul.f32 %v2124_v50, %v477_v31  ;;  %v777_v5 = vadd.f32 %v745_v34, %v581_v3  ;;  %v702_v31 = vpop.permute.xlu0 %701 }
 0x134   : > { %v582_v16 = vadd.f32 %v2140_v58, %v550_v25 }
 0x136   : > { %v674_v27 = vpop.permute.xlu1 %673  ;;  %v710_v25 = vpop.permute.xlu0 %709 }
 0x137   : > { %v744_v40 = vmul.f32 %v2134_v56, %v674_v27 }
 0x139   : > { %v776_v45 = vadd.f32 %v744_v40, %v580_v23  ;;  %v751_v40 = vmul.f32 %v2134_v56, %v702_v31 }
 0x13a   : > { %v682_v61 = vpop.permute.xlu1 %681 }
 0x13b   : > { %v972_v19 = vadd.f32 %v940_v42, %v776_v45  ;;  %v746_v11 = vmul.f32 %v2134_v56, %v682_v61 }
 0x13d   : > { %v1004_v32 = vmax.f32 %v972_v19, 0.0  ;;  %v778_v21 = vadd.f32 %v746_v11, %v582_v16 }
 0x13e   : > { %v686_v55 = vpop.permute.xlu1 %685 }
 0x13f   : > { %1036 = vst [vmem:[%s2166_s15 + $0xa0] sm:$0xff] %v1004_v32  ;;  %v747_v60 = vmul.f32 %v2134_v56, %v686_v55 }
 0x141   : > { %v779_v6 = vadd.f32 %v747_v60, %v583_v10 }
 0x143   : > { %v975_v53 = vadd.f32 %v943_v9, %v779_v6  ;;  %v874_v4 = vpop.permute.xlu1 %873 }
 0x144   : > { %v941_v12 = vmul.f32 %v2149_v63, %v874_v4  ;;  %v556_v4 = vmul.f32 %v2124_v50, %v2310_v33 }
 0x145   : > { %v1007_v38 = vmax.f32 %v975_v53, 0.0 }
 0x146   : > { %v973_v47 = vadd.f32 %v941_v12, %v777_v5  ;;  %v902_v5 = vpop.permute.xlu0 %901  ;;  %v588_v12 = vadd.f32 %v2140_v58, %v556_v4 }
 0x147   : > { %1039 = vst [vmem:[%s2166_s15 + $0xb8] sm:$0xff] %v1007_v38  ;;  %v878_v39 = vpop.permute.xlu1 %877  ;;  %v948_v16 = vmul.f32 %v2149_v63, %v902_v5 }
 0x148   : > { %v1005_v41 = vmax.f32 %v973_v47, 0.0  ;;  %v942_v14 = vmul.f32 %v2149_v63, %v878_v39 }
 0x14a   : > { %1037 = vst [vmem:[%s2166_s15 + $0xa8] sm:$0xff] %v1005_v41  ;;  %v974_v48 = vadd.f32 %v942_v14, %v778_v21  ;;  %v1058_v36 = vpack.c.bf16 %v1005_v41, %v1004_v32  ;;  %v559_v21 = vmul.f32 %v2124_v50, %v2317_v15  ;;  %v753_v15 = vmul.f32 %v2134_v56, %v710_v25 }
 0x14c   : > { %v1006_v29 = vmax.f32 %v974_v48, 0.0  ;;  %v487_v8 = vpop.permute.xlu1 %486  ;;  %1809 = vmatprep.mubr.bf16.mxu0 %v1058_v36  ;;  %v914_v48 = vpop.permute.xlu0 %913  ;;  %v591_v33 = vadd.f32 %v2140_v58, %v559_v21 }
 0x14d   : > { %v552_v20 = vmul.f32 %v2124_v50, %v487_v8 }
 0x14e   : > { %1038 = vst [vmem:[%s2166_s15 + $0xb0] sm:$0xff] %v1006_v29  ;;  %v1059_v13 = vpack.c.bf16 %v1007_v38, %v1006_v29 }
 0x14f   : > { %v584_v0 = vadd.f32 %v2140_v58, %v552_v20 }
 0x150   : > { %v497_v1 = vpop.permute.xlu1 %496  ;;  %1810 = vmatmul.mubr.bf16.gmra.mxu0 %v1059_v13  ;;  %v951_v13 = vmul.f32 %v2149_v63, %v914_v48 }
 0x151   : > { %v554_v43 = vmul.f32 %v2124_v50, %v497_v1  ;;  %v780_v37 = vadd.f32 %v748_v57, %v584_v0 }
 0x153   : > { %v586_v27 = vadd.f32 %v2140_v58, %v554_v43 }
 0x154   : > { %v502_v17 = vpop.permute.xlu1 %501 }
 0x155   : > { %v555_v46 = vmul.f32 %v2124_v50, %v502_v17 }
 0x157   : > { %v587_v45 = vadd.f32 %v2140_v58, %v555_v46 }
 0x159   : > { %v694_v22 = vpop.permute.xlu1 %693  ;;  %v783_v55 = vadd.f32 %v751_v40, %v587_v45 }
 0x15a   : > { %v749_v24 = vmul.f32 %v2134_v56, %v694_v22 }
 0x15c   : > { %v781_v35 = vadd.f32 %v749_v24, %v585_v49 }
 0x15d   : > { %v698_v59 = vpop.permute.xlu1 %697 }
 0x15e   : > { %v977_v51 = vadd.f32 %v945_v28, %v781_v35  ;;  %v750_v52 = vmul.f32 %v2134_v56, %v698_v59 }
 0x160   : > { %v1009_v26 = vmax.f32 %v977_v51, 0.0  ;;  %v782_v61 = vadd.f32 %v750_v52, %v586_v27 }
 0x162   : > { %1041 = vst [vmem:[%s2166_s15 + $0xc8] sm:$0xff] %v1009_v26  ;;  %v886_v7 = vpop.permute.xlu1 %885 }
 0x163   : > { %v944_v2 = vmul.f32 %v2149_v63, %v886_v7 }
 0x165   : > { %v976_v23 = vadd.f32 %v944_v2, %v780_v37 }
 0x166   : > { %v894_v42 = vpop.permute.xlu1 %893 }
 0x167   : > { %v1008_v62 = vmax.f32 %v976_v23, 0.0  ;;  %v946_v19 = vmul.f32 %v2149_v63, %v894_v42 }
 0x169   : > { %1040 = vst [vmem:[%s2166_s15 + $0xc0] sm:$0xff] %v1008_v62  ;;  %v978_v44 = vadd.f32 %v946_v19, %v782_v61  ;;  %v1060_v54 = vpack.c.bf16 %v1009_v26, %v1008_v62 }
 0x16a   : > { %v898_v32 = vpop.permute.xlu1 %897 }
 0x16b   : > { %v1010_v10 = vmax.f32 %v978_v44, 0.0  ;;  %v947_v60 = vmul.f32 %v2149_v63, %v898_v32  ;;  %1813 = vmatprep.mubr.bf16.mxu0 %v1060_v54 }
 0x16d   : > { %1042 = vst [vmem:[%s2166_s15 + $0xd0] sm:$0xff] %v1010_v10  ;;  %v979_v3 = vadd.f32 %v947_v60, %v783_v55 }
 0x16f   : > { %v1011_v34 = vmax.f32 %v979_v3, 0.0  ;;  %v512_v9 = vpop.permute.xlu1 %511 }
 0x170   : > { %v557_v14 = vmul.f32 %v2124_v50, %v512_v9 }
 0x171   : > { %1043 = vst [vmem:[%s2166_s15 + $0xd8] sm:$0xff] %v1011_v34  ;;  %v1061_v6 = vpack.c.bf16 %v1011_v34, %v1010_v10 }
 0x172   : > { %v589_v1 = vadd.f32 %v2140_v58, %v557_v14 }
 0x173   : > { %v517_v53 = vpop.permute.xlu1 %516  ;;  %1814 = vmatmul.mubr.bf16.gmra.mxu0 %v1061_v6 }
 0x174   : > { %v558_v18 = vmul.f32 %v2124_v50, %v517_v53  ;;  %v785_v20 = vadd.f32 %v753_v15, %v589_v1 }
 0x176   : > { %v590_v35 = vadd.f32 %v2140_v58, %v558_v18  ;;  %v2436_v58 = vld [vmem:[%s2568_s4] ss:$0 sm:$0xff] }
 0x178   : > { %v706_v11 = vpop.permute.xlu1 %705 }
 0x179   : > { %v752_v38 = vmul.f32 %v2134_v56, %v706_v11 }
 0x17b   : > { %v784_v47 = vadd.f32 %v752_v38, %v588_v12 }
 0x17c   : > { %v714_v39 = vpop.permute.xlu1 %713 }
 0x17d   : > { %v980_v41 = vadd.f32 %v948_v16, %v784_v47  ;;  %v754_v24 = vmul.f32 %v2134_v56, %v714_v39 }
 0x17f   : > { %v1012_v36 = vmax.f32 %v980_v41, 0.0  ;;  %v786_v0 = vadd.f32 %v754_v24, %v590_v35 }
 0x180   : > { %v718_v29 = vpop.permute.xlu1 %717 }
 0x181   : > { %1044 = vst [vmem:[%s2166_s15 + $0xe0] sm:$0xff] %v1012_v36  ;;  %v755_v8 = vmul.f32 %v2134_v56, %v718_v29 }
 0x183   : > { %v787_v17 = vadd.f32 %v755_v8, %v591_v33 }
 0x185   : > { %v983_v22 = vadd.f32 %v951_v13, %v787_v17  ;;  %v906_v49 = vpop.permute.xlu1 %905 }
 0x186   : > { %v949_v28 = vmul.f32 %v2149_v63, %v906_v49 }
 0x187   : > { %v1015_v30 = vmax.f32 %v983_v22, 0.0 }
 0x188   : > { %v981_v59 = vadd.f32 %v949_v28, %v785_v20 }
 0x189   : > { %1047 = vst [vmem:[%s2166_s15 + $0xf8] sm:$0xff] %v1015_v30  ;;  %v910_v51 = vpop.permute.xlu1 %909 }
 0x18a   : > { %v1013_v57 = vmax.f32 %v981_v59, 0.0  ;;  %v950_v26 = vmul.f32 %v2149_v63, %v910_v51 }
 0x18c   : > { %1045 = vst [vmem:[%s2166_s15 + $0xe8] sm:$0xff] %v1013_v57  ;;  %v982_v50 = vadd.f32 %v950_v26, %v786_v0  ;;  %v1062_v43 = vpack.c.bf16 %v1013_v57, %v1012_v36 }
 0x18e   : > { %v1014_v7 = vmax.f32 %v982_v50, 0.0  ;;  %1817 = vmatprep.mubr.bf16.mxu0 %v1062_v43 }
 0x190   : > { %1046 = vst [vmem:[%s2166_s15 + $0xf0] sm:$0xff] %v1014_v7  ;;  %v1063_v56 = vpack.c.bf16 %v1015_v30, %v1014_v7 }
 0x192   : > { %1818 = vmatmul.mubr.bf16.gmra.mxu0 %v1063_v56 }
 0x19a   : > { %v1791_v37 = vpop.f32.mrf.mxu0 }
 0x19b   : > { %v1178_v2 = vadd.f32 %v1791_v37, %v2436_v58 }
 0x19c   : > { %v1169_v46 = vpop.f32.mrf.mxu0 }
 0x19d   : > { %v1170_v52 = vadd.f32 %v2436_v58, %v1169_v46  ;;  %v1298_v62 = vmax.f32 %v1178_v2, 0.0 }
 0x19e   : > { %v1792_v31 = vpop.f32.mrf.mxu0 }
 0x19f   : > { %v1181_v63 = vadd.f32 %v1792_v31, %v2436_v58  ;;  %v1296_v45 = vmax.f32 %v1170_v52, 0.0 }
 0x1a0   : > { %v1172_v27 = vpop.f32.mrf.mxu0 }
 0x1a1   : > { %v1173_v23 = vadd.f32 %v2436_v58, %v1172_v27  ;;  %v1299_v40 = vmax.f32 %v1181_v63, 0.0 }
 0x1a2   : > { %v1795_v42 = vpop.f32.mrf.mxu0 }
 0x1a3   : > { %v1297_v61 = vmax.f32 %v1173_v23, 0.0  ;;  %v1329_v54 = vpack.c.bf16 %v1299_v40, %v1298_v62  ;;  %v1194_v60 = vadd.f32 %v1795_v42, %v2436_v58 }
 0x1a4   : > { %v1185_v19 = vpop.f32.mrf.mxu0 }
 0x1a5   : > { %v1328_v44 = vpack.c.bf16 %v1297_v61, %v1296_v45  ;;  %v1186_v55 = vadd.f32 %v2436_v58, %v1185_v19  ;;  %v1302_v53 = vmax.f32 %v1194_v60, 0.0 }
 0x1a6   : > { %v1796_v32 = vpop.f32.mrf.mxu0 }
 0x1a7   : > { %v1197_v10 = vadd.f32 %v1796_v32, %v2436_v58  ;;  %1823 = vmatprep.mubr.msk.bf16.mxu1 %vm1359_vm0, %v1328_v44  ;;  %v1300_v6 = vmax.f32 %v1186_v55, 0.0 }
 0x1a8   : > { %v1188_v3 = vpop.f32.mrf.mxu0  ;;  %1824 = vmatmul.mubr.msk.bf16.vlgmr.msra.gmra.mxu1 %vm1359_vm0, %v1329_v54 }
 0x1a9   : > { %v1189_v34 = vadd.f32 %v2436_v58, %v1188_v3  ;;  %v1303_v9 = vmax.f32 %v1197_v10, 0.0 }
 0x1ab   : > { %v1301_v25 = vmax.f32 %v1189_v34, 0.0  ;;  %v1331_v5 = vpack.c.bf16 %v1303_v9, %v1302_v53 }
 0x1ad   : > { %v1330_v4 = vpack.c.bf16 %v1301_v25, %v1300_v6 }
 0x1af   : > { %v1799_v11 = vpop.f32.mrf.mxu0  ;;  %1827 = vmatprep.mubr.msk.bf16.mxu1 %vm1359_vm0, %v1330_v4 }
 0x1b0   : > { %1828 = vmatmul.mubr.msk.bf16.gmra.mxu1 %vm1359_vm0, %v1331_v5  ;;  %v1210_v39 = vadd.f32 %v1799_v11, %v2436_v58 }
 0x1b1   : > { %v1201_v12 = vpop.f32.mrf.mxu0 }
 0x1b2   : > { %v1202_v16 = vadd.f32 %v2436_v58, %v1201_v12  ;;  %v1306_v29 = vmax.f32 %v1210_v39, 0.0 }
 0x1b3   : > { %v1800_v38 = vpop.f32.mrf.mxu0 }
 0x1b4   : > { %v1213_v47 = vadd.f32 %v1800_v38, %v2436_v58  ;;  %v1304_v48 = vmax.f32 %v1202_v16, 0.0 }
 0x1b5   : > { %v1204_v21 = vpop.f32.mrf.mxu0 }
 0x1b6   : > { %v1205_v41 = vadd.f32 %v2436_v58, %v1204_v21  ;;  %v1307_v14 = vmax.f32 %v1213_v47, 0.0 }
 0x1b8   : > { %v1305_v36 = vmax.f32 %v1205_v41, 0.0  ;;  %v1333_v8 = vpack.c.bf16 %v1307_v14, %v1306_v29 }
 0x1ba   : > { %v1332_v33 = vpack.c.bf16 %v1305_v36, %v1304_v48 }
 0x1bc   : > { %1831 = vmatprep.mubr.msk.bf16.mxu1 %vm1359_vm0, %v1332_v33 }
 0x1bd   : > { %1832 = vmatmul.mubr.msk.bf16.gmra.mxu1 %vm1359_vm0, %v1333_v8 }
 0x1ce   : > { %v1803_v13 = vpop.f32.mrf.mxu0 }
 0x1cf   : > { %v1226_v22 = vadd.f32 %v1803_v13, %v2436_v58 }
 0x1d0   : > { %v1217_v1 = vpop.f32.mrf.mxu0 }
 0x1d1   : > { %v1218_v15 = vadd.f32 %v2436_v58, %v1217_v1  ;;  %v1310_v35 = vmax.f32 %v1226_v22, 0.0 }
 0x1d2   : > { %v1804_v17 = vpop.f32.mrf.mxu0 }
 0x1d3   : > { %v1229_v18 = vadd.f32 %v1804_v17, %v2436_v58  ;;  %v1308_v28 = vmax.f32 %v1218_v15, 0.0 }
 0x1d4   : > { %v1220_v49 = vpop.f32.mrf.mxu0 }
 0x1d5   : > { %v1221_v24 = vadd.f32 %v2436_v58, %v1220_v49  ;;  %v1311_v20 = vmax.f32 %v1229_v18, 0.0 }
 0x1d7   : > { %v1309_v30 = vmax.f32 %v1221_v24, 0.0  ;;  %v1335_v51 = vpack.c.bf16 %v1311_v20, %v1310_v35  ;;  %v2489_v24 = vld [vmem:[%s2570_s6] ss:$0 sm:$0xff] }
 0x1d9   : > { %v1334_v59 = vpack.c.bf16 %v1309_v30, %v1308_v28 }
 0x1db   : > { %1835 = vmatprep.mubr.msk.bf16.mxu1 %vm1359_vm0, %v1334_v59 }
 0x1dc   : > { %1836 = vmatmul.mubr.msk.bf16.gmra.mxu1 %vm1359_vm0, %v1335_v51 }
 0x1f1   : > { %v1807_v0 = vpop.f32.mrf.mxu0 }
 0x1f2   : > { %v1242_v7 = vadd.f32 %v1807_v0, %v2436_v58 }
 0x1f3   : > { %v1233_v57 = vpop.f32.mrf.mxu0 }
 0x1f4   : > { %v1234_v50 = vadd.f32 %v2436_v58, %v1233_v57  ;;  %v1314_v63 = vmax.f32 %v1242_v7, 0.0 }
 0x1f5   : > { %v1808_v26 = vpop.f32.mrf.mxu0 }
 0x1f6   : > { %v1245_v43 = vadd.f32 %v1808_v26, %v2436_v58  ;;  %v1312_v31 = vmax.f32 %v1234_v50, 0.0 }
 0x1f7   : > { %v1236_v56 = vpop.f32.mrf.mxu0 }
 0x1f8   : > { %v1237_v37 = vadd.f32 %v2436_v58, %v1236_v56  ;;  %v1315_v46 = vmax.f32 %v1245_v43, 0.0 }
 0x1fa   : > { %v1313_v52 = vmax.f32 %v1237_v37, 0.0  ;;  %v1337_v27 = vpack.c.bf16 %v1315_v46, %v1314_v63 }
 0x1fc   : > { %v1336_v2 = vpack.c.bf16 %v1313_v52, %v1312_v31 }
 0x1fe   : > { %1839 = vmatprep.mubr.msk.bf16.mxu1 %vm1359_vm0, %v1336_v2 }
 0x1ff   : > { %1840 = vmatmul.mubr.msk.bf16.gmra.mxu1 %vm1359_vm0, %v1337_v27 }
 0x210   : > { %v1811_v23 = vpop.f32.mrf.mxu0 }
 0x211   : > { %v1258_v62 = vadd.f32 %v1811_v23, %v2436_v58 }
 0x212   : > { %v1249_v40 = vpop.f32.mrf.mxu0 }
 0x213   : > { %v1250_v45 = vadd.f32 %v2436_v58, %v1249_v40  ;;  %v1318_v10 = vmax.f32 %v1258_v62, 0.0 }
 0x214   : > { %v1812_v42 = vpop.f32.mrf.mxu0 }
 0x215   : > { %v1261_v61 = vadd.f32 %v1812_v42, %v2436_v58  ;;  %v1316_v32 = vmax.f32 %v1250_v45, 0.0 }
 0x216   : > { %v1252_v19 = vpop.f32.mrf.mxu0 }
 0x217   : > { %v1253_v44 = vadd.f32 %v2436_v58, %v1252_v19  ;;  %v1319_v54 = vmax.f32 %v1261_v61, 0.0 }
 0x219   : > { %v1317_v55 = vmax.f32 %v1253_v44, 0.0  ;;  %v1339_v3 = vpack.c.bf16 %v1319_v54, %v1318_v10 }
 0x21b   : > { %v1338_v60 = vpack.c.bf16 %v1317_v55, %v1316_v32 }
 0x21d   : > { %1843 = vmatprep.mubr.msk.bf16.mxu1 %vm1359_vm0, %v1338_v60 }
 0x21e   : > { %1844 = vmatmul.mubr.msk.bf16.gmra.mxu1 %vm1359_vm0, %v1339_v3 }
 0x233   : > { %v1815_v34 = vpop.f32.mrf.mxu0 }
 0x234   : > { %v1274_v4 = vadd.f32 %v1815_v34, %v2436_v58 }
 0x235   : > { %v1265_v9 = vpop.f32.mrf.mxu0 }
 0x236   : > { %v1266_v25 = vadd.f32 %v2436_v58, %v1265_v9  ;;  %v1322_v47 = vmax.f32 %v1274_v4, 0.0 }
 0x237   : > { %v1816_v6 = vpop.f32.mrf.mxu0 }
 0x238   : > { %v1277_v53 = vadd.f32 %v1816_v6, %v2436_v58  ;;  %v1320_v38 = vmax.f32 %v1266_v25, 0.0 }
 0x239   : > { %v1268_v5 = vpop.f32.mrf.mxu0 }
 0x23a   : > { %v1269_v11 = vadd.f32 %v2436_v58, %v1268_v5  ;;  %v1323_v12 = vmax.f32 %v1277_v53, 0.0 }
 0x23c   : > { %v1321_v16 = vmax.f32 %v1269_v11, 0.0  ;;  %v1341_v21 = vpack.c.bf16 %v1323_v12, %v1322_v47 }
 0x23e   : > { %v1340_v39 = vpack.c.bf16 %v1321_v16, %v1320_v38 }
 0x240   : > { %1847 = vmatprep.mubr.msk.bf16.mxu1 %vm1359_vm0, %v1340_v39 }
 0x241   : > { %1848 = vmatmul.mubr.msk.bf16.gmra.mxu1 %vm1359_vm0, %v1341_v21 }
 0x252   : > { %v1819_v41 = vpop.f32.mrf.mxu0 }
 0x253   : > { %v1290_v33 = vadd.f32 %v1819_v41, %v2436_v58 }
 0x254   : > { %v1281_v14 = vpop.f32.mrf.mxu0 }
 0x255   : > { %v1282_v36 = vadd.f32 %v2436_v58, %v1281_v14  ;;  %v1326_v18 = vmax.f32 %v1290_v33, 0.0 }
 0x256   : > { %v1820_v48 = vpop.f32.mrf.mxu0 }
 0x257   : > { %v1293_v29 = vadd.f32 %v1820_v48, %v2436_v58  ;;  %v1324_v17 = vmax.f32 %v1282_v36, 0.0 }
 0x258   : > { %v1284_v8 = vpop.f32.mrf.mxu0 }
 0x259   : > { %v1285_v13 = vadd.f32 %v2436_v58, %v1284_v8  ;;  %v1327_v1 = vmax.f32 %v1293_v29, 0.0 }
 0x25b   : > { %v1325_v15 = vmax.f32 %v1285_v13, 0.0  ;;  %v1343_v49 = vpack.c.bf16 %v1327_v1, %v1326_v18 }
 0x25d   : > { %v1342_v22 = vpack.c.bf16 %v1325_v15, %v1324_v17 }
 0x25f   : > { %1851 = vmatprep.mubr.msk.bf16.mxu1 %vm1359_vm0, %v1342_v22 }
 0x260   : > { %1852 = vmatmul.mubr.msk.bf16.gmra.mxu1 %vm1359_vm0, %v1343_v49 }
 0x268   : > { %v1825_v58 = vpop.f32.mrf.mxu1 }
 0x269   : > { %v1451_v20 = vadd.f32 %v1825_v58, %v2489_v24 }
 0x26a   : > { %v1442_v28 = vpop.f32.mrf.mxu1 }
 0x26b   : > { %1571 = vst [vmem:[%s2495_s23 + $0x10] sm:$0xff] %v1451_v20  ;;  %v1443_v30 = vadd.f32 %v2489_v24, %v1442_v28 }
 0x26c   : > { %v1826_v35 = vpop.f32.mrf.mxu1 }
 0x26d   : > { %1569 = vst [vmem:[%s2495_s23] sm:$0xff] %v1443_v30  ;;  %v1454_v59 = vadd.f32 %v1826_v35, %v2489_v24 }
 0x26e   : > { %v1445_v51 = vpop.f32.mrf.mxu1 }
 0x26f   : > { %1572 = vst [vmem:[%s2495_s23 + $0x18] sm:$0xff] %v1454_v59  ;;  %v1446_v0 = vadd.f32 %v2489_v24, %v1445_v51 }
 0x270   : > { %v1829_v57 = vpop.f32.mrf.mxu1 }
 0x271   : > { %1570 = vst [vmem:[%s2495_s23 + $0x8] sm:$0xff] %v1446_v0  ;;  %v1467_v26 = vadd.f32 %v1829_v57, %v2489_v24 }
 0x272   : > { %v1458_v50 = vpop.f32.mrf.mxu1 }
 0x273   : > { %1575 = vst [vmem:[%s2495_s23 + $0x30] sm:$0xff] %v1467_v26  ;;  %v1459_v43 = vadd.f32 %v2489_v24, %v1458_v50 }
 0x274   : > { %v1830_v7 = vpop.f32.mrf.mxu1 }
 0x275   : > { %1573 = vst [vmem:[%s2495_s23 + $0x20] sm:$0xff] %v1459_v43  ;;  %v1470_v56 = vadd.f32 %v1830_v7, %v2489_v24 }
 0x276   : > { %v1461_v37 = vpop.f32.mrf.mxu1 }
 0x277   : > { %1576 = vst [vmem:[%s2495_s23 + $0x38] sm:$0xff] %v1470_v56  ;;  %v1462_v46 = vadd.f32 %v2489_v24, %v1461_v37 }
 0x279   : > { %1574 = vst [vmem:[%s2495_s23 + $0x28] sm:$0xff] %v1462_v46 }
 0x27d   : > { %v1833_v31 = vpop.f32.mrf.mxu1 }
 0x27e   : > { %v1483_v52 = vadd.f32 %v1833_v31, %v2489_v24 }
 0x27f   : > { %v1474_v63 = vpop.f32.mrf.mxu1 }
 0x280   : > { %1579 = vst [vmem:[%s2495_s23 + $0x50] sm:$0xff] %v1483_v52  ;;  %v1475_v2 = vadd.f32 %v2489_v24, %v1474_v63 }
 0x281   : > { %v1834_v27 = vpop.f32.mrf.mxu1 }
 0x282   : > { %1577 = vst [vmem:[%s2495_s23 + $0x40] sm:$0xff] %v1475_v2  ;;  %v1486_v23 = vadd.f32 %v1834_v27, %v2489_v24 }
 0x283   : > { %v1477_v40 = vpop.f32.mrf.mxu1 }
 0x284   : > { %1580 = vst [vmem:[%s2495_s23 + $0x58] sm:$0xff] %v1486_v23  ;;  %v1478_v42 = vadd.f32 %v2489_v24, %v1477_v40 }
 0x286   : > { %1578 = vst [vmem:[%s2495_s23 + $0x48] sm:$0xff] %v1478_v42 }
 0x29c   : > { %v1837_v45 = vpop.f32.mrf.mxu1 }
 0x29d   : > { %v1499_v61 = vadd.f32 %v1837_v45, %v2489_v24 }
 0x29e   : > { %v1490_v62 = vpop.f32.mrf.mxu1 }
 0x29f   : > { %1583 = vst [vmem:[%s2495_s23 + $0x70] sm:$0xff] %v1499_v61  ;;  %v1491_v19 = vadd.f32 %v2489_v24, %v1490_v62 }
 0x2a0   : > { %v1838_v44 = vpop.f32.mrf.mxu1 }
 0x2a1   : > { %1581 = vst [vmem:[%s2495_s23 + $0x60] sm:$0xff] %v1491_v19  ;;  %v1502_v54 = vadd.f32 %v1838_v44, %v2489_v24 }
 0x2a2   : > { %v1493_v32 = vpop.f32.mrf.mxu1 }
 0x2a3   : > { %1584 = vst [vmem:[%s2495_s23 + $0x78] sm:$0xff] %v1502_v54  ;;  %v1494_v55 = vadd.f32 %v2489_v24, %v1493_v32 }
 0x2a5   : > { %1582 = vst [vmem:[%s2495_s23 + $0x68] sm:$0xff] %v1494_v55 }
 0x2bf   : > { %v1841_v10 = vpop.f32.mrf.mxu1 }
 0x2c0   : > { %v1515_v60 = vadd.f32 %v1841_v10, %v2489_v24 }
 0x2c1   : > { %v1506_v3 = vpop.f32.mrf.mxu1 }
 0x2c2   : > { %1587 = vst [vmem:[%s2495_s23 + $0x90] sm:$0xff] %v1515_v60  ;;  %v1507_v34 = vadd.f32 %v2489_v24, %v1506_v3 }
 0x2c3   : > { %v1842_v9 = vpop.f32.mrf.mxu1 }
 0x2c4   : > { %1585 = vst [vmem:[%s2495_s23 + $0x80] sm:$0xff] %v1507_v34  ;;  %v1518_v6 = vadd.f32 %v1842_v9, %v2489_v24 }
 0x2c5   : > { %v1509_v25 = vpop.f32.mrf.mxu1 }
 0x2c6   : > { %1588 = vst [vmem:[%s2495_s23 + $0x98] sm:$0xff] %v1518_v6  ;;  %v1510_v53 = vadd.f32 %v2489_v24, %v1509_v25 }
 0x2c8   : > { %1586 = vst [vmem:[%s2495_s23 + $0x88] sm:$0xff] %v1510_v53 }
 0x2de   : > { %v1845_v4 = vpop.f32.mrf.mxu1 }
 0x2df   : > { %v1531_v5 = vadd.f32 %v1845_v4, %v2489_v24 }
 0x2e0   : > { %v1522_v11 = vpop.f32.mrf.mxu1 }
 0x2e1   : > { %1591 = vst [vmem:[%s2495_s23 + $0xb0] sm:$0xff] %v1531_v5  ;;  %v1523_v12 = vadd.f32 %v2489_v24, %v1522_v11 }
 0x2e2   : > { %v1846_v38 = vpop.f32.mrf.mxu1 }
 0x2e3   : > { %1589 = vst [vmem:[%s2495_s23 + $0xa0] sm:$0xff] %v1523_v12  ;;  %v1534_v16 = vadd.f32 %v1846_v38, %v2489_v24 }
 0x2e4   : > { %v1525_v47 = vpop.f32.mrf.mxu1 }
 0x2e5   : > { %1592 = vst [vmem:[%s2495_s23 + $0xb8] sm:$0xff] %v1534_v16  ;;  %v1526_v39 = vadd.f32 %v2489_v24, %v1525_v47 }
 0x2e7   : > { %1590 = vst [vmem:[%s2495_s23 + $0xa8] sm:$0xff] %v1526_v39 }
 0x301   : > { %v1849_v21 = vpop.f32.mrf.mxu1 }
 0x302   : > { %v1547_v41 = vadd.f32 %v1849_v21, %v2489_v24 }
 0x303   : > { %v1538_v14 = vpop.f32.mrf.mxu1 }
 0x304   : > { %1595 = vst [vmem:[%s2495_s23 + $0xd0] sm:$0xff] %v1547_v41  ;;  %v1539_v48 = vadd.f32 %v2489_v24, %v1538_v14 }
 0x305   : > { %v1850_v36 = vpop.f32.mrf.mxu1 }
 0x306   : > { %1593 = vst [vmem:[%s2495_s23 + $0xc0] sm:$0xff] %v1539_v48  ;;  %v1550_v29 = vadd.f32 %v1850_v36, %v2489_v24 }
 0x307   : > { %v1541_v33 = vpop.f32.mrf.mxu1 }
 0x308   : > { %1596 = vst [vmem:[%s2495_s23 + $0xd8] sm:$0xff] %v1550_v29  ;;  %v1542_v8 = vadd.f32 %v2489_v24, %v1541_v33 }
 0x30a   : > { %1594 = vst [vmem:[%s2495_s23 + $0xc8] sm:$0xff] %v1542_v8 }
 0x320   : > { %v1853_v13 = vpop.f32.mrf.mxu1 }
 0x321   : > { %v1563_v1 = vadd.f32 %v1853_v13, %v2489_v24 }
 0x322   : > { %v1554_v17 = vpop.f32.mrf.mxu1 }
 0x323   : > { %1599 = vst [vmem:[%s2495_s23 + $0xf0] sm:$0xff] %v1563_v1  ;;  %v1555_v15 = vadd.f32 %v2489_v24, %v1554_v17 }
 0x324   : > { %v1854_v18 = vpop.f32.mrf.mxu1 }
 0x325   : > { %1597 = vst [vmem:[%s2495_s23 + $0xe0] sm:$0xff] %v1555_v15  ;;  %v1566_v22 = vadd.f32 %v1854_v18, %v2489_v24 }
 0x326   : > { %v1557_v49 = vpop.f32.mrf.mxu1 }
 0x327   : > { %1600 = vst [vmem:[%s2495_s23 + $0xf8] sm:$0xff] %v1566_v22  ;;  %v1558_v58 = vadd.f32 %v2489_v24, %v1557_v49 }
 0x329   : > { %1598 = vst [vmem:[%s2495_s23 + $0xe8] sm:$0xff] %v1558_v58 }
 0x32a PF: > { %s19_s27 = sadd.s32 1, %s1910_s27  }
 0x32b   : > { %p16_p4 = scmp.ge.s32.totalorder %s19_s27, 4  }
 0x32d   :  { %18 = sbr.rel (!%p16_p4) target bundleno = 1 (0x1), region = 90 }

// kernel: _forward_impl.4
= control target key start
LH: loop header
LB: loop body
LE: loop exit
PB: predicated region body
PF: predicated region fallthrough
CT: control target
= control target key end

     0   :  { %vm88_vm0 = vcmask 523264   ;;  %vm201_vm1 = vcmask 261120   ;;  %s457_s1 = inlined_call_operand.vmem [shape: bf16[64,32], index: 1, kind: input, shape index: {}]   ;;  %s458_s0 = inlined_call_operand.vmem [shape: bf16[64,64], index: 0, kind: input, shape index: {}]   ;;  %s459_s3 = inlined_call_operand.vmem [shape: bf16[32,128], index: 3, kind: input, shape index: {}]   ;;  %s460_s2 = inlined_call_operand.vmem [shape: f32[1,32], index: 2, kind: input, shape index: {}]   ;;  %s461_s4 = inlined_call_operand.vmem [shape: f32[1,128], index: 4, kind: input, shape index: {}]   ;;  %s462_s5 = inlined_call_operand.vmem [shape: f32[64,128], index: 5, kind: output, shape index: {}]  }
   0x1   :  { %v353_v0 = vld [vmem:[%s457_s1 + $0x18] sm:$0xff]   ;;  %v354_v1 = vld [vmem:[%s457_s1 + $0x10] sm:$0xff]   ;;  %v355_v2 = vld [vmem:[%s457_s1 + $0x8] sm:$0xff]  }
   0x2   :  { %325 = vmatprep.subr.bf16.mxu0 %v353_v0  ;;  %v357_v3 = vld [vmem:[%s458_s0] sm:$0xff]   ;;  %v358_v5 = vld [vmem:[%s458_s0 + $0x8] sm:$0xff]   ;;  %v359_v6 = vld [vmem:[%s458_s0 + $0x10] sm:$0xff]  }
   0x3   :  { %326 = vmatpush3.bf16.msra.mxu0 %v353_v0  ;;  %333 = vmatprep.mubr.msk.bf16.mxu0 %vm88_vm0, %v357_v3  ;;  %v356_v4 = vld [vmem:[%s457_s1] sm:$0xff]   ;;  %v360_v7 = vld [vmem:[%s458_s0 + $0x18] sm:$0xff]   ;;  %v361_v8 = vld [vmem:[%s459_s3 + $0x8] sm:$0xff]  }
   0x4   :  { %327 = vmatprep.subr.bf16.mxu0 %v354_v1  ;;  %341 = vmatprep.subr.bf16.mxu1 %v361_v8  ;;  %v362_v9 = vld [vmem:[%s459_s3] sm:$0xff]  }
   0x5   :  { %342 = vmatpush3.bf16.msra.mxu1 %v361_v8  ;;  %v291_v12 = vld [vmem:[%s460_s2] ss:$0 sm:$0xff] }
   0x6   :  { %343 = vmatprep.subr.bf16.mxu1 %v362_v9  ;;  %v304_v39 = vld [vmem:[%s461_s4] ss:$0 sm:$0xff] }
   0x7   :  { %328 = vmatpush3.bf16.msra.mxu0 %v354_v1 }
   0x8   :  { %329 = vmatprep.subr.bf16.mxu0 %v355_v2 }
   0x9   :  { %344 = vmatpush3.bf16.msra.mxu1 %v362_v9 }
   0xb   :  { %330 = vmatpush3.bf16.msra.mxu0 %v355_v2 }
   0xc   :  { %331 = vmatprep.subr.bf16.mxu0 %v356_v4 }
   0xf   :  { %332 = vmatpush3.bf16.msra.mxu0 %v356_v4 }
  0x12   :  { %334 = vmatmul.mubr.msk.bf16.vlgmr.msra.gmra.mxu0 %vm88_vm0, %v358_v5 }
  0x13   :  { %337 = vmatprep.mubr.msk.bf16.mxu0 %vm88_vm0, %v359_v6 }
  0x1a   :  { %338 = vmatmul.mubr.msk.bf16.gmra.mxu0 %vm88_vm0, %v360_v7 }
  0xd2   :  { %v335_v10 = vpop.f32.mrf.mxu0 }
  0xd3   :  { %v144_v16 = vadd.f32 %v335_v10, %v291_v12 }
  0xd4   :  { %v135_v11 = vpop.f32.mrf.mxu0 }
  0xd5   :  { %v136_v14 = vadd.f32 %v291_v12, %v135_v11  ;;  %v168_v23 = vmax.f32 %v144_v16, 0.0 }
  0xd6   :  { %v336_v13 = vpop.f32.mrf.mxu0 }
  0xd7   :  { %v147_v15 = vadd.f32 %v336_v13, %v291_v12  ;;  %v166_v21 = vmax.f32 %v136_v14, 0.0 }
  0xd8   :  { %v138_v17 = vpop.f32.mrf.mxu0 }
  0xd9   :  { %v139_v18 = vadd.f32 %v291_v12, %v138_v17  ;;  %v169_v19 = vmax.f32 %v147_v15, 0.0 }
  0xda   :  { %v339_v20 = vpop.f32.mrf.mxu0 }
  0xdb   :  { %v167_v22 = vmax.f32 %v139_v18, 0.0  ;;  %v175_v26 = vpack.c.bf16 %v169_v19, %v168_v23  ;;  %v160_v30 = vadd.f32 %v339_v20, %v291_v12 }
  0xdc   :  { %v151_v24 = vpop.f32.mrf.mxu0 }
  0xdd   :  { %v174_v25 = vpack.c.bf16 %v167_v22, %v166_v21  ;;  %v152_v28 = vadd.f32 %v291_v12, %v151_v24  ;;  %v172_v36 = vmax.f32 %v160_v30, 0.0 }
  0xde   :  { %v340_v27 = vpop.f32.mrf.mxu0 }
  0xdf   :  { %v163_v29 = vadd.f32 %v340_v27, %v291_v12  ;;  %345 = vmatprep.mubr.msk.bf16.mxu1 %vm201_vm1, %v174_v25  ;;  %v170_v34 = vmax.f32 %v152_v28, 0.0 }
  0xe0   :  { %v154_v31 = vpop.f32.mrf.mxu0  ;;  %346 = vmatmul.mubr.msk.bf16.vlgmr.msra.gmra.mxu1 %vm201_vm1, %v175_v26 }
  0xe1   :  { %v155_v32 = vadd.f32 %v291_v12, %v154_v31  ;;  %v173_v33 = vmax.f32 %v163_v29, 0.0 }
  0xe3   :  { %v171_v35 = vmax.f32 %v155_v32, 0.0  ;;  %v177_v38 = vpack.c.bf16 %v173_v33, %v172_v36 }
  0xe5   :  { %v176_v37 = vpack.c.bf16 %v171_v35, %v170_v34 }
  0xe7   :  { %349 = vmatprep.mubr.msk.bf16.mxu1 %vm201_vm1, %v176_v37 }
  0xe8   :  { %350 = vmatmul.mubr.msk.bf16.gmra.mxu1 %vm201_vm1, %v177_v38 }
 0x1a0   :  { %v347_v40 = vpop.f32.mrf.mxu1 }
 0x1a1   :  { %v257_v41 = vadd.f32 %v347_v40, %v304_v39 }
 0x1a2   :  { %v248_v42 = vpop.f32.mrf.mxu1 }
 0x1a3   :  { %281 = vst [vmem:[%s462_s5 + $0x10] sm:$0xff] %v257_v41  ;;  %v249_v43 = vadd.f32 %v304_v39, %v248_v42 }
 0x1a4   :  { %v348_v44 = vpop.f32.mrf.mxu1 }
 0x1a5   :  { %279 = vst [vmem:[%s462_s5] sm:$0xff] %v249_v43  ;;  %v260_v45 = vadd.f32 %v348_v44, %v304_v39 }
 0x1a6   :  { %v251_v46 = vpop.f32.mrf.mxu1 }
 0x1a7   :  { %282 = vst [vmem:[%s462_s5 + $0x18] sm:$0xff] %v260_v45  ;;  %v252_v47 = vadd.f32 %v304_v39, %v251_v46 }
 0x1a8   :  { %v351_v48 = vpop.f32.mrf.mxu1 }
 0x1a9   :  { %280 = vst [vmem:[%s462_s5 + $0x8] sm:$0xff] %v252_v47  ;;  %v273_v49 = vadd.f32 %v351_v48, %v304_v39 }
 0x1aa   :  { %v264_v50 = vpop.f32.mrf.mxu1 }
 0x1ab   :  { %285 = vst [vmem:[%s462_s5 + $0x30] sm:$0xff] %v273_v49  ;;  %v265_v51 = vadd.f32 %v304_v39, %v264_v50 }
 0x1ac   :  { %v352_v52 = vpop.f32.mrf.mxu1 }
 0x1ad   :  { %283 = vst [vmem:[%s462_s5 + $0x20] sm:$0xff] %v265_v51  ;;  %v276_v53 = vadd.f32 %v352_v52, %v304_v39 }
 0x1ae   :  { %v267_v54 = vpop.f32.mrf.mxu1 }
 0x1af   :  { %286 = vst [vmem:[%s462_s5 + $0x38] sm:$0xff] %v276_v53  ;;  %v268_v55 = vadd.f32 %v304_v39, %v267_v54 }
 0x1b1   :  { %284 = vst [vmem:[%s462_s5 + $0x28] sm:$0xff] %v268_v55 }

// kernel: _forward_impl.5
= control target key start
LH: loop header
LB: loop body
LE: loop exit
PB: predicated region body
PF: predicated region fallthrough
CT: control target
= control target key end

     0   :  { %v2080_v0 = vlaneseq  ;;  %vm545_vm0 = vcmask 253952   ;;  %v1298_v3 = vmov 0.0   ;;  %vm130_vm7 = vcmask 1040384   ;;  %s2071_s6 = inlined_call_operand.vmem [shape: s32[2,1,32], index: 6, kind: input, shape index: {}]   ;;  %s2072_s2 = inlined_call_operand.vmem [shape: s32[2,1,768], index: 2, kind: input, shape index: {}]   ;;  %s2073_s0 = inlined_call_operand.vmem [shape: f32[2,4,768], index: 0, kind: input, shape index: {}]   ;;  %s2074_s1 = inlined_call_operand.vmem [shape: f32[2,4,768], index: 1, kind: input, shape index: {}]   ;;  %s2075_s4 = inlined_call_operand.vmem [shape: f32[2,4,32], index: 4, kind: input, shape index: {}]   ;;  %s2076_s5 = inlined_call_operand.vmem [shape: f32[2,4,32], index: 5, kind: input, shape index: {}]   ;;  %s2077_s3 = inlined_call_operand.vmem [shape: f32[2,2,768], index: 3, kind: input, shape index: {}]   ;;  %s2078_s7 = inlined_call_operand.vmem [shape: f32[2,5,32], index: 7, kind: input, shape index: {}]   ;;  %s2079_s8 = inlined_call_operand.vmem [shape: f32[1,128], index: 8, kind: output, shape index: {}]  }
   0x1   :  { %v1229_v1 = vld [vmem:[%s2071_s6 + $0x1] sm:$0x1]  ;;  %v516_v2 = vld [vmem:[%s2071_s6] sm:$0x1]  ;;  %v1373_v11 = vld [vmem:[%s2072_s2 + $0x6] sm:$0x3f] }
   0x2   :  { %vm1100_vm1 = vcmp.gt.s32.totalorder %v1229_v1, 0  ;;  %vm524_vm2 = vcmp.gt.s32.totalorder %v516_v2, 0  ;;  %vm1163_vm3 = vcmp.ne.s32.totalorder %v1229_v1, 4294967295  ;;  %vm589_vm4 = vcmp.ne.s32.totalorder %v516_v2, 4294967295  ;;  %v1378_v12 = vld [vmem:[%s2072_s2] sm:$0x3f] }
   0x3   :  { %v1352_v4 = vsel %vm1100_vm1, 1.0, %v1298_v3  ;;  %v1355_v5 = vsel %vm524_vm2, 1.0, %v1298_v3  ;;  %v1358_v6 = vsel %vm1163_vm3, 1.0, %v1298_v3  ;;  %v1361_v7 = vshrl.u32 %v2080_v0, 7  ;;  %v1213_v1 = vld [vmem:[%s2073_s0 + $0x18] sm:$0xff]  ;;  %v31_v50 = vld [vmem:[%s2073_s0 + $0x10] sm:$0xff] }
   0x4   :  { %2095 = vst [vmem:[#allocation2_spill] sm:$0xff] %v1358_v6  ;;  %v1120_v8 = vsel %vm545_vm0, %v1352_v4, 0.0  ;;  %v546_v9 = vsel %vm545_vm0, %v1355_v5, 0.0  ;;  %v1368_v10 = vsel %vm589_vm4, 1.0, %v1298_v3  ;;  %v1170_v14 = vsel %vm545_vm0, %v1358_v6, 0.0  ;;  %v1216_v2 = vld [vmem:[%s2074_s1 + $0x18] sm:$0xff] }
   0x5   :  { %1121 = vadd.xlane.f32.xlu1 %v1120_v8  ;;  %547 = vadd.xlane.f32.xlu0 %v546_v9  ;;  %2096 = vst [vmem:[#allocation3_spill] sm:$0xff] %v1368_v10  ;;  %v1381_v13 = vsub.s32 0, %v1361_v7  ;;  %v1386_v15 = vsub.s32 1, %v1361_v7  ;;  %v596_v16 = vsel %vm545_vm0, %v1368_v10, 0.0  ;;  %v1391_v17 = vsub.s32 2, %v1361_v7 }
   0x6   :  { %v1394_v18 = vsub.s32 3, %v1361_v7  ;;  %v1397_v19 = vsub.s32 4, %v1361_v7  ;;  %v1400_v20 = vsub.s32 5, %v1361_v7  ;;  %vm634_vm5 = vcmp.gt.s32.totalorder %v1373_v11, 0 }
   0x7   :  { %vm57_vm6 = vcmp.gt.s32.totalorder %v1378_v12, 0  ;;  %v1223_v21 = vsel %vm634_vm5, 1.0, %v1298_v3  ;;  %vm1017_vm8 = vcmp.ne.s32.totalorder %v1373_v11, 4294967295  ;;  %vm444_vm9 = vcmp.ne.s32.totalorder %v1378_v12, 4294967295 }
   0x8   :  { %v1406_v22 = vrot.slane %v1223_v21, %v1381_v13  ;;  %v1409_v23 = vrot.slane %v1223_v21, %v1386_v15  ;;  %v1412_v24 = vrot.slane %v1223_v21, %v1391_v17  ;;  %v1415_v25 = vrot.slane %v1223_v21, %v1394_v18 }
   0x9   :  { %1171 = vadd.xlane.f32.xlu1 %v1170_v14  ;;  %597 = vadd.xlane.f32.xlu0 %v596_v16  ;;  %v1208_v26 = vsel %vm57_vm6, 1.0, %v1298_v3  ;;  %v1419_v27 = vrot.slane %v1223_v21, %v1397_v19  ;;  %v1422_v28 = vrot.slane %v1223_v21, %v1400_v20  ;;  %v1226_v55 = vsel %vm1017_vm8, 1.0, %v1298_v3 }
   0xa   :  { %v706_v29 = vsel %vm130_vm7, %v1406_v22, 0.0  ;;  %v707_v30 = vsel %vm130_vm7, %v1409_v23, 0.0  ;;  %v709_v33 = vsel %vm130_vm7, %v1412_v24, 0.0  ;;  %v711_v36 = vsel %vm130_vm7, %v1415_v25, 0.0 }
   0xb   :  { %v708_v32 = vadd.f32 %v707_v30, %v706_v29  ;;  %v1439_v37 = vrot.slane %v1208_v26, %v1381_v13  ;;  %v1442_v39 = vrot.slane %v1208_v26, %v1386_v15  ;;  %v1445_v40 = vrot.slane %v1208_v26, %v1391_v17 }
   0xc   :  { %v1448_v41 = vrot.slane %v1208_v26, %v1394_v18  ;;  %v713_v42 = vsel %vm130_vm7, %v1419_v27, 0.0  ;;  %v1453_v43 = vrot.slane %v1208_v26, %v1397_v19  ;;  %v715_v46 = vsel %vm130_vm7, %v1422_v28, 0.0 }
   0xd   :  { %v710_v38 = vadd.f32 %v709_v33, %v708_v32  ;;  %v131_v44 = vsel %vm130_vm7, %v1439_v37, 0.0  ;;  %v132_v47 = vsel %vm130_vm7, %v1442_v39, 0.0  ;;  %v134_v48 = vsel %vm130_vm7, %v1445_v40, 0.0 }
   0xe   :  { %v1465_v49 = vrot.slane %v1208_v26, %v1400_v20  ;;  %v133_v51 = vadd.f32 %v132_v47, %v131_v44  ;;  %v136_v52 = vsel %vm130_vm7, %v1448_v41, 0.0  ;;  %v138_v54 = vsel %vm130_vm7, %v1453_v43, 0.0  ;;  %v1214_v47 = vld [vmem:[%s2073_s0 + $0x20] sm:$0xff] }
   0xf   :  { %v712_v45 = vadd.f32 %v711_v36, %v710_v38  ;;  %v1476_v57 = vrot.slane %v1226_v55, %v1381_v13  ;;  %v1479_v58 = vrot.slane %v1226_v55, %v1386_v15  ;;  %v1482_v59 = vrot.slane %v1226_v55, %v1391_v17 }
  0x10   :  { %v135_v56 = vadd.f32 %v134_v48, %v133_v51  ;;  %v1485_v61 = vrot.slane %v1226_v55, %v1394_v18  ;;  %v1488_v62 = vrot.slane %v1226_v55, %v1397_v19  ;;  %v1491_v63 = vrot.slane %v1226_v55, %v1400_v20  ;;  %v1215_v48 = vld [vmem:[%s2073_s0 + $0x28] sm:$0xff] }
  0x11   :  { %v714_v53 = vadd.f32 %v713_v42, %v712_v45  ;;  %2097 = vst [vmem:[#allocation4_spill] sm:$0xff] %v1479_v58  ;;  %2098 = vst [vmem:[#allocation5_spill] sm:$0xff] %v1482_v59  ;;  %v1070_v9 = vsel %vm130_vm7, %v1476_v57, 0.0  ;;  %v1071_v14 = vsel %vm130_vm7, %v1479_v58, 0.0  ;;  %v1073_v16 = vsel %vm130_vm7, %v1482_v59, 0.0  ;;  %v1218_v55 = vld [vmem:[%s2074_s1 + $0x28] sm:$0xff] }
  0x12   :  { %2099 = vst [vmem:[#allocation6_spill] sm:$0xff] %v1485_v61  ;;  %2100 = vst [vmem:[#allocation7_spill] sm:$0xff] %v1488_v62  ;;  %v137_v8 = vadd.f32 %v136_v52, %v135_v56  ;;  %v140_v21 = vsel %vm130_vm7, %v1465_v49, 0.0  ;;  %v1072_v26 = vadd.f32 %v1071_v14, %v1070_v9  ;;  %v1075_v29 = vsel %vm130_vm7, %v1485_v61, 0.0  ;;  %v29_v56 = vld [vmem:[%s2073_s0] sm:$0xff]  ;;  %v30_v9 = vld [vmem:[%s2073_s0 + $0x8] sm:$0xff] }
  0x13   :  { %v716_v60 = vadd.f32 %v715_v46, %v714_v53  ;;  %2101 = vst [vmem:[#allocation8_spill] sm:$0xff] %v1491_v63  ;;  %v1077_v30 = vsel %vm130_vm7, %v1488_v62, 0.0  ;;  %v1079_v33 = vsel %vm130_vm7, %v1491_v63, 0.0  ;;  %v1209_v36 = vsel %vm444_vm9, 1.0, %v1298_v3  ;;  %v32_v14 = vld [vmem:[%s2074_s1] sm:$0xff] }
  0x14   :  { %v139_v32 = vadd.f32 %v138_v54, %v137_v8  ;;  %v613_v38 = vsub.f32 %v1213_v1, %v1216_v2  ;;  %v1074_v42 = vadd.f32 %v1073_v16, %v1072_v26  ;;  %v1517_v44 = vrot.slane %v1209_v36, %v1381_v13  ;;  %v1217_v54 = vld [vmem:[%s2074_s1 + $0x20] sm:$0xff]  ;;  %v33_v16 = vld [vmem:[%s2074_s1 + $0x8] sm:$0xff] }
  0x15   :  { %717 = vadd.xlane.f32.xlu1 %v716_v60  ;;  %v1520_v45 = vrot.slane %v1209_v36, %v1386_v15  ;;  %v1523_v46 = vrot.slane %v1209_v36, %v1391_v17  ;;  %v1532_v51 = vrot.slane %v1209_v36, %v1394_v18  ;;  %v1535_v52 = vrot.slane %v1209_v36, %v1397_v19 }
  0x16   :  { %2102 = vst [vmem:[#allocation9_spill] sm:$0xff] %v1517_v44  ;;  %v141_v3 = vadd.f32 %v140_v21, %v139_v32  ;;  %v1538_v53 = vrot.slane %v1209_v36, %v1400_v20  ;;  %v1076_v60 = vadd.f32 %v1075_v29, %v1074_v42  ;;  %v497_v1 = vsel %vm130_vm7, %v1517_v44, 0.0 }
  0x17   :  { %2103 = vst [vmem:[#allocation10_spill] sm:$0xff] %v1520_v45  ;;  %2104 = vst [vmem:[#allocation11_spill] sm:$0xff] %v1523_v46  ;;  %v498_v2 = vsel %vm130_vm7, %v1520_v45, 0.0  ;;  %v500_v8 = vsel %vm130_vm7, %v1523_v46, 0.0  ;;  %v502_v26 = vsel %vm130_vm7, %v1532_v51, 0.0  ;;  %v504_v29 = vsel %vm130_vm7, %v1535_v52, 0.0 }
  0x18   :  { %2105 = vst [vmem:[#allocation12_spill] sm:$0xff] %v1532_v51  ;;  %2106 = vst [vmem:[#allocation13_spill] sm:$0xff] %v1535_v52  ;;  %142 = vadd.xlane.f32.xlu0 %v141_v3  ;;  %v499_v21 = vadd.f32 %v498_v2, %v497_v1  ;;  %v506_v32 = vsel %vm130_vm7, %v1538_v53, 0.0  ;;  %v1078_v36 = vadd.f32 %v1077_v30, %v1076_v60  ;;  %v616_v31 = vand.u32 2147483647, %v613_v38  ;;  %v34_v3 = vld [vmem:[%s2074_s1 + $0x10] sm:$0xff] }
  0x19   :  { %2107 = vst [vmem:[#allocation14_spill] sm:$0xff] %v1538_v53  ;;  %v614_v42 = vsub.f32 %v1214_v47, %v1217_v54  ;;  %v615_v0 = vsub.f32 %v1215_v48, %v1218_v55  ;;  %v662_v2 = vcombine.low %v1406_v22, %v1409_v23  ;;  %v36_v35 = vsub.f32 %v29_v56, %v32_v14 }
  0x1a   :  { %v501_v1 = vadd.f32 %v500_v8, %v499_v21  ;;  %v37_v34 = vsub.f32 %v30_v9, %v33_v16  ;;  %v1080_v10 = vadd.f32 %v1079_v33, %v1078_v36  ;;  %vm619_vm10 = vcmp.lt.f32.partialorder %v616_v31, 1.0 }
  0x1b   :  { %v617_v6 = vand.u32 2147483647, %v614_v42  ;;  %v618_v30 = vand.u32 2147483647, %v615_v0  ;;  %v622_v38 = vmul.f32 0.5, %v616_v31  ;;  %v1220_v48 = vadd.f32 -0.5, %v616_v31 }
  0x1c   :  { %v503_v47 = vadd.f32 %v502_v26, %v501_v1  ;;  %v38_v54 = vsub.f32 %v31_v50, %v34_v3  ;;  %1081 = vadd.xlane.f32.xlu1 %v1080_v10  ;;  %v39_v56 = vand.u32 2147483647, %v36_v35  ;;  %v40_v33 = vand.u32 2147483647, %v37_v34  ;;  %v514_v42 = vld [vmem:[%s2075_s4] sm:$0xf] }
  0x1d   :  { %vm620_vm11 = vcmp.lt.f32.partialorder %v617_v6, 1.0  ;;  %vm621_vm12 = vcmp.lt.f32.partialorder %v618_v30, 1.0  ;;  %v623_v55 = vmul.f32 0.5, %v617_v6  ;;  %v624_v60 = vmul.f32 0.5, %v618_v30  ;;  %v515_v3 = vld [vmem:[%s2076_s5] sm:$0xf] }
  0x1e   :  { %v505_v53 = vadd.f32 %v504_v29, %v503_v47  ;;  %v625_v8 = vmul.f32 %v622_v38, %v616_v31  ;;  %v1221_v21 = vadd.f32 -0.5, %v617_v6  ;;  %v1222_v52 = vadd.f32 -0.5, %v618_v30 }
  0x1f   :  { %v626_v22 = vmul.f32 %v623_v55, %v617_v6  ;;  %v627_v23 = vmul.f32 %v624_v60, %v618_v30  ;;  %v87_v0 = vcombine.low %v1453_v43, %v1465_v49  ;;  %vm103_vm13 = vcmask 1043456  }
  0x20   :  { %v507_v9 = vadd.f32 %v506_v32, %v505_v53  ;;  %v631_v50 = vsel %vm619_vm10, %v625_v8, %v1220_v48  ;;  %v41_v26 = vand.u32 2147483647, %v38_v54  ;;  %v2108_v29 = vcombine.low %v1412_v24, %v1415_v25  ;;  %v1227_v53 = vld [vmem:[%s2075_s4 + $0x4] sm:$0xf] }
  0x21   :  { %v632_v10 = vsel %vm620_vm11, %v626_v22, %v1221_v21  ;;  %v633_v14 = vsel %vm621_vm12, %v627_v23, %v1222_v52  ;;  %v668_v16 = vmul.f32 %v662_v2, %v631_v50  ;;  %v2109_v34 = vcombine.low %v1419_v27, %v1422_v28  ;;  %v1228_v25 = vld [vmem:[%s2076_s5 + $0x4] sm:$0xf] }
  0x22   :  { %508 = vadd.xlane.f32.xlu0 %v507_v9  ;;  %v669_v36 = vmul.f32 %v2108_v29, %v632_v10  ;;  %vm42_vm14 = vcmp.lt.f32.partialorder %v39_v56, 1.0  ;;  %v85_v31 = vcombine.low %v1439_v37, %v1442_v39  ;;  %v45_v49 = vmul.f32 0.5, %v39_v56 }
  0x23   :  { %v670_v35 = vmul.f32 %v2109_v34, %v633_v14  ;;  %v674_v43 = vcombine.high %v668_v16, %v668_v16  ;;  %v680_v6 = vsel %vm103_vm13, %v668_v16, 0.0  ;;  %v46_v52 = vmul.f32 0.5, %v40_v33 }
  0x24   :  { %v675_v32 = vcombine.high %v669_v36, %v669_v36  ;;  %v683_v24 = vsel %vm103_vm13, %v669_v36, 0.0  ;;  %vm43_vm15 = vcmp.lt.f32.partialorder %v40_v33, 1.0  ;;  %vm44_vm1 = vcmp.lt.f32.partialorder %v41_v26, 1.0 }
  0x25   :  { %v681_v27 = vsel %vm103_vm13, %v674_v43, 0.0  ;;  %v47_v28 = vmul.f32 0.5, %v41_v26  ;;  %v48_v37 = vmul.f32 %v45_v49, %v39_v56  ;;  %v49_v39 = vmul.f32 %v46_v52, %v40_v33 }
  0x26   :  { %v676_v1 = vcombine.high %v670_v35, %v670_v35  ;;  %v682_v2 = vadd.f32 %v681_v27, %v680_v6  ;;  %v687_v30 = vsel %vm103_vm13, %v670_v35, 0.0  ;;  %v1205_v47 = vadd.f32 -0.5, %v39_v56 }
  0x27   :  { %v685_v38 = vsel %vm103_vm13, %v675_v32, 0.0  ;;  %v50_v48 = vmul.f32 %v47_v28, %v41_v26  ;;  %v1206_v54 = vadd.f32 -0.5, %v40_v33  ;;  %v1207_v55 = vadd.f32 -0.5, %v41_v26 }
  0x28   :  { %v684_v60 = vadd.f32 %v683_v24, %v682_v2  ;;  %v54_v8 = vsel %vm42_vm14, %v48_v37, %v1205_v47  ;;  %v1093_v21 = vsub.f32 %v1227_v53, %v1228_v25  ;;  %v517_v22 = vsub.f32 %v514_v42, %v515_v3  ;;  %v1623_v24 = vld [vmem:[%s2077_s3 + $0xc] sm:$0xff] }
  0x29   :  { %v55_v23 = vsel %vm43_vm15, %v49_v39, %v1206_v54  ;;  %v56_v9 = vsel %vm44_vm1, %v50_v48, %v1207_v55  ;;  %v91_v50 = vmul.f32 %v85_v31, %v54_v8  ;;  %v2110_v14 = vcombine.low %v1445_v40, %v1448_v41  ;;  %v1638_v55 = vld [vmem:[%s2077_s3 + $0x14] sm:$0xf] }
  0x2a   :  { %v686_v10 = vadd.f32 %v685_v38, %v684_v60  ;;  %v93_v29 = vmul.f32 %v87_v0, %v56_v9  ;;  %v1094_v36 = vand.u32 2147483647, %v1093_v21  ;;  %v689_v34 = vsel %vm103_vm13, %v676_v1, 0.0 }
  0x2b   :  { %v92_v16 = vmul.f32 %v2110_v14, %v55_v23  ;;  %v97_v35 = vcombine.high %v91_v50, %v91_v50  ;;  %v104_v56 = vsel %vm103_vm13, %v91_v50, 0.0  ;;  %v518_v43 = vand.u32 2147483647, %v517_v22 }
  0x2c   :  { %v531_v33 = vrot.slane %v1355_v5, %v1381_v13  ;;  %v688_v6 = vadd.f32 %v687_v30, %v686_v10  ;;  %v1299_v49 = vmov 1983009808   ;;  %vm534_vm2 = vcmask 257024  }
  0x2d   :  { %v98_v26 = vcombine.high %v92_v16, %v92_v16  ;;  %v154_v31 = vunpack.c.l.s4 %v1299_v49  ;;  %v105_v52 = vsel %vm103_vm13, %v97_v35, 0.0  ;;  %v107_v40 = vsel %vm103_vm13, %v92_v16, 0.0 }
  0x2e   :  { %v1096_v41 = vmul.f32 0.5, %v1094_v36  ;;  %v690_v0 = vadd.f32 %v689_v34, %v688_v6  ;;  %v99_v53 = vcombine.high %v93_v29, %v93_v29  ;;  %v106_v32 = vadd.f32 %v105_v52, %v104_v56 }
  0x2f   :  { %vm1095_vm3 = vcmp.lt.f32.partialorder %v1094_v36, 1.0  ;;  %v109_v5 = vsel %vm103_vm13, %v98_v26, 0.0  ;;  %v1230_v27 = vadd.f32 -0.5, %v1094_v36  ;;  %v520_v28 = vmul.f32 0.5, %v518_v43 }
  0x30   :  { %v1097_v25 = vmul.f32 %v1096_v41, %v1094_v36  ;;  %691 = vadd.xlane.f32.xlu1 %v690_v0  ;;  %v108_v37 = vadd.f32 %v107_v40, %v106_v32  ;;  %vm519_vm4 = vcmp.lt.f32.partialorder %v518_v43, 1.0  ;;  %v1210_v39 = vadd.f32 -0.5, %v518_v43 }
  0x31   :  { %v155_v42 = vunpack.c.0.s8 %v154_v31  ;;  %v111_v3 = vsel %vm103_vm13, %v93_v29, 0.0  ;;  %v521_v2 = vmul.f32 %v520_v28, %v518_v43  ;;  %v728_v30 = vcombine.high %v1623_v24, %v1623_v24 }
  0x32   :  { %v1099_v1 = vsel %vm1095_vm3, %v1097_v25, %v1230_v27  ;;  %v110_v47 = vadd.f32 %v109_v5, %v108_v37  ;;  %v2111_v38 = vrot.slane %v1352_v4, %v1381_v13  ;;  %v113_v60 = vsel %vm103_vm13, %v99_v53, 0.0 }
  0x33   :  { %v1633_v54 = vsub.s32 %v155_v42, %v1361_v7  ;;  %v523_v8 = vsel %vm519_vm4, %v521_v2, %v1210_v39  ;;  %vm183_vm5 = vcmask 1041408   ;;  %v936_v10 = vrot.slane %v1373_v11, %v1381_v13 }
  0x34   :  { %v1109_v48 = vmul.f32 %v2111_v38, %v1099_v1  ;;  %v112_v21 = vadd.f32 %v111_v3, %v110_v47  ;;  %v533_v23 = vmul.f32 %v531_v33, %v523_v8  ;;  %v940_v14 = vrot.slane %v1373_v11, %v1386_v15 }
  0x35   :  { %v1644_v4 = vrot.slane %v1623_v24, %v1633_v54  ;;  %v1647_v9 = vrot.slane %v728_v30, %v1633_v54  ;;  %v1651_v50 = vrot.slane %v1638_v55, %v1633_v54  ;;  %v944_v34 = vrot.slane %v1373_v11, %v1391_v17 }
  0x36   :  { %v1110_v22 = vsel %vm534_vm2, %v1109_v48, 0.0  ;;  %v114_v16 = vadd.f32 %v113_v60, %v112_v21  ;;  %v535_v6 = vsel %vm534_vm2, %v533_v23, 0.0  ;;  %v948_v25 = vrot.slane %v1373_v11, %v1394_v18 }
  0x37   :  { %1111 = vadd.xlane.f32.xlu1 %v1110_v22  ;;  %v743_v29 = vcombine.high %v1644_v4, %v1644_v4  ;;  %v759_v36 = vsel %vm183_vm5, %v1644_v4, -inf  ;;  %v1665_v35 = vcombine.high %v1647_v9, %v1647_v9  ;;  %v1669_v56 = vcombine.high %v1651_v50, %v1651_v50 }
  0x38   :  { %v760_v43 = vrot.slane %v759_v36, 4  ;;  %v773_v33 = vsel %vm183_vm5, %v1647_v9, -inf  ;;  %115 = vadd.xlane.f32.xlu0 %v114_v16  ;;  %v787_v31 = vsel %vm183_vm5, %v1651_v50, -inf  ;;  %vm1684_vm6 = vcmp.eq.s32.totalorder %v1361_v7, %v936_v10 }
  0x39   :  { %v766_v26 = vsel %vm183_vm5, %v743_v29, -inf  ;;  %v774_v49 = vrot.slane %v773_v33, 4  ;;  %v780_v41 = vsel %vm183_vm5, %v1665_v35, -inf  ;;  %v788_v0 = vrot.slane %v787_v31, 4 }
  0x3a   :  { %v761_v52 = vmax.f32 %v759_v36, %v760_v43  ;;  %v767_v40 = vrot.slane %v766_v26, 4  ;;  %v781_v32 = vrot.slane %v780_v41, 4  ;;  %v794_v5 = vsel %vm183_vm5, %v1669_v56, -inf }
  0x3b   :  { %v775_v53 = vmax.f32 %v773_v33, %v774_v49  ;;  %v789_v37 = vmax.f32 %v787_v31, %v788_v0  ;;  %v795_v39 = vrot.slane %v794_v5, 4  ;;  %vm1689_vm8 = vcmp.eq.s32.totalorder %v1361_v7, %v940_v14 }
  0x3c   :  { %v762_v27 = vrot.slane %v761_v52, 2  ;;  %v768_v28 = vmax.f32 %v766_v26, %v767_v40  ;;  %536 = vadd.xlane.f32.xlu0 %v535_v6  ;;  %v782_v3 = vmax.f32 %v780_v41, %v781_v32  ;;  %v952_v21 = vrot.slane %v1373_v11, %v1397_v19 }
  0x3d   :  { %v776_v42 = vrot.slane %v775_v53, 2  ;;  %v790_v38 = vrot.slane %v789_v37, 2  ;;  %v796_v48 = vmax.f32 %v794_v5, %v795_v39  ;;  %vm1696_vm9 = vcmp.eq.s32.totalorder %v1361_v7, %v944_v34 }
  0x3e   :  { %v763_v30 = vmax.f32 %v761_v52, %v762_v27  ;;  %v769_v47 = vrot.slane %v768_v28, 2  ;;  %v783_v8 = vrot.slane %v782_v3, 2  ;;  %v963_v33 = vsel %vm1684_vm6, %v1644_v4, 0.0 }
  0x3f   :  { %v777_v60 = vmax.f32 %v775_v53, %v776_v42  ;;  %v791_v14 = vmax.f32 %v789_v37, %v790_v38  ;;  %v797_v16 = vrot.slane %v796_v48, 2  ;;  %v964_v6 = vsel %vm1689_vm8, %v743_v29, 0.0 }
  0x40   :  { %v764_v23 = vrot.slane %v763_v30, 1  ;;  %v770_v10 = vmax.f32 %v768_v28, %v769_v47  ;;  %v784_v43 = vmax.f32 %v782_v3, %v783_v8  ;;  %v965_v41 = vsel %vm1696_vm9, %v1647_v9, 0.0 }
  0x41   :  { %v778_v36 = vrot.slane %v777_v60, 1  ;;  %v792_v34 = vrot.slane %v791_v14, 1  ;;  %v798_v31 = vmax.f32 %v796_v48, %v797_v16  ;;  %vm1719_vm10 = vcmp.eq.s32.totalorder %v1361_v7, %v948_v25 }
  0x42   :  { %v1705_v26 = vmax.f32 %v763_v30, %v764_v23  ;;  %v771_v49 = vrot.slane %v770_v10, 1  ;;  %v785_v40 = vrot.slane %v784_v43, 1  ;;  %v969_v5 = vsel %vm183_vm5, %v963_v33, 0.0 }
  0x43   :  { %v1707_v52 = vmax.f32 %v777_v60, %v778_v36  ;;  %v1714_v53 = vmax.f32 %v791_v14, %v792_v34  ;;  %v799_v4 = vrot.slane %v798_v31, 1  ;;  %v976_v27 = vsel %vm183_vm5, %v964_v6, 0.0  ;;  %v1765_v6 = vld [vmem:[%s2077_s3] sm:$0xff] }
  0x44   :  { %v1712_v0 = vmax.f32 %v770_v10, %v771_v49  ;;  %v1716_v32 = vmax.f32 %v784_v43, %v785_v40  ;;  %vm1730_vm11 = vcmp.eq.s32.totalorder %v1361_v7, %v952_v21  ;;  %v983_v39 = vsel %vm183_vm5, %v965_v41, 0.0 }
  0x45   :  { %v1725_v28 = vmax.f32 %v798_v31, %v799_v4  ;;  %v956_v42 = vrot.slane %v1373_v11, %v1400_v20  ;;  %v970_v3 = vrot.slane %v969_v5, 4  ;;  %v966_v30 = vsel %vm1719_vm10, %v1665_v35, 0.0  ;;  %v1770_v31 = vld [vmem:[%s2077_s3 + $0x8] sm:$0xf] }
  0x46   :  { %v807_v9 = vcombine.low %v1705_v26, %v1712_v0  ;;  %v808_v25 = vcombine.low %v1707_v52, %v1716_v32  ;;  %v977_v47 = vrot.slane %v976_v27, 4  ;;  %v967_v48 = vsel %vm1730_vm11, %v1651_v50, 0.0 }
  0x47   :  { %2120 = vst [vmem:[#allocation15_spill] sm:$0xff] %v1725_v28  ;;  %v824_v2 = vcombine.low %v1714_v53, %v1725_v28  ;;  %v984_v60 = vrot.slane %v983_v39, 4  ;;  %vm1751_vm12 = vcmp.eq.s32.totalorder %v1361_v7, %v956_v42  ;;  %v971_v22 = vadd.f32 %v970_v3, %v969_v5 }
  0x48   :  { %v815_v1 = vrot.slane %v807_v9, %v1633_v54  ;;  %v822_v38 = vrot.slane %v808_v25, %v1633_v54  ;;  %v990_v23 = vsel %vm183_vm5, %v966_v30, 0.0  ;;  %v978_v10 = vadd.f32 %v977_v47, %v976_v27 }
  0x49   :  { %v831_v11 = vrot.slane %v824_v2, %v1633_v54  ;;  %v997_v14 = vsel %vm183_vm5, %v967_v48, 0.0  ;;  %v985_v50 = vadd.f32 %v984_v60, %v983_v39  ;;  %v968_v43 = vsel %vm1751_vm12, %v1669_v56, 0.0 }
  0x4a   :  { %v823_v8 = vcombine.low %v815_v1, %v822_v38  ;;  %v991_v33 = vrot.slane %v990_v23, 4  ;;  %v972_v34 = vrot.slane %v971_v22, 2  ;;  %v1004_v56 = vsel %vm183_vm5, %v968_v43, 0.0 }
  0x4b   :  { %v835_v35 = vsub.f32 %v1638_v55, %v831_v11  ;;  %v998_v55 = vrot.slane %v997_v14, 4  ;;  %v986_v40 = vrot.slane %v985_v50, 2  ;;  %v152_v4 = vcombine.high %v1765_v6, %v1765_v6 }
  0x4c   :  { %v834_v16 = vsub.f32 %v1623_v24, %v823_v8  ;;  %v979_v24 = vrot.slane %v978_v10, 2  ;;  %v1773_v41 = vadd.f32 %v991_v33, %v990_v23  ;;  %v1779_v29 = vrot.slane %v1765_v6, %v1633_v54 }
  0x4d   :  { %v838_v36 = vmul.f32 1.442695, %v835_v35  ;;  %v1783_v5 = vrot.slane %v1770_v31, %v1633_v54  ;;  %v1785_v27 = vadd.f32 %v972_v34, %v971_v22  ;;  %v1787_v9 = vadd.f32 %v998_v55, %v997_v14 }
  0x4e   :  { %v836_v49 = vmul.f32 1.442695, %v834_v16  ;;  %v1789_v37 = vadd.f32 %v979_v24, %v978_v10  ;;  %v1792_v39 = vrot.slane %v152_v4, %v1633_v54  ;;  %v1796_v25 = vcombine.high %v1779_v29, %v1779_v29 }
  0x4f   :  { %1238 = vpow2.f32 %v838_v36  ;;  %v1800_v42 = vcombine.high %v1783_v5, %v1783_v5  ;;  %v1802_v3 = vadd.f32 %v986_v40, %v985_v50  ;;  %v1005_v1 = vrot.slane %v1004_v56, 4 }
  0x50   :  { %1240 = vpow2.f32 %v836_v49  ;;  %v184_v2 = vsel %vm183_vm5, %v1779_v29, -inf  ;;  %v212_v30 = vsel %vm183_vm5, %v1783_v5, -inf  ;;  %v1811_v38 = vcombine.high %v1792_v39, %v1792_v39 }
  0x51   :  { %v185_v48 = vrot.slane %v184_v2, 4  ;;  %v191_v60 = vsel %vm183_vm5, %v1796_v25, -inf  ;;  %v198_v8 = vsel %vm183_vm5, %v1792_v39, -inf  ;;  %v213_v21 = vrot.slane %v212_v30, 4 }
  0x52   :  { %v192_v11 = vrot.slane %v191_v60, 4  ;;  %v219_v22 = vsel %vm183_vm5, %v1800_v42, -inf  ;;  %v199_v35 = vrot.slane %v198_v8, 4  ;;  %v205_v10 = vsel %vm183_vm5, %v1811_v38, -inf }
  0x53   :  { %v186_v23 = vmax.f32 %v184_v2, %v185_v48  ;;  %v220_v14 = vrot.slane %v219_v22, 4  ;;  %v206_v36 = vrot.slane %v205_v10, 4  ;;  %v214_v43 = vmax.f32 %v212_v30, %v213_v21 }
  0x54   :  { %v193_v50 = vmax.f32 %v191_v60, %v192_v11  ;;  %v200_v34 = vmax.f32 %v198_v8, %v199_v35  ;;  %v1823_v24 = vadd.f32 %v1005_v1, %v1004_v56  ;;  %vm554_vm6 = vcmask 258048  }
  0x55   :  { %v187_v49 = vrot.slane %v186_v23, 2  ;;  %v221_v55 = vmax.f32 %v219_v22, %v220_v14  ;;  %v207_v4 = vmax.f32 %v205_v10, %v206_v36  ;;  %v215_v2 = vrot.slane %v214_v43, 2 }
  0x56   :  { %v194_v40 = vrot.slane %v193_v50, 2  ;;  %v201_v47 = vrot.slane %v200_v34, 2 }
  0x57   :  { %v188_v48 = vmax.f32 %v186_v23, %v187_v49  ;;  %v222_v51 = vrot.slane %v221_v55, 2  ;;  %v208_v11 = vrot.slane %v207_v4, 2  ;;  %v216_v30 = vmax.f32 %v214_v43, %v215_v2 }
  0x58   :  { %v195_v60 = vmax.f32 %v193_v50, %v194_v40  ;;  %v202_v22 = vmax.f32 %v200_v34, %v201_v47 }
  0x59   :  { %v189_v1 = vrot.slane %v188_v48, 1  ;;  %v223_v35 = vmax.f32 %v221_v55, %v222_v51  ;;  %v209_v36 = vmax.f32 %v207_v4, %v208_v11  ;;  %v217_v63 = vrot.slane %v216_v30, 1 }
  0x5a   :  { %v196_v14 = vrot.slane %v195_v60, 1  ;;  %v203_v43 = vrot.slane %v202_v22, 1 }
  0x5b   :  { %v1832_v50 = vmax.f32 %v188_v48, %v189_v1  ;;  %v210_v44 = vrot.slane %v209_v36, 1 }
  0x5c   :  { %v1239_v16 = vpop.eup %1238  ;;  %v1837_v47 = vmax.f32 %v195_v60, %v196_v14  ;;  %v1839_v34 = vmax.f32 %v202_v22, %v203_v43 }
  0x5d   :  { %v1241_v8 = vpop.eup %1240  ;;  %v865_v56 = vrot.slane %v1239_v16, %v1633_v54  ;;  %v1844_v59 = vmax.f32 %v209_v36, %v210_v44 }
  0x5e   :  { %v842_v10 = vcombine.high %v1241_v8, %v1241_v8  ;;  %v849_v23 = vrot.slane %v1241_v8, %v1633_v54  ;;  %v232_v62 = vcombine.low %v1832_v50, %v1837_v47 }
  0x5f   :  { %v866_v49 = vcombine.high %v865_v56, %v865_v56  ;;  %v901_v33 = vsel %vm183_vm5, %v865_v56, 0.0 }
  0x60   :  { %v856_v40 = vrot.slane %v842_v10, %v1633_v54  ;;  %v857_v2 = vcombine.high %v849_v23, %v849_v23  ;;  %v873_v21 = vsel %vm183_vm5, %v849_v23, 0.0  ;;  %v902_v16 = vrot.slane %v901_v33, 4 }
  0x61   :  { %v874_v46 = vrot.slane %v873_v21, 4  ;;  %v908_v51 = vsel %vm183_vm5, %v866_v49, 0.0 }
  0x62   :  { %v858_v55 = vcombine.high %v856_v40, %v856_v40  ;;  %v880_v4 = vsel %vm183_vm5, %v857_v2, 0.0  ;;  %v887_v48 = vsel %vm183_vm5, %v856_v40, 0.0  ;;  %v903_v11 = vadd.f32 %v902_v16, %v901_v33 }
  0x63   :  { %v875_v8 = vadd.f32 %v874_v46, %v873_v21  ;;  %v881_v56 = vrot.slane %v880_v4, 4  ;;  %v888_v1 = vrot.slane %v887_v48, 4  ;;  %v909_v10 = vrot.slane %v908_v51, 4 }
  0x64   :  { %v894_v23 = vsel %vm183_vm5, %v858_v55, 0.0  ;;  %v904_v45 = vrot.slane %v903_v11, 2  ;;  %v1846_v2 = vmax.f32 %v216_v30, %v217_v63  ;;  %v224_v55 = vrot.slane %v223_v35, 1 }
  0x65   :  { %v876_v49 = vrot.slane %v875_v8, 2  ;;  %v882_v60 = vadd.f32 %v881_v56, %v880_v4  ;;  %v889_v14 = vadd.f32 %v888_v1, %v887_v48  ;;  %v895_v22 = vrot.slane %v894_v23, 4 }
  0x66   :  { %v905_v43 = vadd.f32 %v904_v45, %v903_v11  ;;  %v910_v61 = vadd.f32 %v909_v10, %v908_v51  ;;  %v1850_v44 = vmax.f32 %v223_v35, %v224_v55  ;;  %v233_v63 = vcombine.low %v1839_v34, %v1844_v59 }
  0x67   :  { %v877_v33 = vadd.f32 %v876_v49, %v875_v8  ;;  %v883_v46 = vrot.slane %v882_v60, 2  ;;  %v890_v21 = vrot.slane %v889_v14, 2  ;;  %v896_v40 = vadd.f32 %v895_v22, %v894_v23 }
  0x68   :  { %v906_v16 = vrot.slane %v905_v43, 1  ;;  %v911_v58 = vrot.slane %v910_v61, 2  ;;  %v240_v10 = vrot.slane %v232_v62, %v1633_v54  ;;  %v247_v23 = vrot.slane %v233_v63, %v1633_v54 }
  0x69   :  { %v878_v28 = vrot.slane %v877_v33, 1  ;;  %v884_v4 = vadd.f32 %v883_v46, %v882_v60  ;;  %v891_v48 = vadd.f32 %v890_v21, %v889_v14  ;;  %v897_v56 = vrot.slane %v896_v40, 2 }
  0x6a   :  { %v907_v45 = vadd.f32 %v906_v16, %v905_v43  ;;  %v912_v51 = vadd.f32 %v911_v58, %v910_v61  ;;  %v2125_v61 = vrot.slane %v1773_v41, 2  ;;  %v248_v22 = vcombine.low %v240_v10, %v247_v23 }
  0x6b   :  { %v879_v30 = vadd.f32 %v878_v28, %v877_v33  ;;  %v885_v36 = vrot.slane %v884_v4, 1  ;;  %v892_v11 = vrot.slane %v891_v48, 1  ;;  %v898_v8 = vadd.f32 %v897_v56, %v896_v40 }
  0x6c   :  { %v913_v1 = vrot.slane %v912_v51, 1  ;;  %1242 = vlog2.f32 %v907_v45  ;;  %v994_v35 = vadd.f32 %v2125_v61, %v1773_v41  ;;  %v249_v28 = vcombine.low %v1846_v2, %v1850_v44 }
  0x6d   :  { %v886_v49 = vadd.f32 %v885_v36, %v884_v4  ;;  %v893_v60 = vadd.f32 %v892_v11, %v891_v48  ;;  %v899_v14 = vrot.slane %v898_v8, 1  ;;  %1244 = vlog2.f32 %v879_v30 }
  0x6e   :  { %v914_v58 = vadd.f32 %v913_v1, %v912_v51  ;;  %v1007_v33 = vrot.slane %v1823_v24, 2  ;;  %v371_v62 = vrot.slane %v1378_v12, %v1391_v17  ;;  %v256_v46 = vrot.slane %v249_v28, %v1633_v54 }
  0x6f   :  { %v900_v43 = vadd.f32 %v899_v14, %v898_v8  ;;  %1246 = vlog2.f32 %v886_v49  ;;  %v259_v21 = vsub.f32 %v1765_v6, %v248_v22  ;;  %v2126_v40 = vrot.slane %v1378_v12, %v1381_v13 }
  0x70   :  { %1248 = vlog2.f32 %v893_v60  ;;  %v2129_v16 = vrot.slane %v1787_v9, 2  ;;  %v375_v17 = vrot.slane %v1378_v12, %v1394_v18  ;;  %v2130_v4 = vrot.slane %v1378_v12, %v1386_v15 }
  0x71   :  { %vm1870_vm14 = vcmp.eq.s32.totalorder %v1361_v7, %v2126_v40  ;;  %1250 = vlog2.f32 %v900_v43  ;;  %v260_v13 = vsub.f32 %v1770_v31, %v256_v46  ;;  %v261_v48 = vmul.f32 1.442695, %v259_v21  ;;  %v1943_v43 = vld [vmem:[%s2078_s7 + $0x8] sm:$0x1f] }
  0x72   :  { %v1001_v55 = vadd.f32 %v2129_v16, %v1787_v9  ;;  %vm1883_vm15 = vcmp.eq.s32.totalorder %v1361_v7, %v2130_v4  ;;  %1252 = vlog2.f32 %v914_v58  ;;  %v379_v56 = vrot.slane %v1378_v12, %v1397_v19 }
  0x73   :  { %v1008_v9 = vadd.f32 %v1007_v33, %v1823_v24  ;;  %v383_v18 = vrot.slane %v1378_v12, %v1400_v20  ;;  %vm1894_vm1 = vcmp.eq.s32.totalorder %v1361_v7, %v371_v62  ;;  %v390_v45 = vsel %vm1870_vm14, %v1779_v29, 0.0 }
  0x74   :  { %v981_v31 = vrot.slane %v1789_v37, 1  ;;  %1254 = vpow2.f32 %v261_v48  ;;  %v263_v51 = vmul.f32 1.442695, %v260_v13  ;;  %v391_v19 = vsel %vm1883_vm15, %v1796_v25, 0.0 }
  0x75   :  { %v988_v24 = vrot.slane %v1802_v3, 1  ;;  %v1002_v12 = vrot.slane %v1001_v55, 1  ;;  %vm1907_vm2 = vcmp.eq.s32.totalorder %v1361_v7, %v375_v17  ;;  %vm1912_vm3 = vcmp.eq.s32.totalorder %v1361_v7, %v379_v56 }
  0x76   :  { %1256 = vpow2.f32 %v263_v51  ;;  %v392_v63 = vsel %vm1894_vm1, %v1792_v39, 0.0  ;;  %v396_v25 = vsel %vm183_vm5, %v390_v45, 0.0  ;;  %v995_v30 = vrot.slane %v994_v35, 1 }
  0x77   :  { %v1009_v36 = vrot.slane %v1008_v9, 1  ;;  %vm1921_vm4 = vcmp.eq.s32.totalorder %v1361_v7, %v383_v18  ;;  %v403_v8 = vsel %vm183_vm5, %v391_v19, 0.0  ;;  %v2141_v1 = vrot.slane %v1785_v27, 1 }
  0x78   :  { %v982_v23 = vadd.f32 %v981_v31, %v1789_v37  ;;  %v393_v39 = vsel %vm1907_vm2, %v1811_v38, 0.0  ;;  %v394_v60 = vsel %vm1912_vm3, %v1783_v5, 0.0  ;;  %v397_v14 = vrot.slane %v396_v25, 4 }
  0x79   :  { %v975_v10 = vadd.f32 %v2141_v1, %v1785_v27  ;;  %v1243_v49 = vpop.eup %1242  ;;  %v410_v58 = vsel %vm183_vm5, %v392_v63, 0.0  ;;  %v1003_v28 = vadd.f32 %v1002_v12, %v1001_v55  ;;  %v395_v27 = vsel %vm1921_vm4, %v1800_v42, 0.0 }
  0x7a   :  { %v1245_v61 = vpop.eup %1244  ;;  %v924_v22 = vmul.f32 0.6931472, %v1243_v49  ;;  %v404_v37 = vrot.slane %v403_v8, 4  ;;  %v989_v33 = vadd.f32 %v988_v24, %v1802_v3  ;;  %v996_v5 = vadd.f32 %v995_v30, %v994_v35 }
  0x7b   :  { %v916_v38 = vmul.f32 0.6931472, %v1245_v61  ;;  %v1010_v62 = vadd.f32 %v1009_v36, %v1008_v9  ;;  %v411_v40 = vrot.slane %v410_v58, 4  ;;  %v1948_v41 = vsel %vm183_vm5, %v393_v39, 0.0  ;;  %v2143_v36 = vld [vmem:[#allocation7_spill] sm:$0xff]  ;;  %v2146_v61 = vld [vmem:[#allocation6_spill] sm:$0xff] }
  0x7c   :  { %v1247_v46 = vpop.eup %1246  ;;  %v931_v21 = vadd.f32 %v924_v22, %v1714_v53  ;;  %v1951_v42 = vsel %vm183_vm5, %v394_v60, 0.0  ;;  %v1954_v4 = vadd.f32 %v397_v14, %v396_v25  ;;  %v1957_v3 = vsel %vm183_vm5, %v395_v27, 0.0  ;;  %v2142_v25 = vld [vmem:[#allocation15_spill] sm:$0xff] }
  0x7d   :  { %v1249_v16 = vpop.eup %1248  ;;  %v918_v55 = vmul.f32 0.6931472, %v1247_v46  ;;  %v927_v17 = vadd.f32 %v916_v38, %v1705_v26  ;;  %v1959_v53 = vadd.f32 %v404_v37, %v403_v8  ;;  %v1963_v48 = vsel %vm554_vm6, %v1943_v43, -inf  ;;  %v2147_v38 = vld [vmem:[#allocation8_spill] sm:$0xff] }
  0x7e   :  { %v1251_v35 = vpop.eup %1250  ;;  %v920_v6 = vmul.f32 0.6931472, %v1249_v16  ;;  %v1015_v13 = vsub.f32 %v931_v21, %v1003_v28  ;;  %v418_v26 = vrot.slane %v1948_v41, 4  ;;  %v1968_v51 = vadd.f32 %v411_v40, %v410_v58 }
  0x7f   :  { %v1253_v56 = vpop.eup %1252  ;;  %v922_v9 = vmul.f32 0.6931472, %v1251_v35  ;;  %v928_v18 = vadd.f32 %v918_v55, %v1712_v0  ;;  %v1011_v15 = vsub.f32 %v927_v17, %v975_v10  ;;  %v425_v19 = vrot.slane %v1951_v42, 4  ;;  %v2144_v10 = vld [vmem:[#allocation4_spill] sm:$0xff] }
  0x80   :  { %v926_v45 = vmul.f32 0.6931472, %v1253_v56  ;;  %v929_v31 = vadd.f32 %v920_v6, %v1707_v52  ;;  %v1130_v63 = vrot.slane %v1963_v48, 4  ;;  %v1055_v11 = vmul.f32 %v2143_v36, %v1015_v13 }
  0x81   :  { %v1255_v24 = vpop.eup %1254  ;;  %v930_v12 = vadd.f32 %v922_v9, %v1716_v32  ;;  %v1012_v20 = vsub.f32 %v928_v18, %v982_v23  ;;  %v1051_v29 = vmul.f32 %v1476_v57, %v1011_v15  ;;  %v2145_v23 = vld [vmem:[#allocation5_spill] sm:$0xff] }
  0x82   :  { %v932_v0 = vadd.f32 %v926_v45, %v2142_v25  ;;  %v1013_v30 = vsub.f32 %v929_v31, %v989_v33  ;;  %v267_v8 = vcombine.high %v1255_v24, %v1255_v24  ;;  %v274_v60 = vrot.slane %v1255_v24, %v1633_v54 }
  0x83   :  { %v1257_v1 = vpop.eup %1256  ;;  %v1014_v52 = vsub.f32 %v930_v12, %v996_v5  ;;  %v1052_v49 = vmul.f32 %v2144_v10, %v1012_v20  ;;  %v1057_v39 = vsel %vm130_vm7, %v1051_v29, 0.0  ;;  %v1064_v17 = vsel %vm130_vm7, %v1055_v11, 0.0 }
  0x84   :  { %v1016_v32 = vsub.f32 %v932_v0, %v1010_v62  ;;  %v1053_v14 = vmul.f32 %v2145_v23, %v1013_v30  ;;  %v281_v57 = vrot.slane %v267_v8, %v1633_v54  ;;  %v290_v58 = vrot.slane %v1257_v1, %v1633_v54 }
  0x85   :  { %v1054_v22 = vmul.f32 %v2146_v61, %v1014_v52  ;;  %v1058_v28 = vsel %vm130_vm7, %v1052_v49, 0.0  ;;  %v282_v27 = vcombine.high %v274_v60, %v274_v60  ;;  %v298_v37 = vsel %vm183_vm5, %v274_v60, 0.0 }
  0x86   :  { %v1056_v33 = vmul.f32 %v2147_v38, %v1016_v32  ;;  %v1059_v5 = vadd.f32 %v1058_v28, %v1057_v39  ;;  %v1060_v46 = vsel %vm130_vm7, %v1053_v14, 0.0  ;;  %v283_v21 = vcombine.high %v281_v57, %v281_v57 }
  0x87   :  { %v1062_v62 = vsel %vm130_vm7, %v1054_v22, 0.0  ;;  %v291_v40 = vcombine.high %v290_v58, %v290_v58  ;;  %v299_v16 = vrot.slane %v298_v37, 4  ;;  %v305_v55 = vsel %vm183_vm5, %v282_v27, 0.0 }
  0x88   :  { %v1061_v54 = vadd.f32 %v1060_v46, %v1059_v5  ;;  %v306_v35 = vrot.slane %v305_v55, 4  ;;  %v312_v6 = vsel %vm183_vm5, %v281_v57, 0.0  ;;  %v319_v9 = vsel %vm183_vm5, %v283_v21, 0.0  ;;  %v2002_v46 = vld [vmem:[%s2078_s7] sm:$0x1f] }
  0x89   :  { %v300_v13 = vadd.f32 %v299_v16, %v298_v37  ;;  %v313_v56 = vrot.slane %v312_v6, 4  ;;  %v326_v18 = vsel %vm183_vm5, %v290_v58, 0.0  ;;  %v320_v31 = vrot.slane %v319_v9, 4 }
  0x8a   :  { %v1063_v15 = vadd.f32 %v1062_v62, %v1061_v54  ;;  %v307_v45 = vadd.f32 %v306_v35, %v305_v55  ;;  %v327_v24 = vrot.slane %v326_v18, 4  ;;  %v1066_v12 = vsel %vm130_vm7, %v1056_v33, 0.0 }
  0x8b   :  { %v301_v20 = vrot.slane %v300_v13, 2  ;;  %v314_v29 = vadd.f32 %v313_v56, %v312_v6  ;;  %v333_v25 = vsel %vm183_vm5, %v291_v40, 0.0  ;;  %v321_v36 = vadd.f32 %v320_v31, %v319_v9 }
  0x8c   :  { %v1065_v0 = vadd.f32 %v1064_v17, %v1063_v15  ;;  %v308_v30 = vrot.slane %v307_v45, 2  ;;  %v328_v11 = vadd.f32 %v327_v24, %v326_v18  ;;  %v334_v52 = vrot.slane %v333_v25, 4 }
  0x8d   :  { %v302_v8 = vadd.f32 %v301_v20, %v300_v13  ;;  %v315_v1 = vrot.slane %v314_v29, 2  ;;  %v432_v10 = vrot.slane %v1957_v3, 4  ;;  %v322_v60 = vrot.slane %v321_v36, 2 }
  0x8e   :  { %v1067_v49 = vadd.f32 %v1066_v12, %v1065_v0  ;;  %v309_v39 = vadd.f32 %v308_v30, %v307_v45  ;;  %v329_v32 = vrot.slane %v328_v11, 2  ;;  %v335_v57 = vadd.f32 %v334_v52, %v333_v25 }
  0x8f   :  { %v303_v23 = vrot.slane %v302_v8, 1  ;;  %v316_v14 = vadd.f32 %v315_v1, %v314_v29  ;;  %v399_v58 = vrot.slane %v1954_v4, 2  ;;  %v323_v22 = vadd.f32 %v322_v60, %v321_v36 }
  0x90   :  { %1068 = vadd.xlane.f32.xlu1 %v1067_v49  ;;  %v310_v61 = vrot.slane %v309_v39, 1  ;;  %v330_v28 = vadd.f32 %v329_v32, %v328_v11  ;;  %v1131_v27 = vmax.f32 %v1963_v48, %v1130_v63  ;;  %v336_v33 = vrot.slane %v335_v57, 2 }
  0x91   :  { %v304_v37 = vadd.f32 %v303_v23, %v302_v8  ;;  %v317_v38 = vrot.slane %v316_v14, 1  ;;  %v406_v5 = vrot.slane %v1959_v53, 2  ;;  %v324_v62 = vrot.slane %v323_v22, 1 }
  0x92   :  { %v311_v21 = vadd.f32 %v310_v61, %v309_v39  ;;  %v331_v40 = vrot.slane %v330_v28, 1  ;;  %v1132_v16 = vrot.slane %v1131_v27, 2  ;;  %v337_v54 = vadd.f32 %v336_v33, %v335_v57 }
  0x93   :  { %v318_v55 = vadd.f32 %v317_v38, %v316_v14  ;;  %1258 = vlog2.f32 %v304_v37  ;;  %v419_v48 = vadd.f32 %v418_v26, %v1948_v41  ;;  %v325_v63 = vadd.f32 %v324_v62, %v323_v22 }
  0x94   :  { %v332_v17 = vadd.f32 %v331_v40, %v330_v28  ;;  %1260 = vlog2.f32 %v311_v21  ;;  %v1133_v35 = vmax.f32 %v1131_v27, %v1132_v16  ;;  %v338_v6 = vrot.slane %v337_v54, 1  ;;  %v1296_v27 = vld [vmem:[%s2071_s6 + $0x1] ss:$0 sm:$0xff] }
  0x95   :  { %1262 = vlog2.f32 %v318_v55  ;;  %v426_v13 = vadd.f32 %v425_v19, %v1951_v42  ;;  %v555_v56 = vsel %vm554_vm6, %v2002_v46, -inf  ;;  %v433_v9 = vadd.f32 %v432_v10, %v1957_v3 }
  0x96   :  { %1264 = vlog2.f32 %v325_v63  ;;  %v1134_v18 = vrot.slane %v1133_v35, 1  ;;  %v556_v15 = vrot.slane %v555_v56, 4  ;;  %v339_v45 = vadd.f32 %v338_v6, %v337_v54 }
  0x97   :  { %1266 = vlog2.f32 %v332_v17  ;;  %v413_v41 = vrot.slane %v1968_v51, 2  ;;  %v420_v26 = vrot.slane %v419_v48, 2  ;;  %v400_v12 = vadd.f32 %v399_v58, %v1954_v4 }
  0x98   :  { %v2014_v31 = vmax.f32 %v1133_v35, %v1134_v18  ;;  %v557_v24 = vmax.f32 %v555_v56, %v556_v15  ;;  %1268 = vlog2.f32 %v339_v45  ;;  %v427_v42 = vrot.slane %v426_v13, 2  ;;  %v2148_v18 = vld [vmem:[#allocation9_spill] sm:$0xff]  ;;  %v2149_v45 = vld [vmem:[#allocation10_spill] sm:$0xff] }
  0x99   :  { %v407_v19 = vadd.f32 %v406_v5, %v1959_v53  ;;  %v434_v20 = vrot.slane %v433_v9, 2  ;;  %v414_v25 = vadd.f32 %v413_v41, %v1968_v51  ;;  %v421_v0 = vadd.f32 %v420_v26, %v419_v48 }
  0x9a   :  { %v1136_v3 = vsub.f32 %v1943_v43, %v2014_v31  ;;  %v558_v29 = vrot.slane %v557_v24, 2  ;;  %v401_v11 = vrot.slane %v400_v12, 1  ;;  %v428_v8 = vadd.f32 %v427_v42, %v426_v13 }
  0x9b   :  { %v408_v1 = vrot.slane %v407_v19, 1  ;;  %v435_v52 = vadd.f32 %v434_v20, %v433_v9  ;;  %v415_v4 = vrot.slane %v414_v25, 1  ;;  %v422_v39 = vrot.slane %v421_v0, 1 }
  0x9c   :  { %v1137_v30 = vmul.f32 1.442695, %v1136_v3  ;;  %v559_v36 = vmax.f32 %v557_v24, %v558_v29  ;;  %v402_v23 = vadd.f32 %v401_v11, %v400_v12  ;;  %v429_v14 = vrot.slane %v428_v8, 1  ;;  %v2150_v24 = vld [vmem:[#allocation11_spill] sm:$0xff]  ;;  %v2152_v29 = vld [vmem:[#allocation13_spill] sm:$0xff] }
  0x9d   :  { %v409_v58 = vadd.f32 %v408_v1, %v407_v19  ;;  %v436_v61 = vrot.slane %v435_v52, 1  ;;  %v416_v33 = vadd.f32 %v415_v4, %v414_v25  ;;  %v423_v40 = vadd.f32 %v422_v39, %v421_v0  ;;  %v1297_v4 = vld [vmem:[%s2071_s6] ss:$0 sm:$0xff] }
  0x9e   :  { %1270 = vpow2.f32 %v1137_v30  ;;  %v560_v10 = vrot.slane %v559_v36, 1  ;;  %v430_v48 = vadd.f32 %v429_v14, %v428_v8  ;;  %vm1153_vm5 = vcmp.eq.s32.totalorder %v1361_v7, %v1296_v27  ;;  %v2153_v8 = vld [vmem:[#allocation14_spill] sm:$0xff] }
  0x9f   :  { %v437_v6 = vadd.f32 %v436_v61, %v435_v52  ;;  %v1154_v11 = vsel %vm1153_vm5, %v1943_v43, 0.0  ;;  %vm579_vm8 = vcmp.eq.s32.totalorder %v1361_v7, %v1297_v4 }
  0xa0   :  { %v1259_v49 = vpop.eup %1258  ;;  %v2021_v53 = vmax.f32 %v559_v36, %v560_v10 }
  0xa1   :  { %v1261_v60 = vpop.eup %1260  ;;  %v341_v32 = vmul.f32 0.6931472, %v1259_v49 }
  0xa2   :  { %v1263_v57 = vpop.eup %1262  ;;  %v343_v51 = vmul.f32 0.6931472, %v1261_v60  ;;  %v562_v22 = vsub.f32 %v2002_v46, %v2021_v53 }
  0xa3   :  { %v1265_v28 = vpop.eup %1264  ;;  %v345_v37 = vmul.f32 0.6931472, %v1263_v57  ;;  %v352_v38 = vadd.f32 %v341_v32, %v1832_v50  ;;  %v1155_v32 = vsel %vm554_vm6, %v1154_v11, 0.0 }
  0xa4   :  { %v1267_v5 = vpop.eup %1266  ;;  %v347_v21 = vmul.f32 0.6931472, %v1265_v28  ;;  %v353_v62 = vadd.f32 %v343_v51, %v1837_v47  ;;  %v563_v16 = vmul.f32 1.442695, %v562_v22  ;;  %v1156_v51 = vrot.slane %v1155_v32, 4 }
  0xa5   :  { %v349_v55 = vmul.f32 0.6931472, %v1267_v5  ;;  %v354_v54 = vadd.f32 %v345_v37, %v1839_v34  ;;  %v438_v63 = vsub.f32 %v352_v38, %v402_v23  ;;  %v1269_v17 = vpop.eup %1268  ;;  %v580_v28 = vsel %vm579_vm8, %v2002_v46, 0.0 }
  0xa6   :  { %v355_v35 = vadd.f32 %v347_v21, %v1844_v59  ;;  %v439_v13 = vsub.f32 %v353_v62, %v409_v58  ;;  %1272 = vpow2.f32 %v563_v16  ;;  %v351_v56 = vmul.f32 0.6931472, %v1269_v17  ;;  %v2151_v59 = vld [vmem:[#allocation12_spill] sm:$0xff] }
  0xa7   :  { %v356_v50 = vadd.f32 %v349_v55, %v1846_v2  ;;  %v440_v9 = vsub.f32 %v354_v54, %v416_v33  ;;  %v478_v15 = vmul.f32 %v2148_v18, %v438_v63  ;;  %v1157_v33 = vadd.f32 %v1156_v51, %v1155_v32 }
  0xa8   :  { %v441_v47 = vsub.f32 %v355_v35, %v423_v40  ;;  %v479_v41 = vmul.f32 %v2149_v45, %v439_v13  ;;  %v357_v26 = vadd.f32 %v351_v56, %v1850_v44  ;;  %v581_v21 = vsel %vm554_vm6, %v580_v28, 0.0 }
  0xa9   :  { %v442_v34 = vsub.f32 %v356_v50, %v430_v48  ;;  %v480_v12 = vmul.f32 %v2150_v24, %v440_v9  ;;  %v484_v42 = vsel %vm130_vm7, %v478_v15, 0.0  ;;  %v582_v40 = vrot.slane %v581_v21, 4  ;;  %v2154_v15 = vld [vmem:[#allocation2_spill] sm:$0xff] }
  0xaa   :  { %v481_v19 = vmul.f32 %v2151_v59, %v441_v47  ;;  %v485_v20 = vsel %vm130_vm7, %v479_v41, 0.0  ;;  %v443_v3 = vsub.f32 %v357_v26, %v437_v6  ;;  %v1158_v7 = vrot.slane %v1157_v33, 2 }
  0xab   :  { %v1271_v2 = vpop.eup %1270  ;;  %v482_v25 = vmul.f32 %v2152_v29, %v442_v34  ;;  %v486_v0 = vadd.f32 %v485_v20, %v484_v42  ;;  %v487_v30 = vsel %vm130_vm7, %v480_v12, 0.0  ;;  %v583_v63 = vadd.f32 %v582_v40, %v581_v21  ;;  %v2155_v42 = vld [vmem:[#allocation3_spill] sm:$0xff]  ;;  %v1122_v20 = vpop.xlane.xlu1 %1121 }
  0xac   :  { %v489_v44 = vsel %vm130_vm7, %v481_v19, 0.0  ;;  %v1139_v36 = vsel %vm554_vm6, %v1271_v2, 0.0  ;;  %v483_v1 = vmul.f32 %v2153_v8, %v443_v3  ;;  %v1159_v54 = vadd.f32 %v1158_v7, %v1157_v33 }
  0xad   :  { %v488_v52 = vadd.f32 %v487_v30, %v486_v0  ;;  %v1140_v10 = vrot.slane %v1139_v36, 4  ;;  %v491_v49 = vsel %vm130_vm7, %v482_v25, 0.0  ;;  %v584_v46 = vrot.slane %v583_v63, 2 }
  0xae   :  { %v493_v23 = vsel %vm130_vm7, %v483_v1, 0.0  ;;  %v1160_v17 = vrot.slane %v1159_v54, 1 }
  0xaf   :  { %v490_v39 = vadd.f32 %v489_v44, %v488_v52  ;;  %v1141_v60 = vadd.f32 %v1140_v10, %v1139_v36  ;;  %v585_v56 = vadd.f32 %v584_v46, %v583_v63  ;;  %v1172_v2 = vpop.xlane.xlu1 %1171 }
  0xb0   :  { %v1161_v13 = vadd.f32 %v1160_v17, %v1159_v54 }
  0xb1   :  { %v492_v14 = vadd.f32 %v491_v49, %v490_v39  ;;  %v1142_v57 = vrot.slane %v1141_v60, 2  ;;  %v586_v18 = vrot.slane %v585_v56, 1 }
  0xb3   :  { %v1273_v43 = vpop.eup %1272  ;;  %v494_v58 = vadd.f32 %v493_v23, %v492_v14  ;;  %v1143_v61 = vadd.f32 %v1142_v57, %v1141_v60  ;;  %v587_v34 = vadd.f32 %v586_v18, %v585_v56  ;;  %v718_v29 = vpop.xlane.xlu1 %717 }
  0xb4   :  { %v565_v22 = vsel %vm554_vm6, %v1273_v43, 0.0  ;;  %v719_v52 = vmax.f32 %v718_v29, 1.0 }
  0xb5   :  { %495 = vadd.xlane.f32.xlu0 %v494_v58  ;;  %v1144_v27 = vrot.slane %v1143_v61, 1  ;;  %v566_v37 = vrot.slane %v565_v22, 4  ;;  %v1123_v58 = vmax.f32 %v1122_v20, 1.0  ;;  %v2156_v20 = vlaneseq }
  0xb7   :  { %v1145_v38 = vadd.f32 %v1144_v27, %v1143_v61  ;;  %v567_v5 = vadd.f32 %v566_v37, %v565_v22  ;;  %v1082_v0 = vpop.xlane.xlu1 %1081 }
  0xb8   :  { %v1083_v32 = vmax.f32 %v1082_v0, 1.0 }
  0xb9   :  { %1274 = vlog2.f32 %v1145_v38  ;;  %v568_v62 = vrot.slane %v567_v5, 2 }
  0xbb   :  { %v569_v16 = vadd.f32 %v568_v62, %v567_v5  ;;  %v692_v44 = vpop.xlane.xlu1 %691 }
  0xbc   :  { %v693_v11 = vsel %vm103_vm13, %v692_v44, 0.0 }
  0xbd   :  { %v570_v55 = vrot.slane %v569_v16, 1  ;;  %v694_v10 = vrot.slane %v693_v11, 4 }
  0xbf   :  { %v571_v48 = vadd.f32 %v570_v55, %v569_v16  ;;  %v695_v14 = vadd.f32 %v694_v10, %v693_v11 }
  0xc0   :  { %v1112_v8 = vpop.xlane.xlu1 %1111 }
  0xc1   :  { %1276 = vlog2.f32 %v571_v48  ;;  %v1113_v39 = vsel %vm103_vm13, %v1112_v8, 0.0  ;;  %v696_v22 = vrot.slane %v695_v14, 2  ;;  %v1173_v48 = vmax.f32 %v1172_v2, 1.0 }
  0xc2   :  { %1278 = vrcp.f32 %v719_v52  ;;  %v1114_v43 = vrot.slane %v1113_v39, 4 }
  0xc3   :  { %v697_v38 = vadd.f32 %v696_v22, %v695_v14 }
  0xc4   :  { %v1115_v27 = vadd.f32 %v1114_v43, %v1113_v39 }
  0xc5   :  { %v698_v40 = vrot.slane %v697_v38, 1 }
  0xc6   :  { %v1275_v35 = vpop.eup %1274  ;;  %v1116_v5 = vrot.slane %v1115_v27, 2 }
  0xc7   :  { %v1147_v6 = vmul.f32 0.6931472, %v1275_v35 }
  0xc8   :  { %v1117_v16 = vadd.f32 %v1116_v5, %v1115_v27 }
  0xc9   :  { %v1148_v50 = vadd.f32 %v1147_v6, %v2014_v31  ;;  %v548_v31 = vpop.xlane.xlu0 %547 }
  0xca   :  { %v549_v61 = vmax.f32 %v548_v31, 1.0  ;;  %v1185_v31 = vand.u32 127, %v2156_v20 }
  0xcb   :  { %v1162_v9 = vsub.f32 %v1148_v50, %v1161_v13  ;;  %v699_v13 = vadd.f32 %v698_v40, %v697_v38  ;;  %v1118_v50 = vrot.slane %v1117_v16, 1 }
  0xcc   :  { %vm1186_vm7 = vcmp.eq.s32.totalorder %v1185_v31, 0  ;;  %vm1194_vm9 = vcmp.eq.s32.totalorder %v1185_v31, 3  ;;  %vm1197_vm10 = vcmp.eq.s32.totalorder %v1185_v31, 4 }
  0xcd   :  { %v1166_v47 = vmul.f32 %v2154_v15, %v1162_v9  ;;  %v598_v3 = vpop.xlane.xlu0 %597 }
  0xce   :  { %v1277_v45 = vpop.eup %1276  ;;  %v599_v17 = vmax.f32 %v598_v3, 1.0 }
  0xcf   :  { %v1167_v41 = vsel %vm545_vm0, %v1166_v47, 0.0  ;;  %v573_v26 = vmul.f32 0.6931472, %v1277_v45  ;;  %v1279_v62 = vpop.eup %1278 }
  0xd0   :  { %1168 = vadd.xlane.f32.xlu1 %v1167_v41  ;;  %v721_v41 = vmul.f32 %v1279_v62, %v699_v13 }
  0xd1   :  { %v574_v24 = vadd.f32 %v573_v26, %v2021_v53  ;;  %v143_v25 = vpop.xlane.xlu0 %142 }
  0xd2   :  { %v144_v49 = vmax.f32 %v143_v25, 1.0 }
  0xd3   :  { %v588_v12 = vsub.f32 %v574_v24, %v587_v34  ;;  %v1119_v34 = vadd.f32 %v1118_v50, %v1117_v16 }
  0xd4   :  { %1280 = vrcp.f32 %v144_v49 }
  0xd5   :  { %v592_v59 = vmul.f32 %v2155_v42, %v588_v12  ;;  %v509_v30 = vpop.xlane.xlu0 %508  ;;  %1282 = vrcp.f32 %v1083_v32 }
  0xd6   :  { %v510_v23 = vmax.f32 %v509_v30, 1.0 }
  0xd7   :  { %v593_v19 = vsel %vm545_vm0, %v592_v59, 0.0  ;;  %vm1188_vm0 = vcmp.eq.s32.totalorder %v1185_v31, 1 }
  0xd8   :  { %594 = vadd.xlane.f32.xlu0 %v593_v19  ;;  %1284 = vrcp.f32 %v510_v23 }
  0xd9   :  { %v116_v36 = vpop.xlane.xlu0 %115  ;;  %1286 = vrcp.f32 %v1123_v58 }
  0xda   :  { %v117_v53 = vsel %vm103_vm13, %v116_v36, 0.0  ;;  %1288 = vrcp.f32 %v549_v61 }
  0xdb   :  { %v118_v4 = vrot.slane %v117_v53, 4  ;;  %1290 = vrcp.f32 %v1173_v48 }
  0xdc   :  { %1292 = vrcp.f32 %v599_v17 }
  0xdd   :  { %v537_v1 = vpop.xlane.xlu0 %536  ;;  %v119_v57 = vadd.f32 %v118_v4, %v117_v53 }
  0xde   :  { %v538_v60 = vsel %vm103_vm13, %v537_v1, 0.0  ;;  %vm1191_vm13 = vcmp.eq.s32.totalorder %v1185_v31, 2 }
  0xdf   :  { %v539_v51 = vrot.slane %v538_v60, 4  ;;  %v120_v28 = vrot.slane %v119_v57, 2 }
  0xe1   :  { %v540_v37 = vadd.f32 %v539_v51, %v538_v60  ;;  %v121_v33 = vadd.f32 %v120_v28, %v119_v57  ;;  %v1281_v54 = vpop.eup %1280 }
  0xe2   :  { %v1283_v63 = vpop.eup %1282 }
  0xe3   :  { %v541_v21 = vrot.slane %v540_v37, 2  ;;  %v122_v7 = vrot.slane %v121_v33, 1 }
  0xe5   :  { %v542_v55 = vadd.f32 %v541_v21, %v540_v37  ;;  %v1285_v6 = vpop.eup %1284  ;;  %v123_v56 = vadd.f32 %v122_v7, %v121_v33 }
  0xe6   :  { %v1287_v47 = vpop.eup %1286 }
  0xe7   :  { %v543_v9 = vrot.slane %v542_v55, 1  ;;  %v1289_v45 = vpop.eup %1288  ;;  %v146_v26 = vmul.f32 %v1281_v54, %v123_v56  ;;  %v1125_v42 = vmul.f32 %v1287_v47, %v1119_v34 }
  0xe8   :  { %v1291_v30 = vpop.eup %1290 }
  0xe9   :  { %v544_v24 = vadd.f32 %v543_v9, %v542_v55  ;;  %v722_v19 = vadd.f32 %v721_v41, %v146_v26  ;;  %v1293_v44 = vpop.eup %1292 }
  0xeb   :  { %v551_v59 = vmul.f32 %v1289_v45, %v544_v24  ;;  %v1177_v3 = vmul.f32 0.5, %v722_v19 }
  0xed   :  { %v1126_v29 = vadd.f32 %v1125_v42, %v551_v59  ;;  %v1187_v36 = vsel %vm1186_vm7, %v1177_v3, 0.0 }
  0xef   :  { %v1179_v8 = vmul.f32 0.5, %v1126_v29 }
  0xf1   :  { %v1192_v49 = vsel %vm1191_vm13, %v1179_v8, 0.0 }
 0x119   :  { %v1069_v46 = vpop.xlane.xlu1 %1068 }
 0x11a   :  { %v1085_v18 = vmul.f32 %v1283_v63, %v1069_v46 }
 0x13e   :  { %v496_v35 = vpop.xlane.xlu0 %495 }
 0x13f   :  { %v512_v15 = vmul.f32 %v1285_v6, %v496_v35 }
 0x141   :  { %v1086_v12 = vadd.f32 %v1085_v18, %v512_v15 }
 0x143   :  { %v1178_v2 = vmul.f32 0.5, %v1086_v12 }
 0x145   :  { %v1189_v0 = vsel %vm1188_vm0, %v1178_v2, 0.0  ;;  %v1181_v11 = vadd.f32 %v1178_v2, %v1177_v3 }
 0x146   :  { %v1190_v1 = vadd.f32 %v1189_v0, %v1187_v36 }
 0x147   :  { %v1182_v4 = vadd.f32 %v1181_v11, %v1179_v8 }
 0x148   :  { %v1193_v60 = vadd.f32 %v1192_v49, %v1190_v1 }
 0x159   :  { %v1169_v25 = vpop.xlane.xlu1 %1168 }
 0x15a   :  { %v1175_v53 = vmul.f32 %v1291_v30, %v1169_v25 }
 0x161   :  { %v595_v52 = vpop.xlane.xlu0 %594 }
 0x162   :  { %v601_v10 = vmul.f32 %v1293_v44, %v595_v52 }
 0x164   :  { %v1176_v39 = vadd.f32 %v1175_v53, %v601_v10 }
 0x166   :  { %v1180_v32 = vmul.f32 0.5, %v1176_v39 }
 0x168   :  { %v1183_v23 = vadd.f32 %v1182_v4, %v1180_v32  ;;  %v1195_v14 = vsel %vm1194_vm9, %v1180_v32, 0.0 }
 0x169   :  { %v1196_v57 = vadd.f32 %v1195_v14, %v1193_v60 }
 0x16a   :  { %v1198_v43 = vsel %vm1197_vm10, %v1183_v23, 0.0 }
 0x16b   :  { %v1199_v51 = vadd.f32 %v1198_v43, %v1196_v57 }
 0x16d   :  { %1200 = vst [vmem:[%s2079_s8] sm:$0x1] %v1199_v51 }

</bundles_post_ra>
